<compile_context>
chip_gen: v7x
topology: tpu7x:2x2x1
jax: 0.10.0
libtpu: 0.0.40
codegen_flags: <defaults>
</compile_context>

<pallas_src>
import math

import jax
import jax.numpy as jnp
from jax.experimental import pallas as pl
from jax.experimental.pallas import tpu as pltpu

LI_ALPHA = 0.1      # dt * tau_mem_inv (norse defaults: dt=1e-3, tau_mem_inv=100)
V_TH = 1.0          # LIF firing threshold (norse default)
BN_EPS = 1e-5
LANE = 128          # TPU lane width: channel dims padded to this
BIG = 3.0e38        # threshold on padded channels -> never fires


# ----------------------------- fused Pallas kernel ---------------------------

def _make_fused_kernel(h, w):
    """One grid step = one image, end to end."""
    H1, W1 = h, w
    H2, W2 = h // 2, w // 2
    H3, W3 = h // 4, w // 4
    Wp2, Wp3 = W2 + 2, W3 + 2

    def kernel(lhs1_ref, w1c_ref, w2c_ref, w3c_ref, thr_ref, on_ref, off_ref,
               wf1_ref, t1_ref, wf2_ref, t2_ref, o_ref, pad2_ref, pad3_ref):
        # ---------------- stage 1: conv1 -> spike -> BN -> maxpool ----------------
        # lhs1_ref: (H1*W1, 9*Cin) pre-built im2col of the (tiny) network input.
        acc1 = jnp.dot(lhs1_ref[...], w1c_ref[...],
                       preferred_element_type=jnp.float32)           # (H1*W1, 128)
        a1 = jnp.where(acc1 >= thr_ref[0:1, :], on_ref[0:1, :],
                       off_ref[0:1, :]).astype(jnp.bfloat16)

        # MaxPool2d(2) fused: vertical pair max on contiguous row blocks, then
        # horizontal pair max per output column, written straight into the
        # next layer's halo-padded VMEM scratch (halo stays zero).
        pad2_ref[...] = jnp.zeros(pad2_ref.shape, jnp.bfloat16)
        for py in range(H2):
            top = a1[(2 * py) * W1:(2 * py) * W1 + W1, :]
            bot = a1[(2 * py + 1) * W1:(2 * py + 1) * W1 + W1, :]
            vm = jnp.maximum(top, bot)                                 # (W1, 128)
            base = (py + 1) * Wp2 + 1
            for px in range(W2):
                pad2_ref[base + px:base + px + 1, :] = jnp.maximum(
                    vm[2 * px:2 * px + 1, :], vm[2 * px + 1:2 * px + 2, :])

        # ---------------- stage 2: conv2 -> spike -> BN -> maxpool ----------------
        # In-VMEM im2col: K = 9*128 (lane-dense, 128-padded input channels).
        rows2 = []
        for y in range(H2):
            taps = [pad2_ref[(y + dy) * Wp2 + dx:(y + dy) * Wp2 + dx + W2, :]
                    for dy in range(3) for dx in range(3)]
            rows2.append(jnp.concatenate(taps, axis=1))                # (W2, 1152)
        lhs2 = jnp.concatenate(rows2, axis=0)                          # (H2*W2, 1152)
        acc2 = jnp.dot(lhs2, w2c_ref[...], preferred_element_type=jnp.float32)
        a2 = jnp.where(acc2 >= thr_ref[1:2, :], on_ref[1:2, :],
                       off_ref[1:2, :]).astype(jnp.bfloat16)

        pad3_ref[...] = jnp.zeros(pad3_ref.shape, jnp.bfloat16)
        for py in range(H3):
            top = a2[(2 * py) * W2:(2 * py) * W2 + W2, :]
            bot = a2[(2 * py + 1) * W2:(2 * py + 1) * W2 + W2, :]
            vm = jnp.maximum(top, bot)                                 # (W2, 128)
            base = (py + 1) * Wp3 + 1
            for px in range(W3):
                pad3_ref[base + px:base + px + 1, :] = jnp.maximum(
                    vm[2 * px:2 * px + 1, :], vm[2 * px + 1:2 * px + 2, :])

        # ---------------- stage 3: conv3 -> spike -> BN ---------------------------
        # AdaptiveAvgPool2d((4,4)) on a 4x4 input is the identity -> dropped.
        rows3 = []
        for y in range(H3):
            taps = [pad3_ref[(y + dy) * Wp3 + dx:(y + dy) * Wp3 + dx + W3, :]
                    for dy in range(3) for dx in range(3)]
            rows3.append(jnp.concatenate(taps, axis=1))                # (W3, 1152)
        lhs3 = jnp.concatenate(rows3, axis=0)                          # (H3*W3, 1152)
        acc3 = jnp.dot(lhs3, w3c_ref[...], preferred_element_type=jnp.float32)
        a3 = jnp.where(acc3 >= thr_ref[2:3, :], on_ref[2:3, :],
                       off_ref[2:3, :]).astype(jnp.bfloat16)           # (16, 128)

        # ---------------- classifier: flatten -> fc1 -> spike -> fc2 -> spike -----
        # Flatten is a lane-concat; fc1 rows are pre-permuted to (h, w, c) order.
        feat = jnp.concatenate([a3[r:r + 1, :] for r in range(H3 * W3)],
                               axis=1)                                  # (1, 2048)
        pre1 = jnp.dot(feat, wf1_ref[...],
                       preferred_element_type=jnp.float32)              # (1, 256)
        s1 = (pre1 >= t1_ref[...]).astype(jnp.bfloat16)                 # LIFCell spikes
        pre2 = jnp.dot(s1, wf2_ref[...],
                       preferred_element_type=jnp.float32)              # (1, 128)
        o_ref[...] = (pre2 >= t2_ref[...]).astype(jnp.float32)          # LIFCell spikes

    return kernel


# ---------------------------------- params -----------------------------------

def init_params(key, in_channels, num_classes):
    assert num_classes <= LANE
    ks = jax.random.split(key, 5)

    def conv_layer(k, cin_real, cin_pad, cout_real):
        # PyTorch Conv2d weight layout (Cout, Cin, KH, KW), Kaiming-normal init.
        std = math.sqrt(2.0 / (9 * cin_real))
        w_pt = jax.random.normal(k, (cout_real, cin_real, 3, 3), jnp.float32) * std
        bias = jnp.zeros((cout_real,), jnp.float32)
        # -> tap-major rows (dy, dx, cin): (9*cin_pad, 128) bf16, zero-padded
        #    cin (carried 128-padded activations) and cout (lane padding).
        wt = jnp.transpose(w_pt, (2, 3, 1, 0))                       # (3,3,cin,cout)
        wt = jnp.pad(wt, ((0, 0), (0, 0), (0, cin_pad - cin_real),
                          (0, LANE - cout_real)))
        wt = wt.reshape(9 * cin_pad, LANE).astype(jnp.bfloat16)
        # BatchNorm2d eval stats: gamma=1, beta=0, mean=0, var=1.
        gamma = jnp.ones((cout_real,), jnp.float32)
        beta = jnp.zeros((cout_real,), jnp.float32)
        mean = jnp.zeros((cout_real,), jnp.float32)
        var = jnp.ones((cout_real,), jnp.float32)
        scale = gamma / jnp.sqrt(var + BN_EPS)
        shift = beta - mean * scale
        padc = (0, LANE - cout_real)
        thr = jnp.pad(V_TH / LI_ALPHA - bias, padc, constant_values=BIG)
        on = jnp.pad(scale + shift, padc)        # BN(spike=1)
        off = jnp.pad(shift, padc)               # BN(spike=0); 0 on padded lanes
        return wt, thr, on, off

    w1c, t_a, on_a, of_a = conv_layer(ks[0], in_channels, in_channels, 32)
    w2c, t_b, on_b, of_b = conv_layer(ks[1], 32, LANE, 64)
    w3c, t_c, on_c, of_c = conv_layer(ks[2], 64, LANE, 128)
    thr = jnp.stack([t_a, t_b, t_c])             # (3, 128)
    onv = jnp.stack([on_a, on_b, on_c])
    offv = jnp.stack([of_a, of_b, of_c])

    # fc1: nn.Flatten uses (C,H,W) order; activations are (H,W,C), so permute
    # w1's input dim once here instead of transposing activations at runtime.
    c, hw = 128, 4
    feat_dim = c * hw * hw                                            # 2048
    w1_pt = jax.random.normal(ks[3], (c, hw, hw, 256), jnp.float32) \
        * math.sqrt(2.0 / feat_dim)
    wf1 = jnp.transpose(w1_pt, (1, 2, 0, 3)).reshape(feat_dim, 256)
    wf1 = wf1.astype(jnp.bfloat16)
    b1 = jnp.zeros((256,), jnp.float32)
    t1 = (V_TH / LI_ALPHA - b1).reshape(1, 256)

    wf2 = jax.random.normal(ks[4], (256, num_classes), jnp.float32) \
        * math.sqrt(2.0 / 256)
    wf2 = jnp.pad(wf2, ((0, 0), (0, LANE - num_classes))).astype(jnp.bfloat16)
    b2 = jnp.zeros((num_classes,), jnp.float32)
    t2 = jnp.pad(V_TH / LI_ALPHA - b2, (0, LANE - num_classes),
                 constant_values=BIG).reshape(1, LANE)

    return {"w1c": w1c, "w2c": w2c, "w3c": w3c, "thr": thr, "on": onv,
            "off": offv, "wf1": wf1, "t1": t1, "wf2": wf2, "t2": t2,
            "num_classes": num_classes}


# --------------------------------- forward ------------------------------------

def enhanced_spiking_net_forward(x_nchw, params):
    n, cin, h, w = x_nchw.shape
    # 16x16 spatial only (AdaptiveAvgPool2d((4,4)) is then the identity).
    assert h == 16 and w == 16, "TODO(synk): general sizes need a real adaptive pool"

    # NCHW -> NHWC bf16; halo-pad ONCE and build the conv1 im2col LHS in XLA
    # (tiny: n*h*w*9*cin bf16 ~ 18 KiB/image).  Layers 2/3 build theirs in VMEM.
    x = jnp.transpose(x_nchw, (0, 2, 3, 1)).astype(jnp.bfloat16)
    xp = jnp.pad(x, ((0, 0), (1, 1), (1, 1), (0, 0)))
    taps = [xp[:, dy:dy + h, dx:dx + w, :] for dy in range(3) for dx in range(3)]
    lhs1 = jnp.concatenate(taps, axis=-1).reshape(n, h * w, 9 * cin)

    h2, w2, h3, w3 = h // 2, w // 2, h // 4, w // 4
    # Executed (lane-padded) FLOPs / bytes — advisory for the XLA scheduler.
    flops = 2 * n * (h * w * 9 * cin * LANE
                     + h2 * w2 * 9 * LANE * LANE
                     + h3 * w3 * 9 * LANE * LANE
                     + 2048 * 256 + 256 * LANE)
    bytes_accessed = (lhs1.size * 2
                      + (params["w1c"].size + params["w2c"].size
                         + params["w3c"].size + params["wf1"].size
                         + params["wf2"].size) * 2
                      + (3 * 3 * LANE + 256 + LANE) * 4
                      + n * LANE * 4)

    out = pl.pallas_call(
        _make_fused_kernel(h, w),
        out_shape=jax.ShapeDtypeStruct((n, 1, LANE), jnp.float32),
        grid=(n,),
        in_specs=[
            pl.BlockSpec((None, h * w, 9 * cin), lambda i: (i, 0, 0)),  # im2col LHS
            pl.BlockSpec((9 * cin, LANE), lambda i: (0, 0)),            # conv1 W
            pl.BlockSpec((9 * LANE, LANE), lambda i: (0, 0)),           # conv2 W
            pl.BlockSpec((9 * LANE, LANE), lambda i: (0, 0)),           # conv3 W
            pl.BlockSpec((3, LANE), lambda i: (0, 0)),                  # thresholds
            pl.BlockSpec((3, LANE), lambda i: (0, 0)),                  # BN(on)
            pl.BlockSpec((3, LANE), lambda i: (0, 0)),                  # BN(off)
            pl.BlockSpec((2048, 256), lambda i: (0, 0)),                # fc1 W
            pl.BlockSpec((1, 256), lambda i: (0, 0)),                   # fc1 thr
            pl.BlockSpec((256, LANE), lambda i: (0, 0)),                # fc2 W
            pl.BlockSpec((1, LANE), lambda i: (0, 0)),                  # fc2 thr
        ],
        out_specs=pl.BlockSpec((None, 1, LANE), lambda i: (i, 0, 0)),
        scratch_shapes=[
            pltpu.VMEM(((h2 + 2) * (w2 + 2), LANE), jnp.bfloat16),      # conv2 halo
            pltpu.VMEM(((h3 + 2) * (w3 + 2), LANE), jnp.bfloat16),      # conv3 halo
        ],
        compiler_params=pltpu.CompilerParams(
            dimension_semantics=("parallel",),        # batch split across TCs (v7x)
        ),
        cost_estimate=pl.CostEstimate(flops=flops, transcendentals=0,
                                      bytes_accessed=bytes_accessed),
    )(lhs1, params["w1c"], params["w2c"], params["w3c"], params["thr"],
      params["on"], params["off"], params["wf1"], params["t1"],
      params["wf2"], params["t2"])

    # Drop the lane padding of the final LIF layer (num_classes <= 128).
    return out.reshape(n, LANE)[:, :params["num_classes"]]


if __name__ == "__main__":
    key = jax.random.PRNGKey(0)
    k_x, k_p = jax.random.split(key)
    # Shapes consistent with the module: batch=2, input_shape=(4,16,16), 10 classes.
    x = jax.random.uniform(k_x, (2, 4, 16, 16), jnp.float32, 0.0, 2.0)   # NCHW input
    params = init_params(k_p, in_channels=4, num_classes=10)

    fwd = jax.jit(lambda xx: enhanced_spiking_net_forward(xx, params))
    out = fwd(x)
    jax.block_until_ready(out)
    assert out.shape == (2, 10) and out.dtype == jnp.float32
    print("KERNEL_OK")
</pallas_src>

<mosaic_0001>
module attributes {stable_mosaic.version = 11 : i64} {
  func.func @kernel(%arg0: i32, %arg1: memref<1x256x36xbf16, #tpu.memory_space<vmem>>, %arg2: memref<36x128xbf16, #tpu.memory_space<vmem>>, %arg3: memref<1152x128xbf16, #tpu.memory_space<vmem>>, %arg4: memref<1152x128xbf16, #tpu.memory_space<vmem>>, %arg5: memref<3x128xf32, #tpu.memory_space<vmem>>, %arg6: memref<3x128xf32, #tpu.memory_space<vmem>>, %arg7: memref<3x128xf32, #tpu.memory_space<vmem>>, %arg8: memref<2048x256xbf16, #tpu.memory_space<vmem>>, %arg9: memref<1x256xf32, #tpu.memory_space<vmem>>, %arg10: memref<256x128xbf16, #tpu.memory_space<vmem>>, %arg11: memref<1x128xf32, #tpu.memory_space<vmem>>, %arg12: memref<1x1x128xf32, #tpu.memory_space<vmem>>, %arg13: memref<100x128xbf16, #tpu.memory_space<vmem>>, %arg14: memref<36x128xbf16, #tpu.memory_space<vmem>>) attributes {dimension_semantics = [#tpu.dimension_semantics<parallel>], iteration_bounds = array<i64: 2>, scalar_prefetch = 0 : i64, scratch_operands = 2 : i64, tpu.core_type = #tpu.core_type<tc>, window_params = [{transform_indices = @transform_0, window_bounds = array<i64: 1, 256, 36>}, {pipeline_mode = #tpu.pipeline_mode<synchronous>, transform_indices = @transform_1, window_bounds = array<i64: 36, 128>}, {pipeline_mode = #tpu.pipeline_mode<synchronous>, transform_indices = @transform_2, window_bounds = array<i64: 1152, 128>}, {pipeline_mode = #tpu.pipeline_mode<synchronous>, transform_indices = @transform_3, window_bounds = array<i64: 1152, 128>}, {pipeline_mode = #tpu.pipeline_mode<synchronous>, transform_indices = @transform_4, window_bounds = array<i64: 3, 128>}, {pipeline_mode = #tpu.pipeline_mode<synchronous>, transform_indices = @transform_5, window_bounds = array<i64: 3, 128>}, {pipeline_mode = #tpu.pipeline_mode<synchronous>, transform_indices = @transform_6, window_bounds = array<i64: 3, 128>}, {pipeline_mode = #tpu.pipeline_mode<synchronous>, transform_indices = @transform_7, window_bounds = array<i64: 2048, 256>}, {pipeline_mode = #tpu.pipeline_mode<synchronous>, transform_indices = @transform_8, window_bounds = array<i64: 1, 256>}, {pipeline_mode = #tpu.pipeline_mode<synchronous>, transform_indices = @transform_9, window_bounds = array<i64: 256, 128>}, {pipeline_mode = #tpu.pipeline_mode<synchronous>, transform_indices = @transform_10, window_bounds = array<i64: 1, 128>}, {transform_indices = @transform_11, window_bounds = array<i64: 1, 1, 128>}]} {
    %c0 = arith.constant 0 : index
    %c0_0 = arith.constant 0 : index
    %c0_1 = arith.constant 0 : index
    %0 = vector.load %arg1[%c0, %c0_0, %c0_1] : memref<1x256x36xbf16, #tpu.memory_space<vmem>>, vector<1x256x36xbf16>
    %1 = vector.shape_cast %0 : vector<1x256x36xbf16> to vector<256x36xbf16>
    %c0_2 = arith.constant 0 : index
    %c0_3 = arith.constant 0 : index
    %2 = vector.load %arg2[%c0_2, %c0_3] : memref<36x128xbf16, #tpu.memory_space<vmem>>, vector<36x128xbf16>
    %cst = arith.constant dense<0.000000e+00> : vector<256x128xf32>
    %3 = tpu.matmul %1, %2, %cst {dimension_numbers = #tpu.dot_dimension_numbers<[1], [0], [0], [1], [0, 0, 1, 1], [], []>} : vector<256x36xbf16>, vector<36x128xbf16>, vector<256x128xf32> -> vector<256x128xf32>
    %c0_4 = arith.constant 0 : index
    %c0_5 = arith.constant 0 : index
    %4 = vector.load %arg5[%c0_4, %c0_5] : memref<3x128xf32, #tpu.memory_space<vmem>>, vector<1x128xf32>
    %5 = vector.broadcast %4 : vector<1x128xf32> to vector<256x128xf32>
    %6 = arith.cmpf oge, %3, %5 : vector<256x128xf32>
    %c0_6 = arith.constant 0 : index
    %c0_7 = arith.constant 0 : index
    %7 = vector.load %arg6[%c0_6, %c0_7] : memref<3x128xf32, #tpu.memory_space<vmem>>, vector<1x128xf32>
    %c0_8 = arith.constant 0 : index
    %c0_9 = arith.constant 0 : index
    %8 = vector.load %arg7[%c0_8, %c0_9] : memref<3x128xf32, #tpu.memory_space<vmem>>, vector<1x128xf32>
    %9 = vector.shape_cast %7 : vector<1x128xf32> to vector<1x128xf32>
    %10 = vector.broadcast %9 : vector<1x128xf32> to vector<256x128xf32>
    %11 = vector.shape_cast %8 : vector<1x128xf32> to vector<1x128xf32>
    %12 = vector.broadcast %11 : vector<1x128xf32> to vector<256x128xf32>
    %13 = arith.select %6, %10, %12 : vector<256x128xi1>, vector<256x128xf32>
    %14 = arith.truncf %13 : vector<256x128xf32> to vector<256x128xbf16>
    %cst_10 = arith.constant 0.000000e+00 : bf16
    %15 = vector.broadcast %cst_10 : bf16 to vector<100x128xbf16>
    %c0_11 = arith.constant 0 : index
    %c0_12 = arith.constant 0 : index
    %16 = vector.load %arg13[%c0_11, %c0_12] : memref<100x128xbf16, #tpu.memory_space<vmem>>, vector<100x128xbf16>
    tpu.vector_store %arg13[%c0_11, %c0_12], %15 {strides = array<i32>} : memref<100x128xbf16, #tpu.memory_space<vmem>>, vector<100x128xbf16>,
    %17 = vector.extract_strided_slice %14 {offsets = [0, 0], sizes = [16, 128], strides = [1, 1]} : vector<256x128xbf16> to vector<16x128xbf16>
    %18 = vector.extract_strided_slice %14 {offsets = [16, 0], sizes = [16, 128], strides = [1, 1]} : vector<256x128xbf16> to vector<16x128xbf16>
    %19 = arith.maximumf %17, %18 : vector<16x128xbf16>
    %20 = vector.extract_strided_slice %19 {offsets = [0, 0], sizes = [1, 128], strides = [1, 1]} : vector<16x128xbf16> to vector<1x128xbf16>
    %21 = vector.extract_strided_slice %19 {offsets = [1, 0], sizes = [1, 128], strides = [1, 1]} : vector<16x128xbf16> to vector<1x128xbf16>
    %22 = arith.maximumf %20, %21 : vector<1x128xbf16>
    %c11 = arith.constant 11 : index
    %c0_13 = arith.constant 0 : index
    %23 = vector.load %arg13[%c11, %c0_13] : memref<100x128xbf16, #tpu.memory_space<vmem>>, vector<1x128xbf16>
    tpu.vector_store %arg13[%c11, %c0_13], %22 {strides = array<i32>} : memref<100x128xbf16, #tpu.memory_space<vmem>>, vector<1x128xbf16>,
    %24 = vector.extract_strided_slice %19 {offsets = [2, 0], sizes = [1, 128], strides = [1, 1]} : vector<16x128xbf16> to vector<1x128xbf16>
    %25 = vector.extract_strided_slice %19 {offsets = [3, 0], sizes = [1, 128], strides = [1, 1]} : vector<16x128xbf16> to vector<1x128xbf16>
    %26 = arith.maximumf %24, %25 : vector<1x128xbf16>
    %c12 = arith.constant 12 : index
    %c0_14 = arith.constant 0 : index
    %27 = vector.load %arg13[%c12, %c0_14] : memref<100x128xbf16, #tpu.memory_space<vmem>>, vector<1x128xbf16>
    tpu.vector_store %arg13[%c12, %c0_14], %26 {strides = array<i32>} : memref<100x128xbf16, #tpu.memory_space<vmem>>, vector<1x128xbf16>,
    %28 = vector.extract_strided_slice %19 {offsets = [4, 0], sizes = [1, 128], strides = [1, 1]} : vector<16x128xbf16> to vector<1x128xbf16>
    %29 = vector.extract_strided_slice %19 {offsets = [5, 0], sizes = [1, 128], strides = [1, 1]} : vector<16x128xbf16> to vector<1x128xbf16>
    %30 = arith.maximumf %28, %29 : vector<1x128xbf16>
    %c13 = arith.constant 13 : index
    %c0_15 = arith.constant 0 : index
    %31 = vector.load %arg13[%c13, %c0_15] : memref<100x128xbf16, #tpu.memory_space<vmem>>, vector<1x128xbf16>
    tpu.vector_store %arg13[%c13, %c0_15], %30 {strides = array<i32>} : memref<100x128xbf16, #tpu.memory_space<vmem>>, vector<1x128xbf16>,
    %32 = vector.extract_strided_slice %19 {offsets = [6, 0], sizes = [1, 128], strides = [1, 1]} : vector<16x128xbf16> to vector<1x128xbf16>
    %33 = vector.extract_strided_slice %19 {offsets = [7, 0], sizes = [1, 128], strides = [1, 1]} : vector<16x128xbf16> to vector<1x128xbf16>
    %34 = arith.maximumf %32, %33 : vector<1x128xbf16>
    %c14 = arith.constant 14 : index
    %c0_16 = arith.constant 0 : index
    %35 = vector.load %arg13[%c14, %c0_16] : memref<100x128xbf16, #tpu.memory_space<vmem>>, vector<1x128xbf16>
    tpu.vector_store %arg13[%c14, %c0_16], %34 {strides = array<i32>} : memref<100x128xbf16, #tpu.memory_space<vmem>>, vector<1x128xbf16>,
    %36 = vector.extract_strided_slice %19 {offsets = [8, 0], sizes = [1, 128], strides = [1, 1]} : vector<16x128xbf16> to vector<1x128xbf16>
    %37 = vector.extract_strided_slice %19 {offsets = [9, 0], sizes = [1, 128], strides = [1, 1]} : vector<16x128xbf16> to vector<1x128xbf16>
    %38 = arith.maximumf %36, %37 : vector<1x128xbf16>
    %c15 = arith.constant 15 : index
    %c0_17 = arith.constant 0 : index
    %39 = vector.load %arg13[%c15, %c0_17] : memref<100x128xbf16, #tpu.memory_space<vmem>>, vector<1x128xbf16>
    tpu.vector_store %arg13[%c15, %c0_17], %38 {strides = array<i32>} : memref<100x128xbf16, #tpu.memory_space<vmem>>, vector<1x128xbf16>,
    %40 = vector.extract_strided_slice %19 {offsets = [10, 0], sizes = [1, 128], strides = [1, 1]} : vector<16x128xbf16> to vector<1x128xbf16>
    %41 = vector.extract_strided_slice %19 {offsets = [11, 0], sizes = [1, 128], strides = [1, 1]} : vector<16x128xbf16> to vector<1x128xbf16>
    %42 = arith.maximumf %40, %41 : vector<1x128xbf16>
    %c16 = arith.constant 16 : index
    %c0_18 = arith.constant 0 : index
    %43 = vector.load %arg13[%c16, %c0_18] : memref<100x128xbf16, #tpu.memory_space<vmem>>, vector<1x128xbf16>
    tpu.vector_store %arg13[%c16, %c0_18], %42 {strides = array<i32>} : memref<100x128xbf16, #tpu.memory_space<vmem>>, vector<1x128xbf16>,
    %44 = vector.extract_strided_slice %19 {offsets = [12, 0], sizes = [1, 128], strides = [1, 1]} : vector<16x128xbf16> to vector<1x128xbf16>
    %45 = vector.extract_strided_slice %19 {offsets = [13, 0], sizes = [1, 128], strides = [1, 1]} : vector<16x128xbf16> to vector<1x128xbf16>
    %46 = arith.maximumf %44, %45 : vector<1x128xbf16>
    %c17 = arith.constant 17 : index
    %c0_19 = arith.constant 0 : index
    %47 = vector.load %arg13[%c17, %c0_19] : memref<100x128xbf16, #tpu.memory_space<vmem>>, vector<1x128xbf16>
    tpu.vector_store %arg13[%c17, %c0_19], %46 {strides = array<i32>} : memref<100x128xbf16, #tpu.memory_space<vmem>>, vector<1x128xbf16>,
    %48 = vector.extract_strided_slice %19 {offsets = [14, 0], sizes = [1, 128], strides = [1, 1]} : vector<16x128xbf16> to vector<1x128xbf16>
    %49 = vector.extract_strided_slice %19 {offsets = [15, 0], sizes = [1, 128], strides = [1, 1]} : vector<16x128xbf16> to vector<1x128xbf16>
    %50 = arith.maximumf %48, %49 : vector<1x128xbf16>
    %c18 = arith.constant 18 : index
    %c0_20 = arith.constant 0 : index
    %51 = vector.load %arg13[%c18, %c0_20] : memref<100x128xbf16, #tpu.memory_space<vmem>>, vector<1x128xbf16>
    tpu.vector_store %arg13[%c18, %c0_20], %50 {strides = array<i32>} : memref<100x128xbf16, #tpu.memory_space<vmem>>, vector<1x128xbf16>,
    %52 = vector.extract_strided_slice %14 {offsets = [32, 0], sizes = [16, 128], strides = [1, 1]} : vector<256x128xbf16> to vector<16x128xbf16>
    %53 = vector.extract_strided_slice %14 {offsets = [48, 0], sizes = [16, 128], strides = [1, 1]} : vector<256x128xbf16> to vector<16x128xbf16>
    %54 = arith.maximumf %52, %53 : vector<16x128xbf16>
    %55 = vector.extract_strided_slice %54 {offsets = [0, 0], sizes = [1, 128], strides = [1, 1]} : vector<16x128xbf16> to vector<1x128xbf16>
    %56 = vector.extract_strided_slice %54 {offsets = [1, 0], sizes = [1, 128], strides = [1, 1]} : vector<16x128xbf16> to vector<1x128xbf16>
    %57 = arith.maximumf %55, %56 : vector<1x128xbf16>
    %c21 = arith.constant 21 : index
    %c0_21 = arith.constant 0 : index
    %58 = vector.load %arg13[%c21, %c0_21] : memref<100x128xbf16, #tpu.memory_space<vmem>>, vector<1x128xbf16>
    tpu.vector_store %arg13[%c21, %c0_21], %57 {strides = array<i32>} : memref<100x128xbf16, #tpu.memory_space<vmem>>, vector<1x128xbf16>,
    %59 = vector.extract_strided_slice %54 {offsets = [2, 0], sizes = [1, 128], strides = [1, 1]} : vector<16x128xbf16> to vector<1x128xbf16>
    %60 = vector.extract_strided_slice %54 {offsets = [3, 0], sizes = [1, 128], strides = [1, 1]} : vector<16x128xbf16> to vector<1x128xbf16>
    %61 = arith.maximumf %59, %60 : vector<1x128xbf16>
    %c22 = arith.constant 22 : index
    %c0_22 = arith.constant 0 : index
    %62 = vector.load %arg13[%c22, %c0_22] : memref<100x128xbf16, #tpu.memory_space<vmem>>, vector<1x128xbf16>
    tpu.vector_store %arg13[%c22, %c0_22], %61 {strides = array<i32>} : memref<100x128xbf16, #tpu.memory_space<vmem>>, vector<1x128xbf16>,
    %63 = vector.extract_strided_slice %54 {offsets = [4, 0], sizes = [1, 128], strides = [1, 1]} : vector<16x128xbf16> to vector<1x128xbf16>
    %64 = vector.extract_strided_slice %54 {offsets = [5, 0], sizes = [1, 128], strides = [1, 1]} : vector<16x128xbf16> to vector<1x128xbf16>
    %65 = arith.maximumf %63, %64 : vector<1x128xbf16>
    %c23 = arith.constant 23 : index
    %c0_23 = arith.constant 0 : index
    %66 = vector.load %arg13[%c23, %c0_23] : memref<100x128xbf16, #tpu.memory_space<vmem>>, vector<1x128xbf16>
    tpu.vector_store %arg13[%c23, %c0_23], %65 {strides = array<i32>} : memref<100x128xbf16, #tpu.memory_space<vmem>>, vector<1x128xbf16>,
    %67 = vector.extract_strided_slice %54 {offsets = [6, 0], sizes = [1, 128], strides = [1, 1]} : vector<16x128xbf16> to vector<1x128xbf16>
    %68 = vector.extract_strided_slice %54 {offsets = [7, 0], sizes = [1, 128], strides = [1, 1]} : vector<16x128xbf16> to vector<1x128xbf16>
    %69 = arith.maximumf %67, %68 : vector<1x128xbf16>
    %c24 = arith.constant 24 : index
    %c0_24 = arith.constant 0 : index
    %70 = vector.load %arg13[%c24, %c0_24] : memref<100x128xbf16, #tpu.memory_space<vmem>>, vector<1x128xbf16>
    tpu.vector_store %arg13[%c24, %c0_24], %69 {strides = array<i32>} : memref<100x128xbf16, #tpu.memory_space<vmem>>, vector<1x128xbf16>,
    %71 = vector.extract_strided_slice %54 {offsets = [8, 0], sizes = [1, 128], strides = [1, 1]} : vector<16x128xbf16> to vector<1x128xbf16>
    %72 = vector.extract_strided_slice %54 {offsets = [9, 0], sizes = [1, 128], strides = [1, 1]} : vector<16x128xbf16> to vector<1x128xbf16>
    %73 = arith.maximumf %71, %72 : vector<1x128xbf16>
    %c25 = arith.constant 25 : index
    %c0_25 = arith.constant 0 : index
    %74 = vector.load %arg13[%c25, %c0_25] : memref<100x128xbf16, #tpu.memory_space<vmem>>, vector<1x128xbf16>
    tpu.vector_store %arg13[%c25, %c0_25], %73 {strides = array<i32>} : memref<100x128xbf16, #tpu.memory_space<vmem>>, vector<1x128xbf16>,
    %75 = vector.extract_strided_slice %54 {offsets = [10, 0], sizes = [1, 128], strides = [1, 1]} : vector<16x128xbf16> to vector<1x128xbf16>
    %76 = vector.extract_strided_slice %54 {offsets = [11, 0], sizes = [1, 128], strides = [1, 1]} : vector<16x128xbf16> to vector<1x128xbf16>
    %77 = arith.maximumf %75, %76 : vector<1x128xbf16>
    %c26 = arith.constant 26 : index
    %c0_26 = arith.constant 0 : index
    %78 = vector.load %arg13[%c26, %c0_26] : memref<100x128xbf16, #tpu.memory_space<vmem>>, vector<1x128xbf16>
    tpu.vector_store %arg13[%c26, %c0_26], %77 {strides = array<i32>} : memref<100x128xbf16, #tpu.memory_space<vmem>>, vector<1x128xbf16>,
    %79 = vector.extract_strided_slice %54 {offsets = [12, 0], sizes = [1, 128], strides = [1, 1]} : vector<16x128xbf16> to vector<1x128xbf16>
    %80 = vector.extract_strided_slice %54 {offsets = [13, 0], sizes = [1, 128], strides = [1, 1]} : vector<16x128xbf16> to vector<1x128xbf16>
    %81 = arith.maximumf %79, %80 : vector<1x128xbf16>
    %c27 = arith.constant 27 : index
    %c0_27 = arith.constant 0 : index
    %82 = vector.load %arg13[%c27, %c0_27] : memref<100x128xbf16, #tpu.memory_space<vmem>>, vector<1x128xbf16>
    tpu.vector_store %arg13[%c27, %c0_27], %81 {strides = array<i32>} : memref<100x128xbf16, #tpu.memory_space<vmem>>, vector<1x128xbf16>,
    %83 = vector.extract_strided_slice %54 {offsets = [14, 0], sizes = [1, 128], strides = [1, 1]} : vector<16x128xbf16> to vector<1x128xbf16>
    %84 = vector.extract_strided_slice %54 {offsets = [15, 0], sizes = [1, 128], strides = [1, 1]} : vector<16x128xbf16> to vector<1x128xbf16>
    %85 = arith.maximumf %83, %84 : vector<1x128xbf16>
    %c28 = arith.constant 28 : index
    %c0_28 = arith.constant 0 : index
    %86 = vector.load %arg13[%c28, %c0_28] : memref<100x128xbf16, #tpu.memory_space<vmem>>, vector<1x128xbf16>
    tpu.vector_store %arg13[%c28, %c0_28], %85 {strides = array<i32>} : memref<100x128xbf16, #tpu.memory_space<vmem>>, vector<1x128xbf16>,
    %87 = vector.extract_strided_slice %14 {offsets = [64, 0], sizes = [16, 128], strides = [1, 1]} : vector<256x128xbf16> to vector<16x128xbf16>
    %88 = vector.extract_strided_slice %14 {offsets = [80, 0], sizes = [16, 128], strides = [1, 1]} : vector<256x128xbf16> to vector<16x128xbf16>
    %89 = arith.maximumf %87, %88 : vector<16x128xbf16>
    %90 = vector.extract_strided_slice %89 {offsets = [0, 0], sizes = [1, 128], strides = [1, 1]} : vector<16x128xbf16> to vector<1x128xbf16>
    %91 = vector.extract_strided_slice %89 {offsets = [1, 0], sizes = [1, 128], strides = [1, 1]} : vector<16x128xbf16> to vector<1x128xbf16>
    %92 = arith.maximumf %90, %91 : vector<1x128xbf16>
    %c31 = arith.constant 31 : index
    %c0_29 = arith.constant 0 : index
    %93 = vector.load %arg13[%c31, %c0_29] : memref<100x128xbf16, #tpu.memory_space<vmem>>, vector<1x128xbf16>
    tpu.vector_store %arg13[%c31, %c0_29], %92 {strides = array<i32>} : memref<100x128xbf16, #tpu.memory_space<vmem>>, vector<1x128xbf16>,
    %94 = vector.extract_strided_slice %89 {offsets = [2, 0], sizes = [1, 128], strides = [1, 1]} : vector<16x128xbf16> to vector<1x128xbf16>
    %95 = vector.extract_strided_slice %89 {offsets = [3, 0], sizes = [1, 128], strides = [1, 1]} : vector<16x128xbf16> to vector<1x128xbf16>
    %96 = arith.maximumf %94, %95 : vector<1x128xbf16>
    %c32 = arith.constant 32 : index
    %c0_30 = arith.constant 0 : index
    %97 = vector.load %arg13[%c32, %c0_30] : memref<100x128xbf16, #tpu.memory_space<vmem>>, vector<1x128xbf16>
    tpu.vector_store %arg13[%c32, %c0_30], %96 {strides = array<i32>} : memref<100x128xbf16, #tpu.memory_space<vmem>>, vector<1x128xbf16>,
    %98 = vector.extract_strided_slice %89 {offsets = [4, 0], sizes = [1, 128], strides = [1, 1]} : vector<16x128xbf16> to vector<1x128xbf16>
    %99 = vector.extract_strided_slice %89 {offsets = [5, 0], sizes = [1, 128], strides = [1, 1]} : vector<16x128xbf16> to vector<1x128xbf16>
    %100 = arith.maximumf %98, %99 : vector<1x128xbf16>
    %c33 = arith.constant 33 : index
    %c0_31 = arith.constant 0 : index
    %101 = vector.load %arg13[%c33, %c0_31] : memref<100x128xbf16, #tpu.memory_space<vmem>>, vector<1x128xbf16>
    tpu.vector_store %arg13[%c33, %c0_31], %100 {strides = array<i32>} : memref<100x128xbf16, #tpu.memory_space<vmem>>, vector<1x128xbf16>,
    %102 = vector.extract_strided_slice %89 {offsets = [6, 0], sizes = [1, 128], strides = [1, 1]} : vector<16x128xbf16> to vector<1x128xbf16>
    %103 = vector.extract_strided_slice %89 {offsets = [7, 0], sizes = [1, 128], strides = [1, 1]} : vector<16x128xbf16> to vector<1x128xbf16>
    %104 = arith.maximumf %102, %103 : vector<1x128xbf16>
    %c34 = arith.constant 34 : index
    %c0_32 = arith.constant 0 : index
    %105 = vector.load %arg13[%c34, %c0_32] : memref<100x128xbf16, #tpu.memory_space<vmem>>, vector<1x128xbf16>
    tpu.vector_store %arg13[%c34, %c0_32], %104 {strides = array<i32>} : memref<100x128xbf16, #tpu.memory_space<vmem>>, vector<1x128xbf16>,
    %106 = vector.extract_strided_slice %89 {offsets = [8, 0], sizes = [1, 128], strides = [1, 1]} : vector<16x128xbf16> to vector<1x128xbf16>
    %107 = vector.extract_strided_slice %89 {offsets = [9, 0], sizes = [1, 128], strides = [1, 1]} : vector<16x128xbf16> to vector<1x128xbf16>
    %108 = arith.maximumf %106, %107 : vector<1x128xbf16>
    %c35 = arith.constant 35 : index
    %c0_33 = arith.constant 0 : index
    %109 = vector.load %arg13[%c35, %c0_33] : memref<100x128xbf16, #tpu.memory_space<vmem>>, vector<1x128xbf16>
    tpu.vector_store %arg13[%c35, %c0_33], %108 {strides = array<i32>} : memref<100x128xbf16, #tpu.memory_space<vmem>>, vector<1x128xbf16>,
    %110 = vector.extract_strided_slice %89 {offsets = [10, 0], sizes = [1, 128], strides = [1, 1]} : vector<16x128xbf16> to vector<1x128xbf16>
    %111 = vector.extract_strided_slice %89 {offsets = [11, 0], sizes = [1, 128], strides = [1, 1]} : vector<16x128xbf16> to vector<1x128xbf16>
    %112 = arith.maximumf %110, %111 : vector<1x128xbf16>
    %c36 = arith.constant 36 : index
    %c0_34 = arith.constant 0 : index
    %113 = vector.load %arg13[%c36, %c0_34] : memref<100x128xbf16, #tpu.memory_space<vmem>>, vector<1x128xbf16>
    tpu.vector_store %arg13[%c36, %c0_34], %112 {strides = array<i32>} : memref<100x128xbf16, #tpu.memory_space<vmem>>, vector<1x128xbf16>,
    %114 = vector.extract_strided_slice %89 {offsets = [12, 0], sizes = [1, 128], strides = [1, 1]} : vector<16x128xbf16> to vector<1x128xbf16>
    %115 = vector.extract_strided_slice %89 {offsets = [13, 0], sizes = [1, 128], strides = [1, 1]} : vector<16x128xbf16> to vector<1x128xbf16>
    %116 = arith.maximumf %114, %115 : vector<1x128xbf16>
    %c37 = arith.constant 37 : index
    %c0_35 = arith.constant 0 : index
    %117 = vector.load %arg13[%c37, %c0_35] : memref<100x128xbf16, #tpu.memory_space<vmem>>, vector<1x128xbf16>
    tpu.vector_store %arg13[%c37, %c0_35], %116 {strides = array<i32>} : memref<100x128xbf16, #tpu.memory_space<vmem>>, vector<1x128xbf16>,
    %118 = vector.extract_strided_slice %89 {offsets = [14, 0], sizes = [1, 128], strides = [1, 1]} : vector<16x128xbf16> to vector<1x128xbf16>
    %119 = vector.extract_strided_slice %89 {offsets = [15, 0], sizes = [1, 128], strides = [1, 1]} : vector<16x128xbf16> to vector<1x128xbf16>
    %120 = arith.maximumf %118, %119 : vector<1x128xbf16>
    %c38 = arith.constant 38 : index
    %c0_36 = arith.constant 0 : index
    %121 = vector.load %arg13[%c38, %c0_36] : memref<100x128xbf16, #tpu.memory_space<vmem>>, vector<1x128xbf16>
    tpu.vector_store %arg13[%c38, %c0_36], %120 {strides = array<i32>} : memref<100x128xbf16, #tpu.memory_space<vmem>>, vector<1x128xbf16>,
    %122 = vector.extract_strided_slice %14 {offsets = [96, 0], sizes = [16, 128], strides = [1, 1]} : vector<256x128xbf16> to vector<16x128xbf16>
    %123 = vector.extract_strided_slice %14 {offsets = [112, 0], sizes = [16, 128], strides = [1, 1]} : vector<256x128xbf16> to vector<16x128xbf16>
    %124 = arith.maximumf %122, %123 : vector<16x128xbf16>
    %125 = vector.extract_strided_slice %124 {offsets = [0, 0], sizes = [1, 128], strides = [1, 1]} : vector<16x128xbf16> to vector<1x128xbf16>
    %126 = vector.extract_strided_slice %124 {offsets = [1, 0], sizes = [1, 128], strides = [1, 1]} : vector<16x128xbf16> to vector<1x128xbf16>
    %127 = arith.maximumf %125, %126 : vector<1x128xbf16>
    %c41 = arith.constant 41 : index
    %c0_37 = arith.constant 0 : index
    %128 = vector.load %arg13[%c41, %c0_37] : memref<100x128xbf16, #tpu.memory_space<vmem>>, vector<1x128xbf16>
    tpu.vector_store %arg13[%c41, %c0_37], %127 {strides = array<i32>} : memref<100x128xbf16, #tpu.memory_space<vmem>>, vector<1x128xbf16>,
    %129 = vector.extract_strided_slice %124 {offsets = [2, 0], sizes = [1, 128], strides = [1, 1]} : vector<16x128xbf16> to vector<1x128xbf16>
    %130 = vector.extract_strided_slice %124 {offsets = [3, 0], sizes = [1, 128], strides = [1, 1]} : vector<16x128xbf16> to vector<1x128xbf16>
    %131 = arith.maximumf %129, %130 : vector<1x128xbf16>
    %c42 = arith.constant 42 : index
    %c0_38 = arith.constant 0 : index
    %132 = vector.load %arg13[%c42, %c0_38] : memref<100x128xbf16, #tpu.memory_space<vmem>>, vector<1x128xbf16>
    tpu.vector_store %arg13[%c42, %c0_38], %131 {strides = array<i32>} : memref<100x128xbf16, #tpu.memory_space<vmem>>, vector<1x128xbf16>,
    %133 = vector.extract_strided_slice %124 {offsets = [4, 0], sizes = [1, 128], strides = [1, 1]} : vector<16x128xbf16> to vector<1x128xbf16>
    %134 = vector.extract_strided_slice %124 {offsets = [5, 0], sizes = [1, 128], strides = [1, 1]} : vector<16x128xbf16> to vector<1x128xbf16>
    %135 = arith.maximumf %133, %134 : vector<1x128xbf16>
    %c43 = arith.constant 43 : index
    %c0_39 = arith.constant 0 : index
    %136 = vector.load %arg13[%c43, %c0_39] : memref<100x128xbf16, #tpu.memory_space<vmem>>, vector<1x128xbf16>
    tpu.vector_store %arg13[%c43, %c0_39], %135 {strides = array<i32>} : memref<100x128xbf16, #tpu.memory_space<vmem>>, vector<1x128xbf16>,
    %137 = vector.extract_strided_slice %124 {offsets = [6, 0], sizes = [1, 128], strides = [1, 1]} : vector<16x128xbf16> to vector<1x128xbf16>
    %138 = vector.extract_strided_slice %124 {offsets = [7, 0], sizes = [1, 128], strides = [1, 1]} : vector<16x128xbf16> to vector<1x128xbf16>
    %139 = arith.maximumf %137, %138 : vector<1x128xbf16>
    %c44 = arith.constant 44 : index
    %c0_40 = arith.constant 0 : index
    %140 = vector.load %arg13[%c44, %c0_40] : memref<100x128xbf16, #tpu.memory_space<vmem>>, vector<1x128xbf16>
    tpu.vector_store %arg13[%c44, %c0_40], %139 {strides = array<i32>} : memref<100x128xbf16, #tpu.memory_space<vmem>>, vector<1x128xbf16>,
    %141 = vector.extract_strided_slice %124 {offsets = [8, 0], sizes = [1, 128], strides = [1, 1]} : vector<16x128xbf16> to vector<1x128xbf16>
    %142 = vector.extract_strided_slice %124 {offsets = [9, 0], sizes = [1, 128], strides = [1, 1]} : vector<16x128xbf16> to vector<1x128xbf16>
    %143 = arith.maximumf %141, %142 : vector<1x128xbf16>
    %c45 = arith.constant 45 : index
    %c0_41 = arith.constant 0 : index
    %144 = vector.load %arg13[%c45, %c0_41] : memref<100x128xbf16, #tpu.memory_space<vmem>>, vector<1x128xbf16>
    tpu.vector_store %arg13[%c45, %c0_41], %143 {strides = array<i32>} : memref<100x128xbf16, #tpu.memory_space<vmem>>, vector<1x128xbf16>,
    %145 = vector.extract_strided_slice %124 {offsets = [10, 0], sizes = [1, 128], strides = [1, 1]} : vector<16x128xbf16> to vector<1x128xbf16>
    %146 = vector.extract_strided_slice %124 {offsets = [11, 0], sizes = [1, 128], strides = [1, 1]} : vector<16x128xbf16> to vector<1x128xbf16>
    %147 = arith.maximumf %145, %146 : vector<1x128xbf16>
    %c46 = arith.constant 46 : index
    %c0_42 = arith.constant 0 : index
    %148 = vector.load %arg13[%c46, %c0_42] : memref<100x128xbf16, #tpu.memory_space<vmem>>, vector<1x128xbf16>
    tpu.vector_store %arg13[%c46, %c0_42], %147 {strides = array<i32>} : memref<100x128xbf16, #tpu.memory_space<vmem>>, vector<1x128xbf16>,
    %149 = vector.extract_strided_slice %124 {offsets = [12, 0], sizes = [1, 128], strides = [1, 1]} : vector<16x128xbf16> to vector<1x128xbf16>
    %150 = vector.extract_strided_slice %124 {offsets = [13, 0], sizes = [1, 128], strides = [1, 1]} : vector<16x128xbf16> to vector<1x128xbf16>
    %151 = arith.maximumf %149, %150 : vector<1x128xbf16>
    %c47 = arith.constant 47 : index
    %c0_43 = arith.constant 0 : index
    %152 = vector.load %arg13[%c47, %c0_43] : memref<100x128xbf16, #tpu.memory_space<vmem>>, vector<1x128xbf16>
    tpu.vector_store %arg13[%c47, %c0_43], %151 {strides = array<i32>} : memref<100x128xbf16, #tpu.memory_space<vmem>>, vector<1x128xbf16>,
    %153 = vector.extract_strided_slice %124 {offsets = [14, 0], sizes = [1, 128], strides = [1, 1]} : vector<16x128xbf16> to vector<1x128xbf16>
    %154 = vector.extract_strided_slice %124 {offsets = [15, 0], sizes = [1, 128], strides = [1, 1]} : vector<16x128xbf16> to vector<1x128xbf16>
    %155 = arith.maximumf %153, %154 : vector<1x128xbf16>
    %c48 = arith.constant 48 : index
    %c0_44 = arith.constant 0 : index
    %156 = vector.load %arg13[%c48, %c0_44] : memref<100x128xbf16, #tpu.memory_space<vmem>>, vector<1x128xbf16>
    tpu.vector_store %arg13[%c48, %c0_44], %155 {strides = array<i32>} : memref<100x128xbf16, #tpu.memory_space<vmem>>, vector<1x128xbf16>,
    %157 = vector.extract_strided_slice %14 {offsets = [128, 0], sizes = [16, 128], strides = [1, 1]} : vector<256x128xbf16> to vector<16x128xbf16>
    %158 = vector.extract_strided_slice %14 {offsets = [144, 0], sizes = [16, 128], strides = [1, 1]} : vector<256x128xbf16> to vector<16x128xbf16>
    %159 = arith.maximumf %157, %158 : vector<16x128xbf16>
    %160 = vector.extract_strided_slice %159 {offsets = [0, 0], sizes = [1, 128], strides = [1, 1]} : vector<16x128xbf16> to vector<1x128xbf16>
    %161 = vector.extract_strided_slice %159 {offsets = [1, 0], sizes = [1, 128], strides = [1, 1]} : vector<16x128xbf16> to vector<1x128xbf16>
    %162 = arith.maximumf %160, %161 : vector<1x128xbf16>
    %c51 = arith.constant 51 : index
    %c0_45 = arith.constant 0 : index
    %163 = vector.load %arg13[%c51, %c0_45] : memref<100x128xbf16, #tpu.memory_space<vmem>>, vector<1x128xbf16>
    tpu.vector_store %arg13[%c51, %c0_45], %162 {strides = array<i32>} : memref<100x128xbf16, #tpu.memory_space<vmem>>, vector<1x128xbf16>,
    %164 = vector.extract_strided_slice %159 {offsets = [2, 0], sizes = [1, 128], strides = [1, 1]} : vector<16x128xbf16> to vector<1x128xbf16>
    %165 = vector.extract_strided_slice %159 {offsets = [3, 0], sizes = [1, 128], strides = [1, 1]} : vector<16x128xbf16> to vector<1x128xbf16>
    %166 = arith.maximumf %164, %165 : vector<1x128xbf16>
    %c52 = arith.constant 52 : index
    %c0_46 = arith.constant 0 : index
    %167 = vector.load %arg13[%c52, %c0_46] : memref<100x128xbf16, #tpu.memory_space<vmem>>, vector<1x128xbf16>
    tpu.vector_store %arg13[%c52, %c0_46], %166 {strides = array<i32>} : memref<100x128xbf16, #tpu.memory_space<vmem>>, vector<1x128xbf16>,
    %168 = vector.extract_strided_slice %159 {offsets = [4, 0], sizes = [1, 128], strides = [1, 1]} : vector<16x128xbf16> to vector<1x128xbf16>
    %169 = vector.extract_strided_slice %159 {offsets = [5, 0], sizes = [1, 128], strides = [1, 1]} : vector<16x128xbf16> to vector<1x128xbf16>
    %170 = arith.maximumf %168, %169 : vector<1x128xbf16>
    %c53 = arith.constant 53 : index
    %c0_47 = arith.constant 0 : index
    %171 = vector.load %arg13[%c53, %c0_47] : memref<100x128xbf16, #tpu.memory_space<vmem>>, vector<1x128xbf16>
    tpu.vector_store %arg13[%c53, %c0_47], %170 {strides = array<i32>} : memref<100x128xbf16, #tpu.memory_space<vmem>>, vector<1x128xbf16>,
    %172 = vector.extract_strided_slice %159 {offsets = [6, 0], sizes = [1, 128], strides = [1, 1]} : vector<16x128xbf16> to vector<1x128xbf16>
    %173 = vector.extract_strided_slice %159 {offsets = [7, 0], sizes = [1, 128], strides = [1, 1]} : vector<16x128xbf16> to vector<1x128xbf16>
    %174 = arith.maximumf %172, %173 : vector<1x128xbf16>
    %c54 = arith.constant 54 : index
    %c0_48 = arith.constant 0 : index
    %175 = vector.load %arg13[%c54, %c0_48] : memref<100x128xbf16, #tpu.memory_space<vmem>>, vector<1x128xbf16>
    tpu.vector_store %arg13[%c54, %c0_48], %174 {strides = array<i32>} : memref<100x128xbf16, #tpu.memory_space<vmem>>, vector<1x128xbf16>,
    %176 = vector.extract_strided_slice %159 {offsets = [8, 0], sizes = [1, 128], strides = [1, 1]} : vector<16x128xbf16> to vector<1x128xbf16>
    %177 = vector.extract_strided_slice %159 {offsets = [9, 0], sizes = [1, 128], strides = [1, 1]} : vector<16x128xbf16> to vector<1x128xbf16>
    %178 = arith.maximumf %176, %177 : vector<1x128xbf16>
    %c55 = arith.constant 55 : index
    %c0_49 = arith.constant 0 : index
    %179 = vector.load %arg13[%c55, %c0_49] : memref<100x128xbf16, #tpu.memory_space<vmem>>, vector<1x128xbf16>
    tpu.vector_store %arg13[%c55, %c0_49], %178 {strides = array<i32>} : memref<100x128xbf16, #tpu.memory_space<vmem>>, vector<1x128xbf16>,
    %180 = vector.extract_strided_slice %159 {offsets = [10, 0], sizes = [1, 128], strides = [1, 1]} : vector<16x128xbf16> to vector<1x128xbf16>
    %181 = vector.extract_strided_slice %159 {offsets = [11, 0], sizes = [1, 128], strides = [1, 1]} : vector<16x128xbf16> to vector<1x128xbf16>
    %182 = arith.maximumf %180, %181 : vector<1x128xbf16>
    %c56 = arith.constant 56 : index
    %c0_50 = arith.constant 0 : index
    %183 = vector.load %arg13[%c56, %c0_50] : memref<100x128xbf16, #tpu.memory_space<vmem>>, vector<1x128xbf16>
    tpu.vector_store %arg13[%c56, %c0_50], %182 {strides = array<i32>} : memref<100x128xbf16, #tpu.memory_space<vmem>>, vector<1x128xbf16>,
    %184 = vector.extract_strided_slice %159 {offsets = [12, 0], sizes = [1, 128], strides = [1, 1]} : vector<16x128xbf16> to vector<1x128xbf16>
    %185 = vector.extract_strided_slice %159 {offsets = [13, 0], sizes = [1, 128], strides = [1, 1]} : vector<16x128xbf16> to vector<1x128xbf16>
    %186 = arith.maximumf %184, %185 : vector<1x128xbf16>
    %c57 = arith.constant 57 : index
    %c0_51 = arith.constant 0 : index
    %187 = vector.load %arg13[%c57, %c0_51] : memref<100x128xbf16, #tpu.memory_space<vmem>>, vector<1x128xbf16>
    tpu.vector_store %arg13[%c57, %c0_51], %186 {strides = array<i32>} : memref<100x128xbf16, #tpu.memory_space<vmem>>, vector<1x128xbf16>,
    %188 = vector.extract_strided_slice %159 {offsets = [14, 0], sizes = [1, 128], strides = [1, 1]} : vector<16x128xbf16> to vector<1x128xbf16>
    %189 = vector.extract_strided_slice %159 {offsets = [15, 0], sizes = [1, 128], strides = [1, 1]} : vector<16x128xbf16> to vector<1x128xbf16>
    %190 = arith.maximumf %188, %189 : vector<1x128xbf16>
    %c58 = arith.constant 58 : index
    %c0_52 = arith.constant 0 : index
    %191 = vector.load %arg13[%c58, %c0_52] : memref<100x128xbf16, #tpu.memory_space<vmem>>, vector<1x128xbf16>
    tpu.vector_store %arg13[%c58, %c0_52], %190 {strides = array<i32>} : memref<100x128xbf16, #tpu.memory_space<vmem>>, vector<1x128xbf16>,
    %192 = vector.extract_strided_slice %14 {offsets = [160, 0], sizes = [16, 128], strides = [1, 1]} : vector<256x128xbf16> to vector<16x128xbf16>
    %193 = vector.extract_strided_slice %14 {offsets = [176, 0], sizes = [16, 128], strides = [1, 1]} : vector<256x128xbf16> to vector<16x128xbf16>
    %194 = arith.maximumf %192, %193 : vector<16x128xbf16>
    %195 = vector.extract_strided_slice %194 {offsets = [0, 0], sizes = [1, 128], strides = [1, 1]} : vector<16x128xbf16> to vector<1x128xbf16>
    %196 = vector.extract_strided_slice %194 {offsets = [1, 0], sizes = [1, 128], strides = [1, 1]} : vector<16x128xbf16> to vector<1x128xbf16>
    %197 = arith.maximumf %195, %196 : vector<1x128xbf16>
    %c61 = arith.constant 61 : index
    %c0_53 = arith.constant 0 : index
    %198 = vector.load %arg13[%c61, %c0_53] : memref<100x128xbf16, #tpu.memory_space<vmem>>, vector<1x128xbf16>
    tpu.vector_store %arg13[%c61, %c0_53], %197 {strides = array<i32>} : memref<100x128xbf16, #tpu.memory_space<vmem>>, vector<1x128xbf16>,
    %199 = vector.extract_strided_slice %194 {offsets = [2, 0], sizes = [1, 128], strides = [1, 1]} : vector<16x128xbf16> to vector<1x128xbf16>
    %200 = vector.extract_strided_slice %194 {offsets = [3, 0], sizes = [1, 128], strides = [1, 1]} : vector<16x128xbf16> to vector<1x128xbf16>
    %201 = arith.maximumf %199, %200 : vector<1x128xbf16>
    %c62 = arith.constant 62 : index
    %c0_54 = arith.constant 0 : index
    %202 = vector.load %arg13[%c62, %c0_54] : memref<100x128xbf16, #tpu.memory_space<vmem>>, vector<1x128xbf16>
    tpu.vector_store %arg13[%c62, %c0_54], %201 {strides = array<i32>} : memref<100x128xbf16, #tpu.memory_space<vmem>>, vector<1x128xbf16>,
    %203 = vector.extract_strided_slice %194 {offsets = [4, 0], sizes = [1, 128], strides = [1, 1]} : vector<16x128xbf16> to vector<1x128xbf16>
    %204 = vector.extract_strided_slice %194 {offsets = [5, 0], sizes = [1, 128], strides = [1, 1]} : vector<16x128xbf16> to vector<1x128xbf16>
    %205 = arith.maximumf %203, %204 : vector<1x128xbf16>
    %c63 = arith.constant 63 : index
    %c0_55 = arith.constant 0 : index
    %206 = vector.load %arg13[%c63, %c0_55] : memref<100x128xbf16, #tpu.memory_space<vmem>>, vector<1x128xbf16>
    tpu.vector_store %arg13[%c63, %c0_55], %205 {strides = array<i32>} : memref<100x128xbf16, #tpu.memory_space<vmem>>, vector<1x128xbf16>,
    %207 = vector.extract_strided_slice %194 {offsets = [6, 0], sizes = [1, 128], strides = [1, 1]} : vector<16x128xbf16> to vector<1x128xbf16>
    %208 = vector.extract_strided_slice %194 {offsets = [7, 0], sizes = [1, 128], strides = [1, 1]} : vector<16x128xbf16> to vector<1x128xbf16>
    %209 = arith.maximumf %207, %208 : vector<1x128xbf16>
    %c64 = arith.constant 64 : index
    %c0_56 = arith.constant 0 : index
    %210 = vector.load %arg13[%c64, %c0_56] : memref<100x128xbf16, #tpu.memory_space<vmem>>, vector<1x128xbf16>
    tpu.vector_store %arg13[%c64, %c0_56], %209 {strides = array<i32>} : memref<100x128xbf16, #tpu.memory_space<vmem>>, vector<1x128xbf16>,
    %211 = vector.extract_strided_slice %194 {offsets = [8, 0], sizes = [1, 128], strides = [1, 1]} : vector<16x128xbf16> to vector<1x128xbf16>
    %212 = vector.extract_strided_slice %194 {offsets = [9, 0], sizes = [1, 128], strides = [1, 1]} : vector<16x128xbf16> to vector<1x128xbf16>
    %213 = arith.maximumf %211, %212 : vector<1x128xbf16>
    %c65 = arith.constant 65 : index
    %c0_57 = arith.constant 0 : index
    %214 = vector.load %arg13[%c65, %c0_57] : memref<100x128xbf16, #tpu.memory_space<vmem>>, vector<1x128xbf16>
    tpu.vector_store %arg13[%c65, %c0_57], %213 {strides = array<i32>} : memref<100x128xbf16, #tpu.memory_space<vmem>>, vector<1x128xbf16>,
    %215 = vector.extract_strided_slice %194 {offsets = [10, 0], sizes = [1, 128], strides = [1, 1]} : vector<16x128xbf16> to vector<1x128xbf16>
    %216 = vector.extract_strided_slice %194 {offsets = [11, 0], sizes = [1, 128], strides = [1, 1]} : vector<16x128xbf16> to vector<1x128xbf16>
    %217 = arith.maximumf %215, %216 : vector<1x128xbf16>
    %c66 = arith.constant 66 : index
    %c0_58 = arith.constant 0 : index
    %218 = vector.load %arg13[%c66, %c0_58] : memref<100x128xbf16, #tpu.memory_space<vmem>>, vector<1x128xbf16>
    tpu.vector_store %arg13[%c66, %c0_58], %217 {strides = array<i32>} : memref<100x128xbf16, #tpu.memory_space<vmem>>, vector<1x128xbf16>,
    %219 = vector.extract_strided_slice %194 {offsets = [12, 0], sizes = [1, 128], strides = [1, 1]} : vector<16x128xbf16> to vector<1x128xbf16>
    %220 = vector.extract_strided_slice %194 {offsets = [13, 0], sizes = [1, 128], strides = [1, 1]} : vector<16x128xbf16> to vector<1x128xbf16>
    %221 = arith.maximumf %219, %220 : vector<1x128xbf16>
    %c67 = arith.constant 67 : index
    %c0_59 = arith.constant 0 : index
    %222 = vector.load %arg13[%c67, %c0_59] : memref<100x128xbf16, #tpu.memory_space<vmem>>, vector<1x128xbf16>
    tpu.vector_store %arg13[%c67, %c0_59], %221 {strides = array<i32>} : memref<100x128xbf16, #tpu.memory_space<vmem>>, vector<1x128xbf16>,
    %223 = vector.extract_strided_slice %194 {offsets = [14, 0], sizes = [1, 128], strides = [1, 1]} : vector<16x128xbf16> to vector<1x128xbf16>
    %224 = vector.extract_strided_slice %194 {offsets = [15, 0], sizes = [1, 128], strides = [1, 1]} : vector<16x128xbf16> to vector<1x128xbf16>
    %225 = arith.maximumf %223, %224 : vector<1x128xbf16>
    %c68 = arith.constant 68 : index
    %c0_60 = arith.constant 0 : index
    %226 = vector.load %arg13[%c68, %c0_60] : memref<100x128xbf16, #tpu.memory_space<vmem>>, vector<1x128xbf16>
    tpu.vector_store %arg13[%c68, %c0_60], %225 {strides = array<i32>} : memref<100x128xbf16, #tpu.memory_space<vmem>>, vector<1x128xbf16>,
    %227 = vector.extract_strided_slice %14 {offsets = [192, 0], sizes = [16, 128], strides = [1, 1]} : vector<256x128xbf16> to vector<16x128xbf16>
    %228 = vector.extract_strided_slice %14 {offsets = [208, 0], sizes = [16, 128], strides = [1, 1]} : vector<256x128xbf16> to vector<16x128xbf16>
    %229 = arith.maximumf %227, %228 : vector<16x128xbf16>
    %230 = vector.extract_strided_slice %229 {offsets = [0, 0], sizes = [1, 128], strides = [1, 1]} : vector<16x128xbf16> to vector<1x128xbf16>
    %231 = vector.extract_strided_slice %229 {offsets = [1, 0], sizes = [1, 128], strides = [1, 1]} : vector<16x128xbf16> to vector<1x128xbf16>
    %232 = arith.maximumf %230, %231 : vector<1x128xbf16>
    %c71 = arith.constant 71 : index
    %c0_61 = arith.constant 0 : index
    %233 = vector.load %arg13[%c71, %c0_61] : memref<100x128xbf16, #tpu.memory_space<vmem>>, vector<1x128xbf16>
    tpu.vector_store %arg13[%c71, %c0_61], %232 {strides = array<i32>} : memref<100x128xbf16, #tpu.memory_space<vmem>>, vector<1x128xbf16>,
    %234 = vector.extract_strided_slice %229 {offsets = [2, 0], sizes = [1, 128], strides = [1, 1]} : vector<16x128xbf16> to vector<1x128xbf16>
    %235 = vector.extract_strided_slice %229 {offsets = [3, 0], sizes = [1, 128], strides = [1, 1]} : vector<16x128xbf16> to vector<1x128xbf16>
    %236 = arith.maximumf %234, %235 : vector<1x128xbf16>
    %c72 = arith.constant 72 : index
    %c0_62 = arith.constant 0 : index
    %237 = vector.load %arg13[%c72, %c0_62] : memref<100x128xbf16, #tpu.memory_space<vmem>>, vector<1x128xbf16>
    tpu.vector_store %arg13[%c72, %c0_62], %236 {strides = array<i32>} : memref<100x128xbf16, #tpu.memory_space<vmem>>, vector<1x128xbf16>,
    %238 = vector.extract_strided_slice %229 {offsets = [4, 0], sizes = [1, 128], strides = [1, 1]} : vector<16x128xbf16> to vector<1x128xbf16>
    %239 = vector.extract_strided_slice %229 {offsets = [5, 0], sizes = [1, 128], strides = [1, 1]} : vector<16x128xbf16> to vector<1x128xbf16>
    %240 = arith.maximumf %238, %239 : vector<1x128xbf16>
    %c73 = arith.constant 73 : index
    %c0_63 = arith.constant 0 : index
    %241 = vector.load %arg13[%c73, %c0_63] : memref<100x128xbf16, #tpu.memory_space<vmem>>, vector<1x128xbf16>
    tpu.vector_store %arg13[%c73, %c0_63], %240 {strides = array<i32>} : memref<100x128xbf16, #tpu.memory_space<vmem>>, vector<1x128xbf16>,
    %242 = vector.extract_strided_slice %229 {offsets = [6, 0], sizes = [1, 128], strides = [1, 1]} : vector<16x128xbf16> to vector<1x128xbf16>
    %243 = vector.extract_strided_slice %229 {offsets = [7, 0], sizes = [1, 128], strides = [1, 1]} : vector<16x128xbf16> to vector<1x128xbf16>
    %244 = arith.maximumf %242, %243 : vector<1x128xbf16>
    %c74 = arith.constant 74 : index
    %c0_64 = arith.constant 0 : index
    %245 = vector.load %arg13[%c74, %c0_64] : memref<100x128xbf16, #tpu.memory_space<vmem>>, vector<1x128xbf16>
    tpu.vector_store %arg13[%c74, %c0_64], %244 {strides = array<i32>} : memref<100x128xbf16, #tpu.memory_space<vmem>>, vector<1x128xbf16>,
    %246 = vector.extract_strided_slice %229 {offsets = [8, 0], sizes = [1, 128], strides = [1, 1]} : vector<16x128xbf16> to vector<1x128xbf16>
    %247 = vector.extract_strided_slice %229 {offsets = [9, 0], sizes = [1, 128], strides = [1, 1]} : vector<16x128xbf16> to vector<1x128xbf16>
    %248 = arith.maximumf %246, %247 : vector<1x128xbf16>
    %c75 = arith.constant 75 : index
    %c0_65 = arith.constant 0 : index
    %249 = vector.load %arg13[%c75, %c0_65] : memref<100x128xbf16, #tpu.memory_space<vmem>>, vector<1x128xbf16>
    tpu.vector_store %arg13[%c75, %c0_65], %248 {strides = array<i32>} : memref<100x128xbf16, #tpu.memory_space<vmem>>, vector<1x128xbf16>,
    %250 = vector.extract_strided_slice %229 {offsets = [10, 0], sizes = [1, 128], strides = [1, 1]} : vector<16x128xbf16> to vector<1x128xbf16>
    %251 = vector.extract_strided_slice %229 {offsets = [11, 0], sizes = [1, 128], strides = [1, 1]} : vector<16x128xbf16> to vector<1x128xbf16>
    %252 = arith.maximumf %250, %251 : vector<1x128xbf16>
    %c76 = arith.constant 76 : index
    %c0_66 = arith.constant 0 : index
    %253 = vector.load %arg13[%c76, %c0_66] : memref<100x128xbf16, #tpu.memory_space<vmem>>, vector<1x128xbf16>
    tpu.vector_store %arg13[%c76, %c0_66], %252 {strides = array<i32>} : memref<100x128xbf16, #tpu.memory_space<vmem>>, vector<1x128xbf16>,
    %254 = vector.extract_strided_slice %229 {offsets = [12, 0], sizes = [1, 128], strides = [1, 1]} : vector<16x128xbf16> to vector<1x128xbf16>
    %255 = vector.extract_strided_slice %229 {offsets = [13, 0], sizes = [1, 128], strides = [1, 1]} : vector<16x128xbf16> to vector<1x128xbf16>
    %256 = arith.maximumf %254, %255 : vector<1x128xbf16>
    %c77 = arith.constant 77 : index
    %c0_67 = arith.constant 0 : index
    %257 = vector.load %arg13[%c77, %c0_67] : memref<100x128xbf16, #tpu.memory_space<vmem>>, vector<1x128xbf16>
    tpu.vector_store %arg13[%c77, %c0_67], %256 {strides = array<i32>} : memref<100x128xbf16, #tpu.memory_space<vmem>>, vector<1x128xbf16>,
    %258 = vector.extract_strided_slice %229 {offsets = [14, 0], sizes = [1, 128], strides = [1, 1]} : vector<16x128xbf16> to vector<1x128xbf16>
    %259 = vector.extract_strided_slice %229 {offsets = [15, 0], sizes = [1, 128], strides = [1, 1]} : vector<16x128xbf16> to vector<1x128xbf16>
    %260 = arith.maximumf %258, %259 : vector<1x128xbf16>
    %c78 = arith.constant 78 : index
    %c0_68 = arith.constant 0 : index
    %261 = vector.load %arg13[%c78, %c0_68] : memref<100x128xbf16, #tpu.memory_space<vmem>>, vector<1x128xbf16>
    tpu.vector_store %arg13[%c78, %c0_68], %260 {strides = array<i32>} : memref<100x128xbf16, #tpu.memory_space<vmem>>, vector<1x128xbf16>,
    %262 = vector.extract_strided_slice %14 {offsets = [224, 0], sizes = [16, 128], strides = [1, 1]} : vector<256x128xbf16> to vector<16x128xbf16>
    %263 = vector.extract_strided_slice %14 {offsets = [240, 0], sizes = [16, 128], strides = [1, 1]} : vector<256x128xbf16> to vector<16x128xbf16>
    %264 = arith.maximumf %262, %263 : vector<16x128xbf16>
    %265 = vector.extract_strided_slice %264 {offsets = [0, 0], sizes = [1, 128], strides = [1, 1]} : vector<16x128xbf16> to vector<1x128xbf16>
    %266 = vector.extract_strided_slice %264 {offsets = [1, 0], sizes = [1, 128], strides = [1, 1]} : vector<16x128xbf16> to vector<1x128xbf16>
    %267 = arith.maximumf %265, %266 : vector<1x128xbf16>
    %c81 = arith.constant 81 : index
    %c0_69 = arith.constant 0 : index
    %268 = vector.load %arg13[%c81, %c0_69] : memref<100x128xbf16, #tpu.memory_space<vmem>>, vector<1x128xbf16>
    tpu.vector_store %arg13[%c81, %c0_69], %267 {strides = array<i32>} : memref<100x128xbf16, #tpu.memory_space<vmem>>, vector<1x128xbf16>,
    %269 = vector.extract_strided_slice %264 {offsets = [2, 0], sizes = [1, 128], strides = [1, 1]} : vector<16x128xbf16> to vector<1x128xbf16>
    %270 = vector.extract_strided_slice %264 {offsets = [3, 0], sizes = [1, 128], strides = [1, 1]} : vector<16x128xbf16> to vector<1x128xbf16>
    %271 = arith.maximumf %269, %270 : vector<1x128xbf16>
    %c82 = arith.constant 82 : index
    %c0_70 = arith.constant 0 : index
    %272 = vector.load %arg13[%c82, %c0_70] : memref<100x128xbf16, #tpu.memory_space<vmem>>, vector<1x128xbf16>
    tpu.vector_store %arg13[%c82, %c0_70], %271 {strides = array<i32>} : memref<100x128xbf16, #tpu.memory_space<vmem>>, vector<1x128xbf16>,
    %273 = vector.extract_strided_slice %264 {offsets = [4, 0], sizes = [1, 128], strides = [1, 1]} : vector<16x128xbf16> to vector<1x128xbf16>
    %274 = vector.extract_strided_slice %264 {offsets = [5, 0], sizes = [1, 128], strides = [1, 1]} : vector<16x128xbf16> to vector<1x128xbf16>
    %275 = arith.maximumf %273, %274 : vector<1x128xbf16>
    %c83 = arith.constant 83 : index
    %c0_71 = arith.constant 0 : index
    %276 = vector.load %arg13[%c83, %c0_71] : memref<100x128xbf16, #tpu.memory_space<vmem>>, vector<1x128xbf16>
    tpu.vector_store %arg13[%c83, %c0_71], %275 {strides = array<i32>} : memref<100x128xbf16, #tpu.memory_space<vmem>>, vector<1x128xbf16>,
    %277 = vector.extract_strided_slice %264 {offsets = [6, 0], sizes = [1, 128], strides = [1, 1]} : vector<16x128xbf16> to vector<1x128xbf16>
    %278 = vector.extract_strided_slice %264 {offsets = [7, 0], sizes = [1, 128], strides = [1, 1]} : vector<16x128xbf16> to vector<1x128xbf16>
    %279 = arith.maximumf %277, %278 : vector<1x128xbf16>
    %c84 = arith.constant 84 : index
    %c0_72 = arith.constant 0 : index
    %280 = vector.load %arg13[%c84, %c0_72] : memref<100x128xbf16, #tpu.memory_space<vmem>>, vector<1x128xbf16>
    tpu.vector_store %arg13[%c84, %c0_72], %279 {strides = array<i32>} : memref<100x128xbf16, #tpu.memory_space<vmem>>, vector<1x128xbf16>,
    %281 = vector.extract_strided_slice %264 {offsets = [8, 0], sizes = [1, 128], strides = [1, 1]} : vector<16x128xbf16> to vector<1x128xbf16>
    %282 = vector.extract_strided_slice %264 {offsets = [9, 0], sizes = [1, 128], strides = [1, 1]} : vector<16x128xbf16> to vector<1x128xbf16>
    %283 = arith.maximumf %281, %282 : vector<1x128xbf16>
    %c85 = arith.constant 85 : index
    %c0_73 = arith.constant 0 : index
    %284 = vector.load %arg13[%c85, %c0_73] : memref<100x128xbf16, #tpu.memory_space<vmem>>, vector<1x128xbf16>
    tpu.vector_store %arg13[%c85, %c0_73], %283 {strides = array<i32>} : memref<100x128xbf16, #tpu.memory_space<vmem>>, vector<1x128xbf16>,
    %285 = vector.extract_strided_slice %264 {offsets = [10, 0], sizes = [1, 128], strides = [1, 1]} : vector<16x128xbf16> to vector<1x128xbf16>
    %286 = vector.extract_strided_slice %264 {offsets = [11, 0], sizes = [1, 128], strides = [1, 1]} : vector<16x128xbf16> to vector<1x128xbf16>
    %287 = arith.maximumf %285, %286 : vector<1x128xbf16>
    %c86 = arith.constant 86 : index
    %c0_74 = arith.constant 0 : index
    %288 = vector.load %arg13[%c86, %c0_74] : memref<100x128xbf16, #tpu.memory_space<vmem>>, vector<1x128xbf16>
    tpu.vector_store %arg13[%c86, %c0_74], %287 {strides = array<i32>} : memref<100x128xbf16, #tpu.memory_space<vmem>>, vector<1x128xbf16>,
    %289 = vector.extract_strided_slice %264 {offsets = [12, 0], sizes = [1, 128], strides = [1, 1]} : vector<16x128xbf16> to vector<1x128xbf16>
    %290 = vector.extract_strided_slice %264 {offsets = [13, 0], sizes = [1, 128], strides = [1, 1]} : vector<16x128xbf16> to vector<1x128xbf16>
    %291 = arith.maximumf %289, %290 : vector<1x128xbf16>
    %c87 = arith.constant 87 : index
    %c0_75 = arith.constant 0 : index
    %292 = vector.load %arg13[%c87, %c0_75] : memref<100x128xbf16, #tpu.memory_space<vmem>>, vector<1x128xbf16>
    tpu.vector_store %arg13[%c87, %c0_75], %291 {strides = array<i32>} : memref<100x128xbf16, #tpu.memory_space<vmem>>, vector<1x128xbf16>,
    %293 = vector.extract_strided_slice %264 {offsets = [14, 0], sizes = [1, 128], strides = [1, 1]} : vector<16x128xbf16> to vector<1x128xbf16>
    %294 = vector.extract_strided_slice %264 {offsets = [15, 0], sizes = [1, 128], strides = [1, 1]} : vector<16x128xbf16> to vector<1x128xbf16>
    %295 = arith.maximumf %293, %294 : vector<1x128xbf16>
    %c88 = arith.constant 88 : index
    %c0_76 = arith.constant 0 : index
    %296 = vector.load %arg13[%c88, %c0_76] : memref<100x128xbf16, #tpu.memory_space<vmem>>, vector<1x128xbf16>
    tpu.vector_store %arg13[%c88, %c0_76], %295 {strides = array<i32>} : memref<100x128xbf16, #tpu.memory_space<vmem>>, vector<1x128xbf16>,
    %c0_77 = arith.constant 0 : index
    %c0_78 = arith.constant 0 : index
    %297 = vector.load %arg13[%c0_77, %c0_78] : memref<100x128xbf16, #tpu.memory_space<vmem>>, vector<8x128xbf16>
    %c1 = arith.constant 1 : index
    %c0_79 = arith.constant 0 : index
    %298 = vector.load %arg13[%c1, %c0_79] : memref<100x128xbf16, #tpu.memory_space<vmem>>, vector<8x128xbf16>
    %c2 = arith.constant 2 : index
    %c0_80 = arith.constant 0 : index
    %299 = vector.load %arg13[%c2, %c0_80] : memref<100x128xbf16, #tpu.memory_space<vmem>>, vector<8x128xbf16>
    %c10 = arith.constant 10 : index
    %c0_81 = arith.constant 0 : index
    %300 = vector.load %arg13[%c10, %c0_81] : memref<100x128xbf16, #tpu.memory_space<vmem>>, vector<8x128xbf16>
    %c11_82 = arith.constant 11 : index
    %c0_83 = arith.constant 0 : index
    %301 = vector.load %arg13[%c11_82, %c0_83] : memref<100x128xbf16, #tpu.memory_space<vmem>>, vector<8x128xbf16>
    %c12_84 = arith.constant 12 : index
    %c0_85 = arith.constant 0 : index
    %302 = vector.load %arg13[%c12_84, %c0_85] : memref<100x128xbf16, #tpu.memory_space<vmem>>, vector<8x128xbf16>
    %c20 = arith.constant 20 : index
    %c0_86 = arith.constant 0 : index
    %303 = vector.load %arg13[%c20, %c0_86] : memref<100x128xbf16, #tpu.memory_space<vmem>>, vector<8x128xbf16>
    %c21_87 = arith.constant 21 : index
    %c0_88 = arith.constant 0 : index
    %304 = vector.load %arg13[%c21_87, %c0_88] : memref<100x128xbf16, #tpu.memory_space<vmem>>, vector<8x128xbf16>
    %c22_89 = arith.constant 22 : index
    %c0_90 = arith.constant 0 : index
    %305 = vector.load %arg13[%c22_89, %c0_90] : memref<100x128xbf16, #tpu.memory_space<vmem>>, vector<8x128xbf16>
    %306 = tpu.concatenate %297, %298, %299, %300, %301, %302, %303, %304, %305 in 1 : vector<8x128xbf16>, vector<8x128xbf16>, vector<8x128xbf16>, vector<8x128xbf16>, vector<8x128xbf16>, vector<8x128xbf16>, vector<8x128xbf16>, vector<8x128xbf16>, vector<8x128xbf16> -> vector<8x1152xbf16>
    %c10_91 = arith.constant 10 : index
    %c0_92 = arith.constant 0 : index
    %307 = vector.load %arg13[%c10_91, %c0_92] : memref<100x128xbf16, #tpu.memory_space<vmem>>, vector<8x128xbf16>
    %c11_93 = arith.constant 11 : index
    %c0_94 = arith.constant 0 : index
    %308 = vector.load %arg13[%c11_93, %c0_94] : memref<100x128xbf16, #tpu.memory_space<vmem>>, vector<8x128xbf16>
    %c12_95 = arith.constant 12 : index
    %c0_96 = arith.constant 0 : index
    %309 = vector.load %arg13[%c12_95, %c0_96] : memref<100x128xbf16, #tpu.memory_space<vmem>>, vector<8x128xbf16>
    %c20_97 = arith.constant 20 : index
    %c0_98 = arith.constant 0 : index
    %310 = vector.load %arg13[%c20_97, %c0_98] : memref<100x128xbf16, #tpu.memory_space<vmem>>, vector<8x128xbf16>
    %c21_99 = arith.constant 21 : index
    %c0_100 = arith.constant 0 : index
    %311 = vector.load %arg13[%c21_99, %c0_100] : memref<100x128xbf16, #tpu.memory_space<vmem>>, vector<8x128xbf16>
    %c22_101 = arith.constant 22 : index
    %c0_102 = arith.constant 0 : index
    %312 = vector.load %arg13[%c22_101, %c0_102] : memref<100x128xbf16, #tpu.memory_space<vmem>>, vector<8x128xbf16>
    %c30 = arith.constant 30 : index
    %c0_103 = arith.constant 0 : index
    %313 = vector.load %arg13[%c30, %c0_103] : memref<100x128xbf16, #tpu.memory_space<vmem>>, vector<8x128xbf16>
    %c31_104 = arith.constant 31 : index
    %c0_105 = arith.constant 0 : index
    %314 = vector.load %arg13[%c31_104, %c0_105] : memref<100x128xbf16, #tpu.memory_space<vmem>>, vector<8x128xbf16>
    %c32_106 = arith.constant 32 : index
    %c0_107 = arith.constant 0 : index
    %315 = vector.load %arg13[%c32_106, %c0_107] : memref<100x128xbf16, #tpu.memory_space<vmem>>, vector<8x128xbf16>
    %316 = tpu.concatenate %307, %308, %309, %310, %311, %312, %313, %314, %315 in 1 : vector<8x128xbf16>, vector<8x128xbf16>, vector<8x128xbf16>, vector<8x128xbf16>, vector<8x128xbf16>, vector<8x128xbf16>, vector<8x128xbf16>, vector<8x128xbf16>, vector<8x128xbf16> -> vector<8x1152xbf16>
    %c20_108 = arith.constant 20 : index
    %c0_109 = arith.constant 0 : index
    %317 = vector.load %arg13[%c20_108, %c0_109] : memref<100x128xbf16, #tpu.memory_space<vmem>>, vector<8x128xbf16>
    %c21_110 = arith.constant 21 : index
    %c0_111 = arith.constant 0 : index
    %318 = vector.load %arg13[%c21_110, %c0_111] : memref<100x128xbf16, #tpu.memory_space<vmem>>, vector<8x128xbf16>
    %c22_112 = arith.constant 22 : index
    %c0_113 = arith.constant 0 : index
    %319 = vector.load %arg13[%c22_112, %c0_113] : memref<100x128xbf16, #tpu.memory_space<vmem>>, vector<8x128xbf16>
    %c30_114 = arith.constant 30 : index
    %c0_115 = arith.constant 0 : index
    %320 = vector.load %arg13[%c30_114, %c0_115] : memref<100x128xbf16, #tpu.memory_space<vmem>>, vector<8x128xbf16>
    %c31_116 = arith.constant 31 : index
    %c0_117 = arith.constant 0 : index
    %321 = vector.load %arg13[%c31_116, %c0_117] : memref<100x128xbf16, #tpu.memory_space<vmem>>, vector<8x128xbf16>
    %c32_118 = arith.constant 32 : index
    %c0_119 = arith.constant 0 : index
    %322 = vector.load %arg13[%c32_118, %c0_119] : memref<100x128xbf16, #tpu.memory_space<vmem>>, vector<8x128xbf16>
    %c40 = arith.constant 40 : index
    %c0_120 = arith.constant 0 : index
    %323 = vector.load %arg13[%c40, %c0_120] : memref<100x128xbf16, #tpu.memory_space<vmem>>, vector<8x128xbf16>
    %c41_121 = arith.constant 41 : index
    %c0_122 = arith.constant 0 : index
    %324 = vector.load %arg13[%c41_121, %c0_122] : memref<100x128xbf16, #tpu.memory_space<vmem>>, vector<8x128xbf16>
    %c42_123 = arith.constant 42 : index
    %c0_124 = arith.constant 0 : index
    %325 = vector.load %arg13[%c42_123, %c0_124] : memref<100x128xbf16, #tpu.memory_space<vmem>>, vector<8x128xbf16>
    %326 = tpu.concatenate %317, %318, %319, %320, %321, %322, %323, %324, %325 in 1 : vector<8x128xbf16>, vector<8x128xbf16>, vector<8x128xbf16>, vector<8x128xbf16>, vector<8x128xbf16>, vector<8x128xbf16>, vector<8x128xbf16>, vector<8x128xbf16>, vector<8x128xbf16> -> vector<8x1152xbf16>
    %c30_125 = arith.constant 30 : index
    %c0_126 = arith.constant 0 : index
    %327 = vector.load %arg13[%c30_125, %c0_126] : memref<100x128xbf16, #tpu.memory_space<vmem>>, vector<8x128xbf16>
    %c31_127 = arith.constant 31 : index
    %c0_128 = arith.constant 0 : index
    %328 = vector.load %arg13[%c31_127, %c0_128] : memref<100x128xbf16, #tpu.memory_space<vmem>>, vector<8x128xbf16>
    %c32_129 = arith.constant 32 : index
    %c0_130 = arith.constant 0 : index
    %329 = vector.load %arg13[%c32_129, %c0_130] : memref<100x128xbf16, #tpu.memory_space<vmem>>, vector<8x128xbf16>
    %c40_131 = arith.constant 40 : index
    %c0_132 = arith.constant 0 : index
    %330 = vector.load %arg13[%c40_131, %c0_132] : memref<100x128xbf16, #tpu.memory_space<vmem>>, vector<8x128xbf16>
    %c41_133 = arith.constant 41 : index
    %c0_134 = arith.constant 0 : index
    %331 = vector.load %arg13[%c41_133, %c0_134] : memref<100x128xbf16, #tpu.memory_space<vmem>>, vector<8x128xbf16>
    %c42_135 = arith.constant 42 : index
    %c0_136 = arith.constant 0 : index
    %332 = vector.load %arg13[%c42_135, %c0_136] : memref<100x128xbf16, #tpu.memory_space<vmem>>, vector<8x128xbf16>
    %c50 = arith.constant 50 : index
    %c0_137 = arith.constant 0 : index
    %333 = vector.load %arg13[%c50, %c0_137] : memref<100x128xbf16, #tpu.memory_space<vmem>>, vector<8x128xbf16>
    %c51_138 = arith.constant 51 : index
    %c0_139 = arith.constant 0 : index
    %334 = vector.load %arg13[%c51_138, %c0_139] : memref<100x128xbf16, #tpu.memory_space<vmem>>, vector<8x128xbf16>
    %c52_140 = arith.constant 52 : index
    %c0_141 = arith.constant 0 : index
    %335 = vector.load %arg13[%c52_140, %c0_141] : memref<100x128xbf16, #tpu.memory_space<vmem>>, vector<8x128xbf16>
    %336 = tpu.concatenate %327, %328, %329, %330, %331, %332, %333, %334, %335 in 1 : vector<8x128xbf16>, vector<8x128xbf16>, vector<8x128xbf16>, vector<8x128xbf16>, vector<8x128xbf16>, vector<8x128xbf16>, vector<8x128xbf16>, vector<8x128xbf16>, vector<8x128xbf16> -> vector<8x1152xbf16>
    %c40_142 = arith.constant 40 : index
    %c0_143 = arith.constant 0 : index
    %337 = vector.load %arg13[%c40_142, %c0_143] : memref<100x128xbf16, #tpu.memory_space<vmem>>, vector<8x128xbf16>
    %c41_144 = arith.constant 41 : index
    %c0_145 = arith.constant 0 : index
    %338 = vector.load %arg13[%c41_144, %c0_145] : memref<100x128xbf16, #tpu.memory_space<vmem>>, vector<8x128xbf16>
    %c42_146 = arith.constant 42 : index
    %c0_147 = arith.constant 0 : index
    %339 = vector.load %arg13[%c42_146, %c0_147] : memref<100x128xbf16, #tpu.memory_space<vmem>>, vector<8x128xbf16>
    %c50_148 = arith.constant 50 : index
    %c0_149 = arith.constant 0 : index
    %340 = vector.load %arg13[%c50_148, %c0_149] : memref<100x128xbf16, #tpu.memory_space<vmem>>, vector<8x128xbf16>
    %c51_150 = arith.constant 51 : index
    %c0_151 = arith.constant 0 : index
    %341 = vector.load %arg13[%c51_150, %c0_151] : memref<100x128xbf16, #tpu.memory_space<vmem>>, vector<8x128xbf16>
    %c52_152 = arith.constant 52 : index
    %c0_153 = arith.constant 0 : index
    %342 = vector.load %arg13[%c52_152, %c0_153] : memref<100x128xbf16, #tpu.memory_space<vmem>>, vector<8x128xbf16>
    %c60 = arith.constant 60 : index
    %c0_154 = arith.constant 0 : index
    %343 = vector.load %arg13[%c60, %c0_154] : memref<100x128xbf16, #tpu.memory_space<vmem>>, vector<8x128xbf16>
    %c61_155 = arith.constant 61 : index
    %c0_156 = arith.constant 0 : index
    %344 = vector.load %arg13[%c61_155, %c0_156] : memref<100x128xbf16, #tpu.memory_space<vmem>>, vector<8x128xbf16>
    %c62_157 = arith.constant 62 : index
    %c0_158 = arith.constant 0 : index
    %345 = vector.load %arg13[%c62_157, %c0_158] : memref<100x128xbf16, #tpu.memory_space<vmem>>, vector<8x128xbf16>
    %346 = tpu.concatenate %337, %338, %339, %340, %341, %342, %343, %344, %345 in 1 : vector<8x128xbf16>, vector<8x128xbf16>, vector<8x128xbf16>, vector<8x128xbf16>, vector<8x128xbf16>, vector<8x128xbf16>, vector<8x128xbf16>, vector<8x128xbf16>, vector<8x128xbf16> -> vector<8x1152xbf16>
    %c50_159 = arith.constant 50 : index
    %c0_160 = arith.constant 0 : index
    %347 = vector.load %arg13[%c50_159, %c0_160] : memref<100x128xbf16, #tpu.memory_space<vmem>>, vector<8x128xbf16>
    %c51_161 = arith.constant 51 : index
    %c0_162 = arith.constant 0 : index
    %348 = vector.load %arg13[%c51_161, %c0_162] : memref<100x128xbf16, #tpu.memory_space<vmem>>, vector<8x128xbf16>
    %c52_163 = arith.constant 52 : index
    %c0_164 = arith.constant 0 : index
    %349 = vector.load %arg13[%c52_163, %c0_164] : memref<100x128xbf16, #tpu.memory_space<vmem>>, vector<8x128xbf16>
    %c60_165 = arith.constant 60 : index
    %c0_166 = arith.constant 0 : index
    %350 = vector.load %arg13[%c60_165, %c0_166] : memref<100x128xbf16, #tpu.memory_space<vmem>>, vector<8x128xbf16>
    %c61_167 = arith.constant 61 : index
    %c0_168 = arith.constant 0 : index
    %351 = vector.load %arg13[%c61_167, %c0_168] : memref<100x128xbf16, #tpu.memory_space<vmem>>, vector<8x128xbf16>
    %c62_169 = arith.constant 62 : index
    %c0_170 = arith.constant 0 : index
    %352 = vector.load %arg13[%c62_169, %c0_170] : memref<100x128xbf16, #tpu.memory_space<vmem>>, vector<8x128xbf16>
    %c70 = arith.constant 70 : index
    %c0_171 = arith.constant 0 : index
    %353 = vector.load %arg13[%c70, %c0_171] : memref<100x128xbf16, #tpu.memory_space<vmem>>, vector<8x128xbf16>
    %c71_172 = arith.constant 71 : index
    %c0_173 = arith.constant 0 : index
    %354 = vector.load %arg13[%c71_172, %c0_173] : memref<100x128xbf16, #tpu.memory_space<vmem>>, vector<8x128xbf16>
    %c72_174 = arith.constant 72 : index
    %c0_175 = arith.constant 0 : index
    %355 = vector.load %arg13[%c72_174, %c0_175] : memref<100x128xbf16, #tpu.memory_space<vmem>>, vector<8x128xbf16>
    %356 = tpu.concatenate %347, %348, %349, %350, %351, %352, %353, %354, %355 in 1 : vector<8x128xbf16>, vector<8x128xbf16>, vector<8x128xbf16>, vector<8x128xbf16>, vector<8x128xbf16>, vector<8x128xbf16>, vector<8x128xbf16>, vector<8x128xbf16>, vector<8x128xbf16> -> vector<8x1152xbf16>
    %c60_176 = arith.constant 60 : index
    %c0_177 = arith.constant 0 : index
    %357 = vector.load %arg13[%c60_176, %c0_177] : memref<100x128xbf16, #tpu.memory_space<vmem>>, vector<8x128xbf16>
    %c61_178 = arith.constant 61 : index
    %c0_179 = arith.constant 0 : index
    %358 = vector.load %arg13[%c61_178, %c0_179] : memref<100x128xbf16, #tpu.memory_space<vmem>>, vector<8x128xbf16>
    %c62_180 = arith.constant 62 : index
    %c0_181 = arith.constant 0 : index
    %359 = vector.load %arg13[%c62_180, %c0_181] : memref<100x128xbf16, #tpu.memory_space<vmem>>, vector<8x128xbf16>
    %c70_182 = arith.constant 70 : index
    %c0_183 = arith.constant 0 : index
    %360 = vector.load %arg13[%c70_182, %c0_183] : memref<100x128xbf16, #tpu.memory_space<vmem>>, vector<8x128xbf16>
    %c71_184 = arith.constant 71 : index
    %c0_185 = arith.constant 0 : index
    %361 = vector.load %arg13[%c71_184, %c0_185] : memref<100x128xbf16, #tpu.memory_space<vmem>>, vector<8x128xbf16>
    %c72_186 = arith.constant 72 : index
    %c0_187 = arith.constant 0 : index
    %362 = vector.load %arg13[%c72_186, %c0_187] : memref<100x128xbf16, #tpu.memory_space<vmem>>, vector<8x128xbf16>
    %c80 = arith.constant 80 : index
    %c0_188 = arith.constant 0 : index
    %363 = vector.load %arg13[%c80, %c0_188] : memref<100x128xbf16, #tpu.memory_space<vmem>>, vector<8x128xbf16>
    %c81_189 = arith.constant 81 : index
    %c0_190 = arith.constant 0 : index
    %364 = vector.load %arg13[%c81_189, %c0_190] : memref<100x128xbf16, #tpu.memory_space<vmem>>, vector<8x128xbf16>
    %c82_191 = arith.constant 82 : index
    %c0_192 = arith.constant 0 : index
    %365 = vector.load %arg13[%c82_191, %c0_192] : memref<100x128xbf16, #tpu.memory_space<vmem>>, vector<8x128xbf16>
    %366 = tpu.concatenate %357, %358, %359, %360, %361, %362, %363, %364, %365 in 1 : vector<8x128xbf16>, vector<8x128xbf16>, vector<8x128xbf16>, vector<8x128xbf16>, vector<8x128xbf16>, vector<8x128xbf16>, vector<8x128xbf16>, vector<8x128xbf16>, vector<8x128xbf16> -> vector<8x1152xbf16>
    %c70_193 = arith.constant 70 : index
    %c0_194 = arith.constant 0 : index
    %367 = vector.load %arg13[%c70_193, %c0_194] : memref<100x128xbf16, #tpu.memory_space<vmem>>, vector<8x128xbf16>
    %c71_195 = arith.constant 71 : index
    %c0_196 = arith.constant 0 : index
    %368 = vector.load %arg13[%c71_195, %c0_196] : memref<100x128xbf16, #tpu.memory_space<vmem>>, vector<8x128xbf16>
    %c72_197 = arith.constant 72 : index
    %c0_198 = arith.constant 0 : index
    %369 = vector.load %arg13[%c72_197, %c0_198] : memref<100x128xbf16, #tpu.memory_space<vmem>>, vector<8x128xbf16>
    %c80_199 = arith.constant 80 : index
    %c0_200 = arith.constant 0 : index
    %370 = vector.load %arg13[%c80_199, %c0_200] : memref<100x128xbf16, #tpu.memory_space<vmem>>, vector<8x128xbf16>
    %c81_201 = arith.constant 81 : index
    %c0_202 = arith.constant 0 : index
    %371 = vector.load %arg13[%c81_201, %c0_202] : memref<100x128xbf16, #tpu.memory_space<vmem>>, vector<8x128xbf16>
    %c82_203 = arith.constant 82 : index
    %c0_204 = arith.constant 0 : index
    %372 = vector.load %arg13[%c82_203, %c0_204] : memref<100x128xbf16, #tpu.memory_space<vmem>>, vector<8x128xbf16>
    %c90 = arith.constant 90 : index
    %c0_205 = arith.constant 0 : index
    %373 = vector.load %arg13[%c90, %c0_205] : memref<100x128xbf16, #tpu.memory_space<vmem>>, vector<8x128xbf16>
    %c91 = arith.constant 91 : index
    %c0_206 = arith.constant 0 : index
    %374 = vector.load %arg13[%c91, %c0_206] : memref<100x128xbf16, #tpu.memory_space<vmem>>, vector<8x128xbf16>
    %c92 = arith.constant 92 : index
    %c0_207 = arith.constant 0 : index
    %375 = vector.load %arg13[%c92, %c0_207] : memref<100x128xbf16, #tpu.memory_space<vmem>>, vector<8x128xbf16>
    %376 = tpu.concatenate %367, %368, %369, %370, %371, %372, %373, %374, %375 in 1 : vector<8x128xbf16>, vector<8x128xbf16>, vector<8x128xbf16>, vector<8x128xbf16>, vector<8x128xbf16>, vector<8x128xbf16>, vector<8x128xbf16>, vector<8x128xbf16>, vector<8x128xbf16> -> vector<8x1152xbf16>
    %377 = tpu.concatenate %306, %316, %326, %336, %346, %356, %366, %376 in 0 : vector<8x1152xbf16>, vector<8x1152xbf16>, vector<8x1152xbf16>, vector<8x1152xbf16>, vector<8x1152xbf16>, vector<8x1152xbf16>, vector<8x1152xbf16>, vector<8x1152xbf16> -> vector<64x1152xbf16>
    %c0_208 = arith.constant 0 : index
    %c0_209 = arith.constant 0 : index
    %378 = vector.load %arg3[%c0_208, %c0_209] : memref<1152x128xbf16, #tpu.memory_space<vmem>>, vector<1152x128xbf16>
    %cst_210 = arith.constant dense<0.000000e+00> : vector<64x128xf32>
    %379 = tpu.matmul %377, %378, %cst_210 {dimension_numbers = #tpu.dot_dimension_numbers<[1], [0], [0], [1], [0, 0, 1, 1], [], []>} : vector<64x1152xbf16>, vector<1152x128xbf16>, vector<64x128xf32> -> vector<64x128xf32>
    %c1_211 = arith.constant 1 : index
    %c0_212 = arith.constant 0 : index
    %380 = vector.load %arg5[%c1_211, %c0_212] : memref<3x128xf32, #tpu.memory_space<vmem>>, vector<1x128xf32>
    %381 = vector.broadcast %380 : vector<1x128xf32> to vector<64x128xf32>
    %382 = arith.cmpf oge, %379, %381 : vector<64x128xf32>
    %c1_213 = arith.constant 1 : index
    %c0_214 = arith.constant 0 : index
    %383 = vector.load %arg6[%c1_213, %c0_214] : memref<3x128xf32, #tpu.memory_space<vmem>>, vector<1x128xf32>
    %c1_215 = arith.constant 1 : index
    %c0_216 = arith.constant 0 : index
    %384 = vector.load %arg7[%c1_215, %c0_216] : memref<3x128xf32, #tpu.memory_space<vmem>>, vector<1x128xf32>
    %385 = vector.shape_cast %383 : vector<1x128xf32> to vector<1x128xf32>
    %386 = vector.broadcast %385 : vector<1x128xf32> to vector<64x128xf32>
    %387 = vector.shape_cast %384 : vector<1x128xf32> to vector<1x128xf32>
    %388 = vector.broadcast %387 : vector<1x128xf32> to vector<64x128xf32>
    %389 = arith.select %382, %386, %388 : vector<64x128xi1>, vector<64x128xf32>
    %390 = arith.truncf %389 : vector<64x128xf32> to vector<64x128xbf16>
    %cst_217 = arith.constant 0.000000e+00 : bf16
    %391 = vector.broadcast %cst_217 : bf16 to vector<36x128xbf16>
    %c0_218 = arith.constant 0 : index
    %c0_219 = arith.constant 0 : index
    %392 = vector.load %arg14[%c0_218, %c0_219] : memref<36x128xbf16, #tpu.memory_space<vmem>>, vector<36x128xbf16>
    tpu.vector_store %arg14[%c0_218, %c0_219], %391 {strides = array<i32>} : memref<36x128xbf16, #tpu.memory_space<vmem>>, vector<36x128xbf16>,
    %393 = vector.extract_strided_slice %390 {offsets = [0, 0], sizes = [8, 128], strides = [1, 1]} : vector<64x128xbf16> to vector<8x128xbf16>
    %394 = vector.extract_strided_slice %390 {offsets = [8, 0], sizes = [8, 128], strides = [1, 1]} : vector<64x128xbf16> to vector<8x128xbf16>
    %395 = arith.maximumf %393, %394 : vector<8x128xbf16>
    %396 = vector.extract_strided_slice %395 {offsets = [0, 0], sizes = [1, 128], strides = [1, 1]} : vector<8x128xbf16> to vector<1x128xbf16>
    %397 = vector.extract_strided_slice %395 {offsets = [1, 0], sizes = [1, 128], strides = [1, 1]} : vector<8x128xbf16> to vector<1x128xbf16>
    %398 = arith.maximumf %396, %397 : vector<1x128xbf16>
    %c7 = arith.constant 7 : index
    %c0_220 = arith.constant 0 : index
    %399 = vector.load %arg14[%c7, %c0_220] : memref<36x128xbf16, #tpu.memory_space<vmem>>, vector<1x128xbf16>
    tpu.vector_store %arg14[%c7, %c0_220], %398 {strides = array<i32>} : memref<36x128xbf16, #tpu.memory_space<vmem>>, vector<1x128xbf16>,
    %400 = vector.extract_strided_slice %395 {offsets = [2, 0], sizes = [1, 128], strides = [1, 1]} : vector<8x128xbf16> to vector<1x128xbf16>
    %401 = vector.extract_strided_slice %395 {offsets = [3, 0], sizes = [1, 128], strides = [1, 1]} : vector<8x128xbf16> to vector<1x128xbf16>
    %402 = arith.maximumf %400, %401 : vector<1x128xbf16>
    %c8 = arith.constant 8 : index
    %c0_221 = arith.constant 0 : index
    %403 = vector.load %arg14[%c8, %c0_221] : memref<36x128xbf16, #tpu.memory_space<vmem>>, vector<1x128xbf16>
    tpu.vector_store %arg14[%c8, %c0_221], %402 {strides = array<i32>} : memref<36x128xbf16, #tpu.memory_space<vmem>>, vector<1x128xbf16>,
    %404 = vector.extract_strided_slice %395 {offsets = [4, 0], sizes = [1, 128], strides = [1, 1]} : vector<8x128xbf16> to vector<1x128xbf16>
    %405 = vector.extract_strided_slice %395 {offsets = [5, 0], sizes = [1, 128], strides = [1, 1]} : vector<8x128xbf16> to vector<1x128xbf16>
    %406 = arith.maximumf %404, %405 : vector<1x128xbf16>
    %c9 = arith.constant 9 : index
    %c0_222 = arith.constant 0 : index
    %407 = vector.load %arg14[%c9, %c0_222] : memref<36x128xbf16, #tpu.memory_space<vmem>>, vector<1x128xbf16>
    tpu.vector_store %arg14[%c9, %c0_222], %406 {strides = array<i32>} : memref<36x128xbf16, #tpu.memory_space<vmem>>, vector<1x128xbf16>,
    %408 = vector.extract_strided_slice %395 {offsets = [6, 0], sizes = [1, 128], strides = [1, 1]} : vector<8x128xbf16> to vector<1x128xbf16>
    %409 = vector.extract_strided_slice %395 {offsets = [7, 0], sizes = [1, 128], strides = [1, 1]} : vector<8x128xbf16> to vector<1x128xbf16>
    %410 = arith.maximumf %408, %409 : vector<1x128xbf16>
    %c10_223 = arith.constant 10 : index
    %c0_224 = arith.constant 0 : index
    %411 = vector.load %arg14[%c10_223, %c0_224] : memref<36x128xbf16, #tpu.memory_space<vmem>>, vector<1x128xbf16>
    tpu.vector_store %arg14[%c10_223, %c0_224], %410 {strides = array<i32>} : memref<36x128xbf16, #tpu.memory_space<vmem>>, vector<1x128xbf16>,
    %412 = vector.extract_strided_slice %390 {offsets = [16, 0], sizes = [8, 128], strides = [1, 1]} : vector<64x128xbf16> to vector<8x128xbf16>
    %413 = vector.extract_strided_slice %390 {offsets = [24, 0], sizes = [8, 128], strides = [1, 1]} : vector<64x128xbf16> to vector<8x128xbf16>
    %414 = arith.maximumf %412, %413 : vector<8x128xbf16>
    %415 = vector.extract_strided_slice %414 {offsets = [0, 0], sizes = [1, 128], strides = [1, 1]} : vector<8x128xbf16> to vector<1x128xbf16>
    %416 = vector.extract_strided_slice %414 {offsets = [1, 0], sizes = [1, 128], strides = [1, 1]} : vector<8x128xbf16> to vector<1x128xbf16>
    %417 = arith.maximumf %415, %416 : vector<1x128xbf16>
    %c13_225 = arith.constant 13 : index
    %c0_226 = arith.constant 0 : index
    %418 = vector.load %arg14[%c13_225, %c0_226] : memref<36x128xbf16, #tpu.memory_space<vmem>>, vector<1x128xbf16>
    tpu.vector_store %arg14[%c13_225, %c0_226], %417 {strides = array<i32>} : memref<36x128xbf16, #tpu.memory_space<vmem>>, vector<1x128xbf16>,
    %419 = vector.extract_strided_slice %414 {offsets = [2, 0], sizes = [1, 128], strides = [1, 1]} : vector<8x128xbf16> to vector<1x128xbf16>
    %420 = vector.extract_strided_slice %414 {offsets = [3, 0], sizes = [1, 128], strides = [1, 1]} : vector<8x128xbf16> to vector<1x128xbf16>
    %421 = arith.maximumf %419, %420 : vector<1x128xbf16>
    %c14_227 = arith.constant 14 : index
    %c0_228 = arith.constant 0 : index
    %422 = vector.load %arg14[%c14_227, %c0_228] : memref<36x128xbf16, #tpu.memory_space<vmem>>, vector<1x128xbf16>
    tpu.vector_store %arg14[%c14_227, %c0_228], %421 {strides = array<i32>} : memref<36x128xbf16, #tpu.memory_space<vmem>>, vector<1x128xbf16>,
    %423 = vector.extract_strided_slice %414 {offsets = [4, 0], sizes = [1, 128], strides = [1, 1]} : vector<8x128xbf16> to vector<1x128xbf16>
    %424 = vector.extract_strided_slice %414 {offsets = [5, 0], sizes = [1, 128], strides = [1, 1]} : vector<8x128xbf16> to vector<1x128xbf16>
    %425 = arith.maximumf %423, %424 : vector<1x128xbf16>
    %c15_229 = arith.constant 15 : index
    %c0_230 = arith.constant 0 : index
    %426 = vector.load %arg14[%c15_229, %c0_230] : memref<36x128xbf16, #tpu.memory_space<vmem>>, vector<1x128xbf16>
    tpu.vector_store %arg14[%c15_229, %c0_230], %425 {strides = array<i32>} : memref<36x128xbf16, #tpu.memory_space<vmem>>, vector<1x128xbf16>,
    %427 = vector.extract_strided_slice %414 {offsets = [6, 0], sizes = [1, 128], strides = [1, 1]} : vector<8x128xbf16> to vector<1x128xbf16>
    %428 = vector.extract_strided_slice %414 {offsets = [7, 0], sizes = [1, 128], strides = [1, 1]} : vector<8x128xbf16> to vector<1x128xbf16>
    %429 = arith.maximumf %427, %428 : vector<1x128xbf16>
    %c16_231 = arith.constant 16 : index
    %c0_232 = arith.constant 0 : index
    %430 = vector.load %arg14[%c16_231, %c0_232] : memref<36x128xbf16, #tpu.memory_space<vmem>>, vector<1x128xbf16>
    tpu.vector_store %arg14[%c16_231, %c0_232], %429 {strides = array<i32>} : memref<36x128xbf16, #tpu.memory_space<vmem>>, vector<1x128xbf16>,
    %431 = vector.extract_strided_slice %390 {offsets = [32, 0], sizes = [8, 128], strides = [1, 1]} : vector<64x128xbf16> to vector<8x128xbf16>
    %432 = vector.extract_strided_slice %390 {offsets = [40, 0], sizes = [8, 128], strides = [1, 1]} : vector<64x128xbf16> to vector<8x128xbf16>
    %433 = arith.maximumf %431, %432 : vector<8x128xbf16>
    %434 = vector.extract_strided_slice %433 {offsets = [0, 0], sizes = [1, 128], strides = [1, 1]} : vector<8x128xbf16> to vector<1x128xbf16>
    %435 = vector.extract_strided_slice %433 {offsets = [1, 0], sizes = [1, 128], strides = [1, 1]} : vector<8x128xbf16> to vector<1x128xbf16>
    %436 = arith.maximumf %434, %435 : vector<1x128xbf16>
    %c19 = arith.constant 19 : index
    %c0_233 = arith.constant 0 : index
    %437 = vector.load %arg14[%c19, %c0_233] : memref<36x128xbf16, #tpu.memory_space<vmem>>, vector<1x128xbf16>
    tpu.vector_store %arg14[%c19, %c0_233], %436 {strides = array<i32>} : memref<36x128xbf16, #tpu.memory_space<vmem>>, vector<1x128xbf16>,
    %438 = vector.extract_strided_slice %433 {offsets = [2, 0], sizes = [1, 128], strides = [1, 1]} : vector<8x128xbf16> to vector<1x128xbf16>
    %439 = vector.extract_strided_slice %433 {offsets = [3, 0], sizes = [1, 128], strides = [1, 1]} : vector<8x128xbf16> to vector<1x128xbf16>
    %440 = arith.maximumf %438, %439 : vector<1x128xbf16>
    %c20_234 = arith.constant 20 : index
    %c0_235 = arith.constant 0 : index
    %441 = vector.load %arg14[%c20_234, %c0_235] : memref<36x128xbf16, #tpu.memory_space<vmem>>, vector<1x128xbf16>
    tpu.vector_store %arg14[%c20_234, %c0_235], %440 {strides = array<i32>} : memref<36x128xbf16, #tpu.memory_space<vmem>>, vector<1x128xbf16>,
    %442 = vector.extract_strided_slice %433 {offsets = [4, 0], sizes = [1, 128], strides = [1, 1]} : vector<8x128xbf16> to vector<1x128xbf16>
    %443 = vector.extract_strided_slice %433 {offsets = [5, 0], sizes = [1, 128], strides = [1, 1]} : vector<8x128xbf16> to vector<1x128xbf16>
    %444 = arith.maximumf %442, %443 : vector<1x128xbf16>
    %c21_236 = arith.constant 21 : index
    %c0_237 = arith.constant 0 : index
    %445 = vector.load %arg14[%c21_236, %c0_237] : memref<36x128xbf16, #tpu.memory_space<vmem>>, vector<1x128xbf16>
    tpu.vector_store %arg14[%c21_236, %c0_237], %444 {strides = array<i32>} : memref<36x128xbf16, #tpu.memory_space<vmem>>, vector<1x128xbf16>,
    %446 = vector.extract_strided_slice %433 {offsets = [6, 0], sizes = [1, 128], strides = [1, 1]} : vector<8x128xbf16> to vector<1x128xbf16>
    %447 = vector.extract_strided_slice %433 {offsets = [7, 0], sizes = [1, 128], strides = [1, 1]} : vector<8x128xbf16> to vector<1x128xbf16>
    %448 = arith.maximumf %446, %447 : vector<1x128xbf16>
    %c22_238 = arith.constant 22 : index
    %c0_239 = arith.constant 0 : index
    %449 = vector.load %arg14[%c22_238, %c0_239] : memref<36x128xbf16, #tpu.memory_space<vmem>>, vector<1x128xbf16>
    tpu.vector_store %arg14[%c22_238, %c0_239], %448 {strides = array<i32>} : memref<36x128xbf16, #tpu.memory_space<vmem>>, vector<1x128xbf16>,
    %450 = vector.extract_strided_slice %390 {offsets = [48, 0], sizes = [8, 128], strides = [1, 1]} : vector<64x128xbf16> to vector<8x128xbf16>
    %451 = vector.extract_strided_slice %390 {offsets = [56, 0], sizes = [8, 128], strides = [1, 1]} : vector<64x128xbf16> to vector<8x128xbf16>
    %452 = arith.maximumf %450, %451 : vector<8x128xbf16>
    %453 = vector.extract_strided_slice %452 {offsets = [0, 0], sizes = [1, 128], strides = [1, 1]} : vector<8x128xbf16> to vector<1x128xbf16>
    %454 = vector.extract_strided_slice %452 {offsets = [1, 0], sizes = [1, 128], strides = [1, 1]} : vector<8x128xbf16> to vector<1x128xbf16>
    %455 = arith.maximumf %453, %454 : vector<1x128xbf16>
    %c25_240 = arith.constant 25 : index
    %c0_241 = arith.constant 0 : index
    %456 = vector.load %arg14[%c25_240, %c0_241] : memref<36x128xbf16, #tpu.memory_space<vmem>>, vector<1x128xbf16>
    tpu.vector_store %arg14[%c25_240, %c0_241], %455 {strides = array<i32>} : memref<36x128xbf16, #tpu.memory_space<vmem>>, vector<1x128xbf16>,
    %457 = vector.extract_strided_slice %452 {offsets = [2, 0], sizes = [1, 128], strides = [1, 1]} : vector<8x128xbf16> to vector<1x128xbf16>
    %458 = vector.extract_strided_slice %452 {offsets = [3, 0], sizes = [1, 128], strides = [1, 1]} : vector<8x128xbf16> to vector<1x128xbf16>
    %459 = arith.maximumf %457, %458 : vector<1x128xbf16>
    %c26_242 = arith.constant 26 : index
    %c0_243 = arith.constant 0 : index
    %460 = vector.load %arg14[%c26_242, %c0_243] : memref<36x128xbf16, #tpu.memory_space<vmem>>, vector<1x128xbf16>
    tpu.vector_store %arg14[%c26_242, %c0_243], %459 {strides = array<i32>} : memref<36x128xbf16, #tpu.memory_space<vmem>>, vector<1x128xbf16>,
    %461 = vector.extract_strided_slice %452 {offsets = [4, 0], sizes = [1, 128], strides = [1, 1]} : vector<8x128xbf16> to vector<1x128xbf16>
    %462 = vector.extract_strided_slice %452 {offsets = [5, 0], sizes = [1, 128], strides = [1, 1]} : vector<8x128xbf16> to vector<1x128xbf16>
    %463 = arith.maximumf %461, %462 : vector<1x128xbf16>
    %c27_244 = arith.constant 27 : index
    %c0_245 = arith.constant 0 : index
    %464 = vector.load %arg14[%c27_244, %c0_245] : memref<36x128xbf16, #tpu.memory_space<vmem>>, vector<1x128xbf16>
    tpu.vector_store %arg14[%c27_244, %c0_245], %463 {strides = array<i32>} : memref<36x128xbf16, #tpu.memory_space<vmem>>, vector<1x128xbf16>,
    %465 = vector.extract_strided_slice %452 {offsets = [6, 0], sizes = [1, 128], strides = [1, 1]} : vector<8x128xbf16> to vector<1x128xbf16>
    %466 = vector.extract_strided_slice %452 {offsets = [7, 0], sizes = [1, 128], strides = [1, 1]} : vector<8x128xbf16> to vector<1x128xbf16>
    %467 = arith.maximumf %465, %466 : vector<1x128xbf16>
    %c28_246 = arith.constant 28 : index
    %c0_247 = arith.constant 0 : index
    %468 = vector.load %arg14[%c28_246, %c0_247] : memref<36x128xbf16, #tpu.memory_space<vmem>>, vector<1x128xbf16>
    tpu.vector_store %arg14[%c28_246, %c0_247], %467 {strides = array<i32>} : memref<36x128xbf16, #tpu.memory_space<vmem>>, vector<1x128xbf16>,
    %c0_248 = arith.constant 0 : index
    %c0_249 = arith.constant 0 : index
    %469 = vector.load %arg14[%c0_248, %c0_249] : memref<36x128xbf16, #tpu.memory_space<vmem>>, vector<4x128xbf16>
    %c1_250 = arith.constant 1 : index
    %c0_251 = arith.constant 0 : index
    %470 = vector.load %arg14[%c1_250, %c0_251] : memref<36x128xbf16, #tpu.memory_space<vmem>>, vector<4x128xbf16>
    %c2_252 = arith.constant 2 : index
    %c0_253 = arith.constant 0 : index
    %471 = vector.load %arg14[%c2_252, %c0_253] : memref<36x128xbf16, #tpu.memory_space<vmem>>, vector<4x128xbf16>
    %c6 = arith.constant 6 : index
    %c0_254 = arith.constant 0 : index
    %472 = vector.load %arg14[%c6, %c0_254] : memref<36x128xbf16, #tpu.memory_space<vmem>>, vector<4x128xbf16>
    %c7_255 = arith.constant 7 : index
    %c0_256 = arith.constant 0 : index
    %473 = vector.load %arg14[%c7_255, %c0_256] : memref<36x128xbf16, #tpu.memory_space<vmem>>, vector<4x128xbf16>
    %c8_257 = arith.constant 8 : index
    %c0_258 = arith.constant 0 : index
    %474 = vector.load %arg14[%c8_257, %c0_258] : memref<36x128xbf16, #tpu.memory_space<vmem>>, vector<4x128xbf16>
    %c12_259 = arith.constant 12 : index
    %c0_260 = arith.constant 0 : index
    %475 = vector.load %arg14[%c12_259, %c0_260] : memref<36x128xbf16, #tpu.memory_space<vmem>>, vector<4x128xbf16>
    %c13_261 = arith.constant 13 : index
    %c0_262 = arith.constant 0 : index
    %476 = vector.load %arg14[%c13_261, %c0_262] : memref<36x128xbf16, #tpu.memory_space<vmem>>, vector<4x128xbf16>
    %c14_263 = arith.constant 14 : index
    %c0_264 = arith.constant 0 : index
    %477 = vector.load %arg14[%c14_263, %c0_264] : memref<36x128xbf16, #tpu.memory_space<vmem>>, vector<4x128xbf16>
    %478 = tpu.concatenate %469, %470, %471, %472, %473, %474, %475, %476, %477 in 1 : vector<4x128xbf16>, vector<4x128xbf16>, vector<4x128xbf16>, vector<4x128xbf16>, vector<4x128xbf16>, vector<4x128xbf16>, vector<4x128xbf16>, vector<4x128xbf16>, vector<4x128xbf16> -> vector<4x1152xbf16>
    %c6_265 = arith.constant 6 : index
    %c0_266 = arith.constant 0 : index
    %479 = vector.load %arg14[%c6_265, %c0_266] : memref<36x128xbf16, #tpu.memory_space<vmem>>, vector<4x128xbf16>
    %c7_267 = arith.constant 7 : index
    %c0_268 = arith.constant 0 : index
    %480 = vector.load %arg14[%c7_267, %c0_268] : memref<36x128xbf16, #tpu.memory_space<vmem>>, vector<4x128xbf16>
    %c8_269 = arith.constant 8 : index
    %c0_270 = arith.constant 0 : index
    %481 = vector.load %arg14[%c8_269, %c0_270] : memref<36x128xbf16, #tpu.memory_space<vmem>>, vector<4x128xbf16>
    %c12_271 = arith.constant 12 : index
    %c0_272 = arith.constant 0 : index
    %482 = vector.load %arg14[%c12_271, %c0_272] : memref<36x128xbf16, #tpu.memory_space<vmem>>, vector<4x128xbf16>
    %c13_273 = arith.constant 13 : index
    %c0_274 = arith.constant 0 : index
    %483 = vector.load %arg14[%c13_273, %c0_274] : memref<36x128xbf16, #tpu.memory_space<vmem>>, vector<4x128xbf16>
    %c14_275 = arith.constant 14 : index
    %c0_276 = arith.constant 0 : index
    %484 = vector.load %arg14[%c14_275, %c0_276] : memref<36x128xbf16, #tpu.memory_space<vmem>>, vector<4x128xbf16>
    %c18_277 = arith.constant 18 : index
    %c0_278 = arith.constant 0 : index
    %485 = vector.load %arg14[%c18_277, %c0_278] : memref<36x128xbf16, #tpu.memory_space<vmem>>, vector<4x128xbf16>
    %c19_279 = arith.constant 19 : index
    %c0_280 = arith.constant 0 : index
    %486 = vector.load %arg14[%c19_279, %c0_280] : memref<36x128xbf16, #tpu.memory_space<vmem>>, vector<4x128xbf16>
    %c20_281 = arith.constant 20 : index
    %c0_282 = arith.constant 0 : index
    %487 = vector.load %arg14[%c20_281, %c0_282] : memref<36x128xbf16, #tpu.memory_space<vmem>>, vector<4x128xbf16>
    %488 = tpu.concatenate %479, %480, %481, %482, %483, %484, %485, %486, %487 in 1 : vector<4x128xbf16>, vector<4x128xbf16>, vector<4x128xbf16>, vector<4x128xbf16>, vector<4x128xbf16>, vector<4x128xbf16>, vector<4x128xbf16>, vector<4x128xbf16>, vector<4x128xbf16> -> vector<4x1152xbf16>
    %c12_283 = arith.constant 12 : index
    %c0_284 = arith.constant 0 : index
    %489 = vector.load %arg14[%c12_283, %c0_284] : memref<36x128xbf16, #tpu.memory_space<vmem>>, vector<4x128xbf16>
    %c13_285 = arith.constant 13 : index
    %c0_286 = arith.constant 0 : index
    %490 = vector.load %arg14[%c13_285, %c0_286] : memref<36x128xbf16, #tpu.memory_space<vmem>>, vector<4x128xbf16>
    %c14_287 = arith.constant 14 : index
    %c0_288 = arith.constant 0 : index
    %491 = vector.load %arg14[%c14_287, %c0_288] : memref<36x128xbf16, #tpu.memory_space<vmem>>, vector<4x128xbf16>
    %c18_289 = arith.constant 18 : index
    %c0_290 = arith.constant 0 : index
    %492 = vector.load %arg14[%c18_289, %c0_290] : memref<36x128xbf16, #tpu.memory_space<vmem>>, vector<4x128xbf16>
    %c19_291 = arith.constant 19 : index
    %c0_292 = arith.constant 0 : index
    %493 = vector.load %arg14[%c19_291, %c0_292] : memref<36x128xbf16, #tpu.memory_space<vmem>>, vector<4x128xbf16>
    %c20_293 = arith.constant 20 : index
    %c0_294 = arith.constant 0 : index
    %494 = vector.load %arg14[%c20_293, %c0_294] : memref<36x128xbf16, #tpu.memory_space<vmem>>, vector<4x128xbf16>
    %c24_295 = arith.constant 24 : index
    %c0_296 = arith.constant 0 : index
    %495 = vector.load %arg14[%c24_295, %c0_296] : memref<36x128xbf16, #tpu.memory_space<vmem>>, vector<4x128xbf16>
    %c25_297 = arith.constant 25 : index
    %c0_298 = arith.constant 0 : index
    %496 = vector.load %arg14[%c25_297, %c0_298] : memref<36x128xbf16, #tpu.memory_space<vmem>>, vector<4x128xbf16>
    %c26_299 = arith.constant 26 : index
    %c0_300 = arith.constant 0 : index
    %497 = vector.load %arg14[%c26_299, %c0_300] : memref<36x128xbf16, #tpu.memory_space<vmem>>, vector<4x128xbf16>
    %498 = tpu.concatenate %489, %490, %491, %492, %493, %494, %495, %496, %497 in 1 : vector<4x128xbf16>, vector<4x128xbf16>, vector<4x128xbf16>, vector<4x128xbf16>, vector<4x128xbf16>, vector<4x128xbf16>, vector<4x128xbf16>, vector<4x128xbf16>, vector<4x128xbf16> -> vector<4x1152xbf16>
    %c18_301 = arith.constant 18 : index
    %c0_302 = arith.constant 0 : index
    %499 = vector.load %arg14[%c18_301, %c0_302] : memref<36x128xbf16, #tpu.memory_space<vmem>>, vector<4x128xbf16>
    %c19_303 = arith.constant 19 : index
    %c0_304 = arith.constant 0 : index
    %500 = vector.load %arg14[%c19_303, %c0_304] : memref<36x128xbf16, #tpu.memory_space<vmem>>, vector<4x128xbf16>
    %c20_305 = arith.constant 20 : index
    %c0_306 = arith.constant 0 : index
    %501 = vector.load %arg14[%c20_305, %c0_306] : memref<36x128xbf16, #tpu.memory_space<vmem>>, vector<4x128xbf16>
    %c24_307 = arith.constant 24 : index
    %c0_308 = arith.constant 0 : index
    %502 = vector.load %arg14[%c24_307, %c0_308] : memref<36x128xbf16, #tpu.memory_space<vmem>>, vector<4x128xbf16>
    %c25_309 = arith.constant 25 : index
    %c0_310 = arith.constant 0 : index
    %503 = vector.load %arg14[%c25_309, %c0_310] : memref<36x128xbf16, #tpu.memory_space<vmem>>, vector<4x128xbf16>
    %c26_311 = arith.constant 26 : index
    %c0_312 = arith.constant 0 : index
    %504 = vector.load %arg14[%c26_311, %c0_312] : memref<36x128xbf16, #tpu.memory_space<vmem>>, vector<4x128xbf16>
    %c30_313 = arith.constant 30 : index
    %c0_314 = arith.constant 0 : index
    %505 = vector.load %arg14[%c30_313, %c0_314] : memref<36x128xbf16, #tpu.memory_space<vmem>>, vector<4x128xbf16>
    %c31_315 = arith.constant 31 : index
    %c0_316 = arith.constant 0 : index
    %506 = vector.load %arg14[%c31_315, %c0_316] : memref<36x128xbf16, #tpu.memory_space<vmem>>, vector<4x128xbf16>
    %c32_317 = arith.constant 32 : index
    %c0_318 = arith.constant 0 : index
    %507 = vector.load %arg14[%c32_317, %c0_318] : memref<36x128xbf16, #tpu.memory_space<vmem>>, vector<4x128xbf16>
    %508 = tpu.concatenate %499, %500, %501, %502, %503, %504, %505, %506, %507 in 1 : vector<4x128xbf16>, vector<4x128xbf16>, vector<4x128xbf16>, vector<4x128xbf16>, vector<4x128xbf16>, vector<4x128xbf16>, vector<4x128xbf16>, vector<4x128xbf16>, vector<4x128xbf16> -> vector<4x1152xbf16>
    %509 = tpu.concatenate %478, %488, %498, %508 in 0 : vector<4x1152xbf16>, vector<4x1152xbf16>, vector<4x1152xbf16>, vector<4x1152xbf16> -> vector<16x1152xbf16>
    %c0_319 = arith.constant 0 : index
    %c0_320 = arith.constant 0 : index
    %510 = vector.load %arg4[%c0_319, %c0_320] : memref<1152x128xbf16, #tpu.memory_space<vmem>>, vector<1152x128xbf16>
    %cst_321 = arith.constant dense<0.000000e+00> : vector<16x128xf32>
    %511 = tpu.matmul %509, %510, %cst_321 {dimension_numbers = #tpu.dot_dimension_numbers<[1], [0], [0], [1], [0, 0, 1, 1], [], []>} : vector<16x1152xbf16>, vector<1152x128xbf16>, vector<16x128xf32> -> vector<16x128xf32>
    %c2_322 = arith.constant 2 : index
    %c0_323 = arith.constant 0 : index
    %512 = vector.load %arg5[%c2_322, %c0_323] : memref<3x128xf32, #tpu.memory_space<vmem>>, vector<1x128xf32>
    %513 = vector.broadcast %512 : vector<1x128xf32> to vector<16x128xf32>
    %514 = arith.cmpf oge, %511, %513 : vector<16x128xf32>
    %c2_324 = arith.constant 2 : index
    %c0_325 = arith.constant 0 : index
    %515 = vector.load %arg6[%c2_324, %c0_325] : memref<3x128xf32, #tpu.memory_space<vmem>>, vector<1x128xf32>
    %c2_326 = arith.constant 2 : index
    %c0_327 = arith.constant 0 : index
    %516 = vector.load %arg7[%c2_326, %c0_327] : memref<3x128xf32, #tpu.memory_space<vmem>>, vector<1x128xf32>
    %517 = vector.shape_cast %515 : vector<1x128xf32> to vector<1x128xf32>
    %518 = vector.broadcast %517 : vector<1x128xf32> to vector<16x128xf32>
    %519 = vector.shape_cast %516 : vector<1x128xf32> to vector<1x128xf32>
    %520 = vector.broadcast %519 : vector<1x128xf32> to vector<16x128xf32>
    %521 = arith.select %514, %518, %520 : vector<16x128xi1>, vector<16x128xf32>
    %522 = arith.truncf %521 : vector<16x128xf32> to vector<16x128xbf16>
    %523 = vector.extract_strided_slice %522 {offsets = [0, 0], sizes = [1, 128], strides = [1, 1]} : vector<16x128xbf16> to vector<1x128xbf16>
    %524 = vector.extract_strided_slice %522 {offsets = [1, 0], sizes = [1, 128], strides = [1, 1]} : vector<16x128xbf16> to vector<1x128xbf16>
    %525 = vector.extract_strided_slice %522 {offsets = [2, 0], sizes = [1, 128], strides = [1, 1]} : vector<16x128xbf16> to vector<1x128xbf16>
    %526 = vector.extract_strided_slice %522 {offsets = [3, 0], sizes = [1, 128], strides = [1, 1]} : vector<16x128xbf16> to vector<1x128xbf16>
    %527 = vector.extract_strided_slice %522 {offsets = [4, 0], sizes = [1, 128], strides = [1, 1]} : vector<16x128xbf16> to vector<1x128xbf16>
    %528 = vector.extract_strided_slice %522 {offsets = [5, 0], sizes = [1, 128], strides = [1, 1]} : vector<16x128xbf16> to vector<1x128xbf16>
    %529 = vector.extract_strided_slice %522 {offsets = [6, 0], sizes = [1, 128], strides = [1, 1]} : vector<16x128xbf16> to vector<1x128xbf16>
    %530 = vector.extract_strided_slice %522 {offsets = [7, 0], sizes = [1, 128], strides = [1, 1]} : vector<16x128xbf16> to vector<1x128xbf16>
    %531 = vector.extract_strided_slice %522 {offsets = [8, 0], sizes = [1, 128], strides = [1, 1]} : vector<16x128xbf16> to vector<1x128xbf16>
    %532 = vector.extract_strided_slice %522 {offsets = [9, 0], sizes = [1, 128], strides = [1, 1]} : vector<16x128xbf16> to vector<1x128xbf16>
    %533 = vector.extract_strided_slice %522 {offsets = [10, 0], sizes = [1, 128], strides = [1, 1]} : vector<16x128xbf16> to vector<1x128xbf16>
    %534 = vector.extract_strided_slice %522 {offsets = [11, 0], sizes = [1, 128], strides = [1, 1]} : vector<16x128xbf16> to vector<1x128xbf16>
    %535 = vector.extract_strided_slice %522 {offsets = [12, 0], sizes = [1, 128], strides = [1, 1]} : vector<16x128xbf16> to vector<1x128xbf16>
    %536 = vector.extract_strided_slice %522 {offsets = [13, 0], sizes = [1, 128], strides = [1, 1]} : vector<16x128xbf16> to vector<1x128xbf16>
    %537 = vector.extract_strided_slice %522 {offsets = [14, 0], sizes = [1, 128], strides = [1, 1]} : vector<16x128xbf16> to vector<1x128xbf16>
    %538 = vector.extract_strided_slice %522 {offsets = [15, 0], sizes = [1, 128], strides = [1, 1]} : vector<16x128xbf16> to vector<1x128xbf16>
    %539 = tpu.concatenate %523, %524, %525, %526, %527, %528, %529, %530, %531, %532, %533, %534, %535, %536, %537, %538 in 1 : vector<1x128xbf16>, vector<1x128xbf16>, vector<1x128xbf16>, vector<1x128xbf16>, vector<1x128xbf16>, vector<1x128xbf16>, vector<1x128xbf16>, vector<1x128xbf16>, vector<1x128xbf16>, vector<1x128xbf16>, vector<1x128xbf16>, vector<1x128xbf16>, vector<1x128xbf16>, vector<1x128xbf16>, vector<1x128xbf16>, vector<1x128xbf16> -> vector<1x2048xbf16>
    %c0_328 = arith.constant 0 : index
    %c0_329 = arith.constant 0 : index
    %540 = vector.load %arg8[%c0_328, %c0_329] : memref<2048x256xbf16, #tpu.memory_space<vmem>>, vector<2048x256xbf16>
    %cst_330 = arith.constant dense<0.000000e+00> : vector<1x256xf32>
    %541 = tpu.matmul %539, %540, %cst_330 {dimension_numbers = #tpu.dot_dimension_numbers<[1], [0], [0], [1], [0, 0, 1, 1], [], []>} : vector<1x2048xbf16>, vector<2048x256xbf16>, vector<1x256xf32> -> vector<1x256xf32>
    %c0_331 = arith.constant 0 : index
    %c0_332 = arith.constant 0 : index
    %542 = vector.load %arg9[%c0_331, %c0_332] : memref<1x256xf32, #tpu.memory_space<vmem>>, vector<1x256xf32>
    %543 = arith.cmpf oge, %541, %542 : vector<1x256xf32>
    %544 = arith.extui %543 : vector<1x256xi1> to vector<1x256xi32>
    %545 = arith.sitofp %544 : vector<1x256xi32> to vector<1x256xf32>
    %546 = arith.truncf %545 : vector<1x256xf32> to vector<1x256xbf16>
    %c0_333 = arith.constant 0 : index
    %c0_334 = arith.constant 0 : index
    %547 = vector.load %arg10[%c0_333, %c0_334] : memref<256x128xbf16, #tpu.memory_space<vmem>>, vector<256x128xbf16>
    %cst_335 = arith.constant dense<0.000000e+00> : vector<1x128xf32>
    %548 = tpu.matmul %546, %547, %cst_335 {dimension_numbers = #tpu.dot_dimension_numbers<[1], [0], [0], [1], [0, 0, 1, 1], [], []>} : vector<1x256xbf16>, vector<256x128xbf16>, vector<1x128xf32> -> vector<1x128xf32>
    %c0_336 = arith.constant 0 : index
    %c0_337 = arith.constant 0 : index
    %549 = vector.load %arg11[%c0_336, %c0_337] : memref<1x128xf32, #tpu.memory_space<vmem>>, vector<1x128xf32>
    %550 = arith.cmpf oge, %548, %549 : vector<1x128xf32>
    %551 = arith.extui %550 : vector<1x128xi1> to vector<1x128xi32>
    %552 = arith.sitofp %551 : vector<1x128xi32> to vector<1x128xf32>
    %c0_338 = arith.constant 0 : index
    %c0_339 = arith.constant 0 : index
    %c0_340 = arith.constant 0 : index
    %553 = vector.load %arg12[%c0_338, %c0_339, %c0_340] : memref<1x1x128xf32, #tpu.memory_space<vmem>>, vector<1x1x128xf32>
    %554 = vector.shape_cast %553 : vector<1x1x128xf32> to vector<1x128xf32>
    %555 = vector.shape_cast %552 : vector<1x128xf32> to vector<1x1x128xf32>
    tpu.vector_store %arg12[%c0_338, %c0_339, %c0_340], %555 {strides = array<i32>} : memref<1x1x128xf32, #tpu.memory_space<vmem>>, vector<1x1x128xf32>,
    return
  }
  func.func @transform_0(%arg0: i32) -> (i32, i32, i32) {
    %c0_i32 = arith.constant 0 : i32
    %c0_i32_0 = arith.constant 0 : i32
    %c0_i32_1 = arith.constant 0 : i32
    return %arg0, %c0_i32, %c0_i32_0 : i32, i32, i32
  }
  func.func @transform_1(%arg0: i32) -> (i32, i32) {
    %c0_i32 = arith.constant 0 : i32
    %c0_i32_0 = arith.constant 0 : i32
    %c0_i32_1 = arith.constant 0 : i32
    return %c0_i32, %c0_i32_0 : i32, i32
  }
  func.func @transform_2(%arg0: i32) -> (i32, i32) {
    %c0_i32 = arith.constant 0 : i32
    %c0_i32_0 = arith.constant 0 : i32
    %c0_i32_1 = arith.constant 0 : i32
    return %c0_i32, %c0_i32_0 : i32, i32
  }
  func.func @transform_3(%arg0: i32) -> (i32, i32) {
    %c0_i32 = arith.constant 0 : i32
    %c0_i32_0 = arith.constant 0 : i32
    %c0_i32_1 = arith.constant 0 : i32
    return %c0_i32, %c0_i32_0 : i32, i32
  }
  func.func @transform_4(%arg0: i32) -> (i32, i32) {
    %c0_i32 = arith.constant 0 : i32
    %c0_i32_0 = arith.constant 0 : i32
    %c0_i32_1 = arith.constant 0 : i32
    return %c0_i32, %c0_i32_0 : i32, i32
  }
  func.func @transform_5(%arg0: i32) -> (i32, i32) {
    %c0_i32 = arith.constant 0 : i32
    %c0_i32_0 = arith.constant 0 : i32
    %c0_i32_1 = arith.constant 0 : i32
    return %c0_i32, %c0_i32_0 : i32, i32
  }
  func.func @transform_6(%arg0: i32) -> (i32, i32) {
    %c0_i32 = arith.constant 0 : i32
    %c0_i32_0 = arith.constant 0 : i32
    %c0_i32_1 = arith.constant 0 : i32
    return %c0_i32, %c0_i32_0 : i32, i32
  }
  func.func @transform_7(%arg0: i32) -> (i32, i32) {
    %c0_i32 = arith.constant 0 : i32
    %c0_i32_0 = arith.constant 0 : i32
    %c0_i32_1 = arith.constant 0 : i32
    return %c0_i32, %c0_i32_0 : i32, i32
  }
  func.func @transform_8(%arg0: i32) -> (i32, i32) {
    %c0_i32 = arith.constant 0 : i32
    %c0_i32_0 = arith.constant 0 : i32
    %c0_i32_1 = arith.constant 0 : i32
    return %c0_i32, %c0_i32_0 : i32, i32
  }
  func.func @transform_9(%arg0: i32) -> (i32, i32) {
    %c0_i32 = arith.constant 0 : i32
    %c0_i32_0 = arith.constant 0 : i32
    %c0_i32_1 = arith.constant 0 : i32
    return %c0_i32, %c0_i32_0 : i32, i32
  }
  func.func @transform_10(%arg0: i32) -> (i32, i32) {
    %c0_i32 = arith.constant 0 : i32
    %c0_i32_0 = arith.constant 0 : i32
    %c0_i32_1 = arith.constant 0 : i32
    return %c0_i32, %c0_i32_0 : i32, i32
  }
  func.func @transform_11(%arg0: i32) -> (i32, i32, i32) {
    %c0_i32 = arith.constant 0 : i32
    %c0_i32_0 = arith.constant 0 : i32
    %c0_i32_1 = arith.constant 0 : i32
    return %arg0, %c0_i32, %c0_i32_0 : i32, i32, i32
  }
}

</mosaic_0001>

<bundles_post_ra>
// kernel: _lambda_.1
= control target key start
LH: loop header
LB: loop body
LE: loop exit
PB: predicated region body
PF: predicated region fallthrough
CT: control target
= control target key end

     0   :  { %s10232_s0 = inlined_call_operand.vmem [shape: bf16[2,256,36], index: 0, kind: input, shape index: {}]   ;;  %s10233_s1 = inlined_call_operand.vmem [shape: bf16[36,128], index: 1, kind: input, shape index: {}]   ;;  %s10234_s2 = inlined_call_operand.vmem [shape: bf16[1152,128], index: 2, kind: input, shape index: {}]   ;;  %s10235_s3 = inlined_call_operand.vmem [shape: bf16[1152,128], index: 3, kind: input, shape index: {}]   ;;  %s10236_s4 = inlined_call_operand.vmem [shape: f32[3,128], index: 4, kind: input, shape index: {}]   ;;  %s10237_s5 = inlined_call_operand.vmem [shape: f32[3,128], index: 5, kind: input, shape index: {}]   ;;  %s10238_s6 = inlined_call_operand.vmem [shape: f32[3,128], index: 6, kind: input, shape index: {}]   ;;  %s10239_s7 = inlined_call_operand.vmem [shape: bf16[2048,256], index: 7, kind: input, shape index: {}]   ;;  %s10240_s8 = inlined_call_operand.vmem [shape: f32[1,256], index: 8, kind: input, shape index: {}]   ;;  %s10241_s9 = inlined_call_operand.vmem [shape: bf16[256,128], index: 9, kind: input, shape index: {}]   ;;  %s10242_s10 = inlined_call_operand.vmem [shape: f32[1,128], index: 10, kind: input, shape index: {}]   ;;  %s10243_s11 = inlined_call_operand.hbm [shape: f32[2,1,128], index: 11, kind: output, shape index: {}]  }
   0x1   :  { %10245 = sst [smem:[#allocation7_spill]] %s10232_s0 }
   0x2   :  { %16 = vsyncpa [#allocation5], 0 }
   0x3   :  { %18 = vsyncpa [#allocation5 + $0x1], 0  ;;  %s7901_s17 = smov 0   ;;  %s7903_s18 = smov 0  }
   0x4   :  { %s7905_s19 = smov 0   ;;  %s7907_s20 = smov 0  }
   0x5 LB: > { %s7922_s21 = sadd.s32 4294967295, %s7834_s20   ;;  %s6085_s22 = sadd.s32 4294967294, %s7834_s20   ;;  %s7834_s20 = sphi %s7907_s20, %s10277_s20   ;;  %s7830_s19 = sphi %s7905_s19, %s10276_s19   ;;  %s7826_s18 = sphi %s7903_s18, %s10275_s18   ;;  %s7822_s17 = sphi %s7901_s17, %s10274_s17  }
   0x6   : > { %s7926_s23 = sadd.s32 1, %s7834_s20   ;;  %s267_s24 = sadd.s32 1, %s7830_s19 }
   0x7   : > { %s264_s25 = ssub.s32 %s7834_s20, %s7926_s23  ;;  %p277_p0 = scmp.ne.s32.totalorder %s7830_s19, %s7826_s18 }
   0x8   : > { %p265_p1 = scmp.eq.s32.totalorder %s264_s25, 0  ;;  %p278_p2 = scmp.eq.s32.totalorder %s7922_s21, 1 }
   0x9   : > { %p283_p3 = scmp.ne.s32.totalorder %s7826_s18, %s7822_s17  ;;  %p284_p4 = scmp.eq.s32.totalorder %s6085_s22, 1 }
   0xa   : > { %s7937_s26 = scalar_select %p265_p1, %s7830_s19, %s267_s24  }
   0xb   : > { %p7939_p5 = por %p278_p2, %p277_p0  ;;  %p7943_p6 = por %p284_p4, %p283_p3 }
   0xc   : > { %p6088_p7 = scmp.ge.s32.totalorder %s7834_s20, 1  ;;  %p340_p8 = scmp.lt.s32.totalorder %s7834_s20, 3 }
   0xe   : > { %p341_p9 = pnand %p6088_p7, %p340_p8 }
   0xf   : > { %v7161_v0 = vld [vmem:[%s10233_s1] sm:$0xff] (!%p341_p9)   ;;  %v7162_v1 = vld [vmem:[%s10233_s1 + $0x8] sm:$0xff] (!%p341_p9)   ;;  %p379_p10 = scmp.lt.s32.totalorder (!%p341_p9), %s7922_s21, 1  ;;  %v7163_v2 = vld [vmem:[%s10233_s1 + $0x10] ss:$0 sps:$4 sm:$0x33] (!%p341_p9)  }
  0x10   : > { %344 = sbr.rel (%p341_p9) target bundleno = 1666 (0x682), region = 64  ;;  %7009 = vmatprep.subr.bf16.mxu1 (!%p341_p9), %v7161_v0  ;;  %vm10244_vm0 = vcmask (!%p341_p9), 1041408   ;;  %vm517_vm1 = vcmask (!%p341_p9), 293888   ;;  %s10248_s0 = sld [smem:[#allocation7_spill]] (!%p341_p9)  ;;  %v7836_v20 = vmov (!%p341_p9), 0   ;;  %v7180_v21 = vld [vmem:[%s10234_s2 + $0x40] sm:$0xff] (!%p341_p9)  }
  0x11   : > { %7010 = vmatpush3.bf16.msra.mxu1 (!%p341_p9), %v7161_v0  ;;  %v568_v4 = vsel (!%p341_p9), %vm10244_vm0, %v7163_v2, 0  ;;  %827 = vst [vmem:[#allocation2 + $0x4] sm:$0xf] (!%p341_p9), %v7836_v20  ;;  %828 = vst [vmem:[#allocation2 + $0x8] sm:$0xf] (!%p341_p9), %v7836_v20  ;;  %v7181_v22 = vld [vmem:[%s10234_s2] sm:$0xff] (!%p341_p9)  }
  0x12   : > { %7011 = vmatprep.subr.bf16.mxu1 (!%p341_p9), %v7162_v1  ;;  %826 = vst [vmem:[#allocation2] sm:$0xf] (!%p341_p9), %v7836_v20  ;;  %829 = vst [vmem:[#allocation2 + $0xc] sm:$0xf] (!%p341_p9), %v7836_v20  ;;  %v7182_v23 = vld [vmem:[%s10234_s2 + $0x48] sm:$0xff] (!%p341_p9)   ;;  %v7185_v25 = vld [vmem:[%s10234_s2 + $0x140] sm:$0xff] (!%p341_p9)  }
  0x13   : > { %830 = vst [vmem:[#allocation2 + $0x10] sm:$0xf] (!%p341_p9), %v7836_v20  ;;  %831 = vst [vmem:[#allocation2 + $0x14] sm:$0xf] (!%p341_p9), %v7836_v20  ;;  %v7183_v24 = vld [vmem:[%s10234_s2 + $0x8] sm:$0xff] (!%p341_p9)   ;;  %v7184_v26 = vld [vmem:[%s10234_s2 + $0x50] sm:$0xff] (!%p341_p9)   ;;  %6798 = vmatprep.subr.bf16.mxu0 (!%p341_p9), %v7185_v25 }
  0x14   : > { %832 = vst [vmem:[#allocation2 + $0x18] sm:$0xf] (!%p341_p9), %v7836_v20  ;;  %833 = vst [vmem:[#allocation2 + $0x1c] sm:$0xf] (!%p341_p9), %v7836_v20  ;;  %v7187_v27 = vld [vmem:[%s10234_s2 + $0x100] sm:$0xff] (!%p341_p9)   ;;  %v7186_v28 = vld [vmem:[%s10234_s2 + $0x10] sm:$0xff] (!%p341_p9)  }
  0x15   : > { %7012 = vmatpush3.bf16.msra.mxu1 (!%p341_p9), %v7162_v1  ;;  %834 = vst [vmem:[#allocation2 + $0x20] sm:$0xf] (!%p341_p9), %v7836_v20  ;;  %835 = vst [vmem:[#allocation2 + $0x24] sm:$0xf] (!%p341_p9), %v7836_v20  ;;  %6799 = vmatpush3.bf16.msra.mxu0 (!%p341_p9), %v7187_v27  ;;  %v7188_v29 = vld [vmem:[%s10234_s2 + $0x148] sm:$0xff] (!%p341_p9)   ;;  %v7189_v30 = vld [vmem:[%s10234_s2 + $0x58] sm:$0xff] (!%p341_p9)  }
  0x16   : > { %7117 = vmatprep.subr.msk.bf16.mxu1 (!%p341_p9), %vm10244_vm0, %v7163_v2  ;;  %836 = vst [vmem:[#allocation2 + $0x28] sm:$0xf] (!%p341_p9), %v7836_v20  ;;  %837 = vst [vmem:[#allocation2 + $0x2c] sm:$0xf] (!%p341_p9), %v7836_v20  ;;  %v7190_v31 = vld [vmem:[%s10234_s2 + $0x108] sm:$0xff] (!%p341_p9)   ;;  %6800 = vmatprep.subr.bf16.mxu0 (!%p341_p9), %v7188_v29  ;;  %v7191_v32 = vld [vmem:[%s10234_s2 + $0x18] sm:$0xff] (!%p341_p9)  }
  0x17   : > { %s380_s16 = scalar_select %p379_p10, %s7922_s21, 1  ;;  %838 = vst [vmem:[#allocation2 + $0x30] sm:$0x3] %v7836_v20  ;;  %2738 = vst [vmem:[#allocation3] sm:$0xf] %v7836_v20  ;;  %v7192_v33 = vld [vmem:[%s10234_s2 + $0x150] sm:$0xff]  }
  0x18   : > { %2739 = vst [vmem:[#allocation3 + $0x4] sm:$0xf] %v7836_v20  ;;  %2740 = vst [vmem:[#allocation3 + $0x8] sm:$0xf] %v7836_v20  ;;  %v7193_v34 = vld [vmem:[%s10234_s2 + $0x60] sm:$0xff]   ;;  %v7194_v35 = vld [vmem:[%s10234_s2 + $0x110] sm:$0xff]  }
  0x19   : > { %s6698_s22 = sshll.u32 %s380_s16, 7  ;;  %7014 = vmatpush3.bf16.msra.mxu1 %v568_v4  ;;  %2741 = vst [vmem:[#allocation3 + $0xc] sm:$0xf] %v7836_v20  ;;  %2742 = vst [vmem:[#allocation3 + $0x10] sm:$0x3] %v7836_v20  ;;  %6801 = vmatpush3.bf16.msra.mxu0 %v7190_v31  ;;  %v7195_v36 = vld [vmem:[%s10234_s2 + $0x20] sm:$0xff]  }
  0x1a   : > { %s7963_s29 = scalar_lea.vmem %s10248_s0, %s6698_s22  ;;  %6718 = vmatprep.subr.bf16.mxu1 %v7180_v21  ;;  %6802 = vmatprep.subr.bf16.mxu0 %v7192_v33  ;;  %v7196_v37 = vld [vmem:[%s10234_s2 + $0x158] sm:$0xff]   ;;  %v7197_v38 = vld [vmem:[%s10234_s2 + $0x68] sm:$0xff]   ;;  %v7200_v41 = vld [vmem:[%s10234_s2 + $0x160] sm:$0xff]   ;;  %vm861_vm4 = vcmask 1042434   ;;  %vm873_vm5 = vcmask 1043459   ;;  %vm894_vm9 = vcmask 1040384  }
  0x1b   : > { %v7164_v3 = vld [vmem:[%s7963_s29] sm:$0xff]   ;;  %v7165_v5 = vld [vmem:[%s7963_s29 + $0x8] sm:$0xff]   ;;  %v7166_v6 = vld [vmem:[%s7963_s29 + $0x10] sm:$0xff]   ;;  %vm874_vm6 = vsmask.f32 3328  ;;  %s377_s30 = sand.u32 1, %s7826_s18  }
  0x1c   : > { %7015 = vmatprep.mubr.msk.bf16.mxu1 %vm517_vm1, %v7164_v3  ;;  %v7167_v7 = vld [vmem:[%s7963_s29 + $0x18] sm:$0xff]   ;;  %v7168_v8 = vld [vmem:[%s7963_s29 + $0x20] sm:$0xff]   ;;  %v7169_v9 = vld [vmem:[%s7963_s29 + $0x28] sm:$0xff]   ;;  %vm862_vm8 = vsmask.f32 2304  ;;  %s6695_s14 = sshll.u32 %s7922_s21, 4 }
  0x1d   : > { %7016 = vmatmul.mubr.msk.bf16.vlgmr.msra.gmra.mrb[0].mxu1 %vm517_vm1, %v7165_v5  ;;  %v7170_v10 = vld [vmem:[%s7963_s29 + $0x30] sm:$0xff]   ;;  %v7171_v11 = vld [vmem:[%s7963_s29 + $0x38] sm:$0xff]   ;;  %v7172_v12 = vld [vmem:[%s7963_s29 + $0x40] sm:$0xff]   ;;  %6803 = vmatpush3.bf16.msra.mxu0 %v7194_v35  ;;  %vm895_vm11 = vsmask.f32 256  ;;  %s378_s15 = scalar_lea.vmem [#allocation4], %s377_s30  ;;  %s10189_s25 = scalar_lea.hbm %s10243_s11, %s6695_s14 }
  0x1e   : > { %7019 = vmatprep.mubr.msk.bf16.mxu1 %vm517_vm1, %v7166_v6  ;;  %v7173_v13 = vld [vmem:[%s7963_s29 + $0x48] sm:$0xff]   ;;  %v7174_v14 = vld [vmem:[%s7963_s29 + $0x50] sm:$0xff]   ;;  %v7175_v15 = vld [vmem:[%s7963_s29 + $0x58] sm:$0xff]   ;;  %6719 = vmatpush3.bf16.msra.mxu1 %v7181_v22  ;;  %vm854_vm12 = vsmask.f32 7942  ;;  %s6030_s16 = sshll.u32 %s378_s15, 4  ;;  %s10191_s16 = int_to_ptr.vmem [resolvable:$true] %s6030_s16 }
  0x1f   : > { %v7176_v16 = vld [vmem:[%s7963_s29 + $0x60] sm:$0xff]   ;;  %v7177_v17 = vld [vmem:[%s7963_s29 + $0x68] sm:$0xff]   ;;  %v7178_v18 = vld [vmem:[%s7963_s29 + $0x70] sm:$0xff]   ;;  %6720 = vmatprep.subr.bf16.mxu1 %v7182_v23  ;;  %6804 = vmatprep.subr.bf16.mxu0 %v7196_v37  ;;  %s6018_s21 = scalar_lea.sflag [#allocation5], %s377_s30  ;;  %s7772_s0 = scalar_lea.vmem %s10191_s16, 16 }
  0x20   : > { %v7179_v19 = vld [vmem:[%s7963_s29 + $0x78] sm:$0xff]   ;;  %v7199_v40 = vld [vmem:[%s10234_s2 + $0x28] sm:$0xff]   ;;  %v7201_v42 = vld [vmem:[%s10234_s2 + $0x70] sm:$0xff]   ;;  %p7773_p11 = scmp.ne.s32.totalorder %s10191_s16, %s7772_s0  ;;  %s7840_s29 = smov [#allocation4]  }
  0x21   : > { %v7198_v39 = vld [vmem:[%s10234_s2 + $0x118] sm:$0xff]   ;;  %v7202_v43 = vld [vmem:[%s10234_s2 + $0x120] sm:$0xff]   ;;  %v7203_v44 = vld [vmem:[%s10234_s2 + $0x30] sm:$0xff]   ;;  %s7776_s12 = sshll.u32 %s7840_s29, 4  ;;  %s7777_s12 = int_to_ptr.vmem [resolvable:$false] %s7776_s12 }
  0x22   : > { %6721 = vmatpush3.bf16.msra.mxu1 %v7183_v24  ;;  %6805 = vmatpush3.bf16.msra.mxu0 %v7198_v39  ;;  %v7204_v45 = vld [vmem:[%s10234_s2 + $0x168] sm:$0xff]   ;;  %v7205_v46 = vld [vmem:[%s10234_s2 + $0x78] sm:$0xff]   ;;  %v7210_v49 = vld [vmem:[%s10234_s2 + $0x170] sm:$0xff]   ;;  %p7774_p12 = pnand %p7773_p11, %p7939_p5  ;;  %s7778_s13 = scalar_lea.vmem %s7777_s12, 32 }
  0x23   : > { %6722 = vmatprep.subr.bf16.mxu1 %v7184_v26  ;;  %6806 = vmatprep.subr.bf16.mxu0 %v7200_v41  ;;  %v7206_v47 = vld [vmem:[%s10234_s2 + $0x128] sm:$0xff]   ;;  %v7207_v48 = vld [vmem:[%s10234_s2 + $0x38] sm:$0xff]   ;;  %v7212_v50 = vld [vmem:[%s10234_s2 + $0x130] sm:$0xff]   ;;  %p7779_p0 = scmp.lt.s32.totalorder %s10191_s16, %s7777_s12  ;;  %p7780_p1 = scmp.lt.s32.totalorder %s7778_s13, %s7772_s0 }
  0x24   : > { %v7216_v51 = vld [vmem:[%s10234_s2 + $0x178] sm:$0xff]   ;;  %v7224_v53 = vld [vmem:[%s10234_s2 + $0xc0] sm:$0xff]   ;;  %vm8129_vm13 = vmand %vm873_vm5, %vm874_vm6  ;;  %vm853_vm6 = vcmask 1041409   ;;  %p7775_p13 = pneg %p7774_p12 }
  0x25   : > { %7020 = vmatmul.mubr.msk.bf16.gmra.mrb[4].mxu1 %vm517_vm1, %v7167_v7  ;;  %v7217_v52 = vld [vmem:[%s10234_s2 + $0x138] sm:$0xff]   ;;  %v7230_v54 = vld [vmem:[%s10234_s2 + $0x200] sm:$0xff]   ;;  %vm8134_vm14 = vmand %vm861_vm4, %vm862_vm8  ;;  %vm886_vm8 = vsmask.f32 7950  ;;  %p7781_p2 = por %p7780_p1, %p7779_p0 }
  0x26   : > { %7023 = vmatprep.mubr.msk.bf16.mxu1 %vm517_vm1, %v7168_v8  ;;  %6723 = vmatpush3.bf16.msra.mxu1 %v7186_v28  ;;  %v8104_v55 = vld [vmem:[%s10236_s4] ss:$0 sm:$0xff]  ;;  %vm8139_vm15 = vmand %vm894_vm9, %vm895_vm11  ;;  %v864_v20 = vld [vmem:[#allocation2 + $0x4] sm:$0x4] }
  0x27   : > { %6724 = vmatprep.subr.bf16.mxu1 %v7189_v30  ;;  %6807 = vmatpush3.bf16.msra.mxu0 %v7202_v43  ;;  %v8109_v56 = vld [vmem:[%s10237_s5] ss:$0 sm:$0xff]  ;;  %vm8155_vm0 = vmand %vm853_vm6, %vm854_vm12  ;;  %v897_v21 = vld [vmem:[#allocation2 + $0x8] sm:$0x1]  ;;  %p7782_p3 = pnand %p7781_p2, %p7775_p13 }
  0x28   : > { %6808 = vmatprep.subr.bf16.mxu0 %v7204_v45  ;;  %v8115_v58 = vld [vmem:[%s10238_s6] ss:$0 sm:$0xff]  ;;  %v913_v30 = vld [vmem:[#allocation2 + $0x8] sm:$0x2]  ;;  %v2868_v4 = vld [vmem:[#allocation3 + $0xc] sm:$0x2] }
  0x29   : > { %v7320_v35 = vld [vmem:[#allocation3] ss:$0 sps:$4 sm:$0x66]  }
  0x2a   : > { %6725 = vmatpush3.bf16.msra.mxu1 %v7191_v32  ;;  %v856_v32 = vld [vmem:[#allocation2 + $0x4] sm:$0x2] }
  0x2b   : > { %6726 = vmatprep.subr.bf16.mxu1 %v7193_v34  ;;  %6809 = vmatpush3.bf16.msra.mxu0 %v7206_v47 }
  0x2c   : > { %6810 = vmatprep.subr.bf16.mxu0 %v7210_v49 }
  0x2d   : > { %7024 = vmatmul.mubr.msk.bf16.gmra.mrb[8].mxu1 %vm517_vm1, %v7169_v9  ;;  %v876_v9 = vld [vmem:[#allocation2 + $0x4] sm:$0x8] }
  0x2e   : > { %7027 = vmatprep.mubr.msk.bf16.mxu1 %vm517_vm1, %v7170_v10  ;;  %6727 = vmatpush3.bf16.msra.mxu1 %v7195_v36 }
  0x2f   : > { %6728 = vmatprep.subr.bf16.mxu1 %v7197_v38  ;;  %6811 = vmatpush3.bf16.msra.mxu0 %v7212_v50 }
  0x30   : > { %6812 = vmatprep.subr.bf16.mxu0 %v7216_v51 }
  0x32   : > { %6729 = vmatpush3.bf16.msra.mxu1 %v7199_v40 }
  0x33   : > { %6730 = vmatprep.subr.bf16.mxu1 %v7201_v42  ;;  %6813 = vmatpush3.bf16.msra.mxu0 %v7217_v52 }
  0x34   : > { %7047 = vmatprep.subr.bf16.mxu0 %v7230_v54 }
  0x35   : > { %7028 = vmatmul.mubr.msk.bf16.gmra.mrb[12].mxu1 %vm517_vm1, %v7171_v11  ;;  %v8144_v11 = vld [vmem:[#allocation2] sm:$0xf] }
  0x36   : > { %7031 = vmatprep.mubr.msk.bf16.mxu1 %vm517_vm1, %v7172_v12  ;;  %6731 = vmatpush3.bf16.msra.mxu1 %v7203_v44 }
  0x37   : > { %6732 = vmatprep.subr.bf16.mxu1 %v7205_v46 }
  0x3a   : > { %6733 = vmatpush3.bf16.msra.mxu1 %v7207_v48 }
  0x3b   : > { %6758 = vmatprep.subr.bf16.mxu1 %v7224_v53 }
  0x3d   : > { %7032 = vmatmul.mubr.msk.bf16.gmra.mrb[16].mxu1 %vm517_vm1, %v7173_v13 }
  0x3e   : > { %7035 = vmatprep.mubr.msk.bf16.mxu1 %vm517_vm1, %v7174_v14 }
  0x45   : > { %7036 = vmatmul.mubr.msk.bf16.gmra.mrb[20].mxu1 %vm517_vm1, %v7175_v15 }
  0x46   : > { %7039 = vmatprep.mubr.msk.bf16.mxu1 %vm517_vm1, %v7176_v16 }
  0x4d   : > { %7040 = vmatmul.mubr.msk.bf16.gmra.mrb[24].mxu1 %vm517_vm1, %v7177_v17 }
  0x4e   : > { %7043 = vmatprep.mubr.msk.bf16.mxu1 %vm517_vm1, %v7178_v18  ;;  %v1320_v18 = vld [vmem:[#allocation2 + $0x4] sm:$0x1] }
  0x4f   : > { %v8164_v25 = vcombine.low %v8144_v11, %v1320_v18 }
  0x51   : > { %v1338_v43 = vshll.u32 %v8164_v25, 16  ;;  %v1336_v48 = vshrl.u32 %v8164_v25, 16 }
  0x55   : > { %7044 = vmatmul.mubr.msk.bf16.gmra.mrb[28].mxu1 %vm517_vm1, %v7179_v19  ;;  %vm911_vm1 = vsmask.f32 1280 }
  0x56   : > { %vm8172_vm12 = vmand %vm853_vm6, %vm911_vm1 }
  0x57   : > { %vm8186_vm1 = vmand %vm873_vm5, %vm886_vm8 }
  0xf0   : > { %v7017_v57 = vpop.f32.mrb[0].mxu1 }
  0xf1   : > { %vm738_vm2 = vcmp.ge.f32.partialorder %v7017_v57, %v8104_v55  ;;  %v604_v59 = vpop.f32.mrb[1].mxu1 }
  0xf2   : > { %vm736_vm3 = vcmp.ge.f32.partialorder %v604_v59, %v8104_v55  ;;  %v7018_v60 = vpop.f32.mrb[2].mxu1  ;;  %v780_v62 = vsel %vm738_vm2, %v8109_v56, %v8115_v58  ;;  %vm868_vm2 = vsmask.f32 7946  ;;  %v959_v59 = vld [vmem:[#allocation2 + $0xc] sm:$0x2] }
  0xf3   : > { %vm739_vm7 = vcmp.ge.f32.partialorder %v7018_v60, %v8104_v55  ;;  %v607_v61 = vpop.f32.mrb[3].mxu1  ;;  %v778_v0 = vsel %vm736_vm3, %v8109_v56, %v8115_v58 }
  0xf4   : > { %v781_v63 = vsel %vm739_vm7, %v8109_v56, %v8115_v58  ;;  %vm737_vm10 = vcmp.ge.f32.partialorder %v607_v61, %v8104_v55 }
  0xf5   : > { %v811_v1 = vpack.c.bf16 %v781_v63, %v780_v62  ;;  %v779_v2 = vsel %vm737_vm10, %v8109_v56, %v8115_v58 }
  0xf6   : > { %v810_v3 = vpack.c.bf16 %v779_v2, %v778_v0  ;;  %v935_v0 = vld [vmem:[#allocation2 + $0x8] sm:$0x8] }
  0xf8   : > { %v839_v7 = vmax.bf16 %v811_v1, %v810_v3  ;;  %v7021_v8 = vpop.f32.mrb[4].mxu1 }
  0xf9   : > { %vm742_vm3 = vcmp.ge.f32.partialorder %v7021_v8, %v8104_v55  ;;  %v620_v10 = vpop.f32.mrb[5].mxu1  ;;  %v946_v8 = vld [vmem:[#allocation2 + $0xc] sm:$0x1] }
  0xfa   : > { %v841_v12 = vshrl.u32 %v839_v7, 16  ;;  %vm740_vm7 = vcmp.ge.f32.partialorder %v620_v10, %v8104_v55  ;;  %v7022_v13 = vpop.f32.mrb[6].mxu1  ;;  %v784_v16 = vsel %vm742_vm3, %v8109_v56, %v8115_v58  ;;  %vm903_vm3 = vsmask.f32 7938  ;;  %v971_v10 = vld [vmem:[#allocation2 + $0xc] sm:$0x4] }
  0xfb   : > { %vm743_vm10 = vcmp.ge.f32.partialorder %v7022_v13, %v8104_v55  ;;  %v623_v14 = vpop.f32.mrb[7].mxu1  ;;  %v782_v22 = vsel %vm740_vm7, %v8109_v56, %v8115_v58  ;;  %vm8180_vm7 = vmand %vm861_vm4, %vm868_vm2  ;;  %v930_v13 = vld [vmem:[#allocation2 + $0x8] sm:$0x4] }
  0xfc   : > { %v844_v15 = vmax.bf16 %v841_v12, %v839_v7  ;;  %v785_v17 = vsel %vm743_vm10, %v8109_v56, %v8115_v58  ;;  %vm741_vm11 = vcmp.ge.f32.partialorder %v623_v14, %v8104_v55  ;;  %vm8218_vm8 = vmand %vm894_vm9, %vm903_vm3 }
  0xfd   : > { %v813_v23 = vpack.c.bf16 %v785_v17, %v784_v16  ;;  %v783_v24 = vsel %vm741_vm11, %v8109_v56, %v8115_v58  ;;  %v8222_v16 = vrot.slane %v1338_v43, 1 }
  0xfe   : > { %v8166_v26 = vcombine.low %v844_v15, %v844_v15  ;;  %v877_v27 = vsel %vm8129_vm13, %v844_v15, %v876_v9  ;;  %v6130_v28 = vcombine.high %v844_v15, %v844_v15  ;;  %v812_v31 = vpack.c.bf16 %v783_v24, %v782_v22 }
  0xff   : > { %878 = vst [vmem:[#allocation2 + $0x4] sm:$0x8] %v877_v27 }
 0x100   : > { %v849_v33 = vshll.u32 %v8166_v26, 16  ;;  %v859_v34 = vrot.slane %v8166_v26, 7  ;;  %v882_v36 = vshll.u32 %v6130_v28, 16  ;;  %v6131_v38 = vrot.slane %v6130_v28, 9  ;;  %v7025_v39 = vpop.f32.mrb[8].mxu1 }
 0x101   : > { %v6133_v40 = vrot.slane %v6130_v28, 10  ;;  %v916_v41 = vmax.bf16 %v813_v23, %v812_v31  ;;  %vm746_vm6 = vcmp.ge.f32.partialorder %v7025_v39, %v8104_v55  ;;  %v636_v42 = vpop.f32.mrb[9].mxu1 }
 0x102   : > { %v851_v44 = vrot.slane %v849_v33, 7  ;;  %v865_v45 = vsel %vm8134_vm14, %v859_v34, %v864_v20  ;;  %v898_v46 = vsel %vm8139_vm15, %v6131_v38, %v897_v21  ;;  %v7026_v47 = vpop.f32.mrb[10].mxu1  ;;  %v884_v49 = vrot.slane %v882_v36, 5 }
 0x103   : > { %866 = vst [vmem:[#allocation2 + $0x4] sm:$0x4] %v865_v45  ;;  %899 = vst [vmem:[#allocation2 + $0x8] sm:$0x1] %v898_v46  ;;  %v914_v50 = vsel %vm8172_vm12, %v6133_v40, %v913_v30  ;;  %v918_v51 = vshrl.u32 %v916_v41, 16  ;;  %v788_v52 = vsel %vm746_vm6, %v8109_v56, %v8115_v58  ;;  %v639_v53 = vpop.f32.mrb[11].mxu1  ;;  %vm744_vm4 = vcmp.ge.f32.partialorder %v636_v42, %v8104_v55 }
 0x104   : > { %v857_v54 = vsel %vm8155_vm0, %v851_v44, %v856_v32  ;;  %915 = vst [vmem:[#allocation2 + $0x8] sm:$0x2] %v914_v50  ;;  %vm747_vm5 = vcmp.ge.f32.partialorder %v7026_v47, %v8104_v55  ;;  %vm745_vm2 = vcmp.ge.f32.partialorder %v639_v53, %v8104_v55  ;;  %v786_v60 = vsel %vm744_vm4, %v8109_v56, %v8115_v58  ;;  %v1029_v44 = vld [vmem:[#allocation2 + $0x10] sm:$0x8]  ;;  %v994_v45 = vld [vmem:[#allocation2 + $0x10] sm:$0x1] }
 0x105   : > { %858 = vst [vmem:[#allocation2 + $0x4] sm:$0x2] %v857_v54  ;;  %v921_v57 = vmax.bf16 %v918_v51, %v916_v41  ;;  %v789_v61 = vsel %vm747_vm5, %v8109_v56, %v8115_v58  ;;  %v787_v62 = vsel %vm745_vm2, %v8109_v56, %v8115_v58  ;;  %v6132_v17 = vrot.slane %v882_v36, 10  ;;  %v1006_v50 = vld [vmem:[#allocation2 + $0x10] sm:$0x2] }
 0x106   : > { %v888_v63 = vld [vmem:[#allocation2 + $0x4] sm:$0x8]  ;;  %v815_v1 = vpack.c.bf16 %v789_v61, %v788_v52  ;;  %v814_v2 = vpack.c.bf16 %v787_v62, %v786_v60  ;;  %v1021_v52 = vld [vmem:[#allocation2 + $0x10] sm:$0x4] }
 0x107   : > { %v889_v3 = vsel %vm8186_vm1, %v884_v49, %v888_v63  ;;  %v6134_v7 = vcombine.low %v921_v57, %v921_v57  ;;  %v8214_v9 = vcombine.high %v921_v57, %v921_v57 }
 0x108   : > { %890 = vst [vmem:[#allocation2 + $0x4] sm:$0x8] %v889_v3  ;;  %v974_v14 = vmax.bf16 %v815_v1, %v814_v2  ;;  %v7029_v15 = vpop.f32.mrb[12].mxu1 }
 0x109   : > { %v926_v18 = vshll.u32 %v6134_v7, 16  ;;  %v933_v20 = vrot.slane %v6134_v7, 6  ;;  %v6135_v21 = vrot.slane %v6134_v7, 11  ;;  %v652_v22 = vpop.f32.mrb[13].mxu1  ;;  %v960_v26 = vsel %vm8172_vm12, %v8214_v9, %v959_v59  ;;  %v988_v59 = vld [vmem:[#allocation2 + $0xc] sm:$0x8] }
 0x10a   : > { %v870_v23 = vld [vmem:[#allocation2 + $0x4] sm:$0x4]  ;;  %v905_v24 = vld [vmem:[#allocation2 + $0x8] sm:$0x1]  ;;  %v6138_v27 = vrot.slane %v8214_v9, 9  ;;  %v976_v28 = vshrl.u32 %v974_v14, 16  ;;  %vm750_vm9 = vcmp.ge.f32.partialorder %v7029_v15, %v8104_v55  ;;  %vm748_vm10 = vcmp.ge.f32.partialorder %v652_v22, %v8104_v55 }
 0x10b   : > { %v871_v30 = vsel %vm8180_vm7, %v849_v33, %v870_v23  ;;  %v906_v31 = vsel %vm8218_vm8, %v6132_v17, %v905_v24  ;;  %v928_v32 = vrot.slane %v926_v18, 6  ;;  %v936_v34 = vsel %vm8129_vm13, %v933_v20, %v935_v0  ;;  %961 = vst [vmem:[#allocation2 + $0xc] sm:$0x2] %v960_v26  ;;  %v7030_v36 = vpop.f32.mrb[14].mxu1 }
 0x10c   : > { %872 = vst [vmem:[#allocation2 + $0x4] sm:$0x4] %v871_v30  ;;  %907 = vst [vmem:[#allocation2 + $0x8] sm:$0x1] %v906_v31  ;;  %v938_v38 = vrot.slane %v926_v18, 7  ;;  %v947_v39 = vsel %vm8139_vm15, %v6135_v21, %v946_v8  ;;  %v952_v40 = vshll.u32 %v8214_v9, 16  ;;  %v972_v33 = vsel %vm8134_vm14, %v6138_v27, %v971_v10 }
 0x10d   : > { %937 = vst [vmem:[#allocation2 + $0x8] sm:$0x8] %v936_v34  ;;  %v655_v41 = vpop.f32.mrb[15].mxu1  ;;  %v931_v42 = vsel %vm8180_vm7, %v928_v32, %v930_v13  ;;  %948 = vst [vmem:[#allocation2 + $0xc] sm:$0x1] %v947_v39  ;;  %v979_v43 = vmax.bf16 %v976_v28, %v974_v14  ;;  %v792_v46 = vsel %vm750_vm9, %v8109_v56, %v8115_v58 }
 0x10e   : > { %973 = vst [vmem:[#allocation2 + $0xc] sm:$0x4] %v972_v33  ;;  %932 = vst [vmem:[#allocation2 + $0x8] sm:$0x4] %v931_v42  ;;  %v790_v47 = vsel %vm748_vm10, %v8109_v56, %v8115_v58  ;;  %vm751_vm11 = vcmp.ge.f32.partialorder %v7030_v36, %v8104_v55  ;;  %vm749_vm3 = vcmp.ge.f32.partialorder %v655_v41, %v8104_v55  ;;  %v6137_v57 = vrot.slane %v952_v40, 9 }
 0x10f   : > { %v6139_v49 = vcombine.low %v979_v43, %v979_v43  ;;  %v8251_v51 = vcombine.high %v979_v43, %v979_v43  ;;  %v793_v53 = vsel %vm751_vm11, %v8109_v56, %v8115_v58  ;;  %v791_v54 = vsel %vm749_vm3, %v8109_v56, %v8115_v58  ;;  %v1045_v43 = vld [vmem:[#allocation2 + $0x14] sm:$0x1] }
 0x110   : > { %v817_v60 = vpack.c.bf16 %v793_v53, %v792_v46  ;;  %v816_v61 = vpack.c.bf16 %v791_v54, %v790_v47  ;;  %v7033_v62 = vpop.f32.mrb[16].mxu1  ;;  %v1060_v53 = vld [vmem:[#allocation2 + $0x14] sm:$0x4]  ;;  %vm1659_vm11 = vcmask 1043456  }
 0x111   : > { %v984_v63 = vshll.u32 %v6139_v49, 16  ;;  %v6140_v0 = vrot.slane %v6139_v49, 9  ;;  %v6142_v1 = vrot.slane %v6139_v49, 10  ;;  %v1012_v2 = vshll.u32 %v8251_v51, 16  ;;  %v668_v3 = vpop.f32.mrb[17].mxu1 }
 0x112   : > { %v965_v7 = vld [vmem:[#allocation2 + $0xc] sm:$0x2]  ;;  %v1019_v8 = vrot.slane %v8251_v51, 7  ;;  %v1030_v9 = vsel %vm8129_vm13, %v8251_v51, %v1029_v44  ;;  %v1032_v10 = vmax.bf16 %v817_v60, %v816_v61  ;;  %vm754_vm6 = vcmp.ge.f32.partialorder %v7033_v62, %v8104_v55  ;;  %v7034_v13 = vpop.f32.mrb[18].mxu1  ;;  %v1086_v60 = vld [vmem:[#allocation2 + $0x18] sm:$0x1] }
 0x113   : > { %v966_v15 = vsel %vm8155_vm0, %v6137_v57, %v965_v7  ;;  %v986_v17 = vrot.slane %v984_v63, 5  ;;  %v995_v18 = vsel %vm8139_vm15, %v6140_v0, %v994_v45  ;;  %v8267_v20 = vrot.slane %v984_v63, 10  ;;  %1031 = vst [vmem:[#allocation2 + $0x10] sm:$0x8] %v1030_v9  ;;  %v671_v21 = vpop.f32.mrb[19].mxu1 }
 0x114   : > { %v940_v14 = vld [vmem:[#allocation2 + $0x8] sm:$0x8]  ;;  %v955_v23 = vld [vmem:[#allocation2 + $0xc] sm:$0x1]  ;;  %967 = vst [vmem:[#allocation2 + $0xc] sm:$0x2] %v966_v15  ;;  %v1007_v24 = vsel %vm8172_vm12, %v6142_v1, %v1006_v50  ;;  %v1022_v27 = vsel %vm8134_vm14, %v1019_v8, %v1021_v52  ;;  %v796_v34 = vsel %vm754_vm6, %v8109_v56, %v8115_v58  ;;  %vm752_vm4 = vcmp.ge.f32.partialorder %v668_v3, %v8104_v55 }
 0x115   : > { %v941_v22 = vsel %vm8186_vm1, %v938_v38, %v940_v14  ;;  %996 = vst [vmem:[#allocation2 + $0x10] sm:$0x1] %v995_v18  ;;  %v1014_v26 = vrot.slane %v1012_v2, 7  ;;  %v8277_v28 = vld [vmem:[#allocation2 + $0x4] sm:$0xe]  ;;  %v956_v30 = vsel %vm8218_vm8, %v952_v40, %v955_v23  ;;  %v989_v31 = vsel %vm8186_vm1, %v986_v17, %v988_v59 }
 0x116   : > { %942 = vst [vmem:[#allocation2 + $0x8] sm:$0x8] %v941_v22  ;;  %1008 = vst [vmem:[#allocation2 + $0x10] sm:$0x2] %v1007_v24  ;;  %v1034_v32 = vshrl.u32 %v1032_v10, 16  ;;  %vm755_vm5 = vcmp.ge.f32.partialorder %v7034_v13, %v8104_v55  ;;  %vm753_vm2 = vcmp.ge.f32.partialorder %v671_v21, %v8104_v55  ;;  %v794_v33 = vsel %vm752_vm4, %v8109_v56, %v8115_v58 }
 0x117   : > { %1023 = vst [vmem:[#allocation2 + $0x10] sm:$0x4] %v1022_v27  ;;  %v8287_v36 = vld [vmem:[#allocation2 + $0x8] sm:$0x3]  ;;  %957 = vst [vmem:[#allocation2 + $0xc] sm:$0x1] %v956_v30  ;;  %v797_v41 = vsel %vm755_vm5, %v8109_v56, %v8115_v58  ;;  %v795_v42 = vsel %vm753_vm2, %v8109_v56, %v8115_v58  ;;  %v8313_v63 = vor.u32 %v8222_v16, %v1336_v48 }
 0x118   : > { %990 = vst [vmem:[#allocation2 + $0xc] sm:$0x8] %v989_v31  ;;  %v1048_v38 = vld [vmem:[#allocation2 + $0x14] sm:$0x2]  ;;  %v8294_v39 = vcombine.low %v8277_v28, %v8287_v36  ;;  %v1037_v40 = vmax.bf16 %v1034_v32, %v1032_v10  ;;  %v819_v44 = vpack.c.bf16 %v797_v41, %v796_v34  ;;  %v818_v45 = vpack.c.bf16 %v795_v42, %v794_v33  ;;  %v7037_v46 = vpop.f32.mrb[20].mxu1 }
 0x119   : > { %v1075_v57 = vld [vmem:[#allocation2 + $0x14] sm:$0x8]  ;;  %vm758_vm9 = vcmp.ge.f32.partialorder %v7037_v46, %v8104_v55  ;;  %v684_v59 = vpop.f32.mrb[21].mxu1  ;;  %v1323_v22 = vld [vmem:[#allocation2 + $0x8] sm:$0x1] }
 0x11a   : > { %v1356_v47 = vshrl.u32 %v8294_v39, 16  ;;  %v1359_v49 = vshll.u32 %v8294_v39, 16  ;;  %v6144_v50 = vcombine.low %v1037_v40, %v1037_v40  ;;  %v1049_v52 = vsel %vm8172_vm12, %v1037_v40, %v1048_v38  ;;  %v7038_v62 = vpop.f32.mrb[22].mxu1  ;;  %v1108_v31 = vld [vmem:[#allocation2 + $0x18] sm:$0x4] }
 0x11b   : > { %v8306_v54 = vcombine.high %v1037_v40, %v1037_v40  ;;  %1050 = vst [vmem:[#allocation2 + $0x14] sm:$0x2] %v1049_v52  ;;  %v1089_v61 = vmax.bf16 %v819_v44, %v818_v45  ;;  %vm756_vm10 = vcmp.ge.f32.partialorder %v684_v59, %v8104_v55  ;;  %v800_v14 = vsel %vm758_vm9, %v8109_v56, %v8115_v58  ;;  %v687_v21 = vpop.f32.mrb[23].mxu1  ;;  %v1131_v45 = vld [vmem:[#allocation2 + $0x1c] sm:$0x1] }
 0x11c   : > { %v1391_v0 = vrot.slane %v1359_v49, 1  ;;  %v1000_v1 = vld [vmem:[#allocation2 + $0x10] sm:$0x1]  ;;  %v1042_v3 = vshll.u32 %v6144_v50, 16  ;;  %v6146_v7 = vrot.slane %v6144_v50, 9  ;;  %vm759_vm3 = vcmp.ge.f32.partialorder %v7038_v62, %v8104_v55 }
 0x11d   : > { %v1066_v8 = vshll.u32 %v8306_v54, 16  ;;  %v1073_v9 = vrot.slane %v8306_v54, 6  ;;  %v1001_v10 = vsel %vm8218_vm8, %v8267_v20, %v1000_v1  ;;  %v1016_v13 = vld [vmem:[#allocation2 + $0x10] sm:$0x2]  ;;  %v6148_v48 = vrot.slane %v8306_v54, 11 }
 0x11e   : > { %v1025_v25 = vld [vmem:[#allocation2 + $0x10] sm:$0x4]  ;;  %v1091_v16 = vshrl.u32 %v1089_v61, 16  ;;  %1002 = vst [vmem:[#allocation2 + $0x10] sm:$0x1] %v1001_v10  ;;  %v1017_v15 = vsel %vm8155_vm0, %v1014_v26, %v1016_v13  ;;  %v1046_v18 = vsel %vm8218_vm8, %v1042_v3, %v1045_v43  ;;  %v798_v20 = vsel %vm756_vm10, %v8109_v56, %v8115_v58 }
 0x11f   : > { %v1026_v17 = vsel %vm8180_vm7, %v1012_v2, %v1025_v25  ;;  %1018 = vst [vmem:[#allocation2 + $0x10] sm:$0x2] %v1017_v15  ;;  %1047 = vst [vmem:[#allocation2 + $0x14] sm:$0x1] %v1046_v18  ;;  %v6145_v23 = vrot.slane %v1042_v3, 9  ;;  %v1061_v51 = vsel %vm8134_vm14, %v6146_v7, %v1060_v53  ;;  %v8341_v24 = vrot.slane %v1066_v8, 6 }
 0x120   : > { %1027 = vst [vmem:[#allocation2 + $0x10] sm:$0x4] %v1026_v17  ;;  %v1076_v2 = vsel %vm8129_vm13, %v1073_v9, %v1075_v57  ;;  %v1115_v26 = vld [vmem:[#allocation2 + $0x18] sm:$0x8]  ;;  %1062 = vst [vmem:[#allocation2 + $0x14] sm:$0x4] %v1061_v51  ;;  %v1087_v27 = vsel %vm8139_vm15, %v6148_v48, %v1086_v60  ;;  %v1094_v30 = vmax.bf16 %v1091_v16, %v1089_v61 }
 0x121   : > { %1077 = vst [vmem:[#allocation2 + $0x14] sm:$0x8] %v1076_v2  ;;  %vm757_vm6 = vcmp.ge.f32.partialorder %v687_v21, %v8104_v55  ;;  %1088 = vst [vmem:[#allocation2 + $0x18] sm:$0x1] %v1087_v27  ;;  %v801_v32 = vsel %vm759_vm3, %v8109_v56, %v8115_v58  ;;  %v1392_v38 = vor.u32 %v1391_v0, %v1356_v47  ;;  %v7041_v40 = vpop.f32.mrb[24].mxu1  ;;  %v1078_v3 = vrot.slane %v1066_v8, 7 }
 0x122   : > { %v799_v34 = vsel %vm757_vm6, %v8109_v56, %v8115_v58  ;;  %v8356_v33 = vcombine.low %v8277_v28, %v1323_v22  ;;  %v1054_v41 = vld [vmem:[#allocation2 + $0x14] sm:$0x2]  ;;  %v8358_v42 = vcombine.low %v1094_v30, %v1094_v30  ;;  %v1116_v43 = vsel %vm8129_vm13, %v1094_v30, %v1115_v26  ;;  %v700_v50 = vpop.f32.mrb[25].mxu1  ;;  %v1103_v53 = vld [vmem:[#allocation2 + $0x18] sm:$0x2]  ;;  %v7225_v27 = vld [vmem:[%s10234_s2 + $0x80] sm:$0xff]  }
 0x123   : > { %v6150_v44 = vcombine.high %v1094_v30, %v1094_v30  ;;  %v821_v46 = vpack.c.bf16 %v801_v32, %v800_v14  ;;  %v1055_v52 = vsel %vm8155_vm0, %v6145_v23, %v1054_v41  ;;  %1117 = vst [vmem:[#allocation2 + $0x18] sm:$0x8] %v1116_v43  ;;  %v1143_v54 = vld [vmem:[#allocation2 + $0x1c] sm:$0x2]  ;;  %v820_v57 = vpack.c.bf16 %v799_v34, %v798_v20  ;;  %v8365_v28 = vpop.f32.mrb[26].mxu1 }
 0x124   : > { %v1608_v59 = vrot.slane %v1392_v38, 5  ;;  %vm762_vm4 = vcmp.ge.f32.partialorder %v7041_v40, %v8104_v55  ;;  %1056 = vst [vmem:[#allocation2 + $0x14] sm:$0x2] %v1055_v52  ;;  %v1099_v60 = vshll.u32 %v8358_v42, 16  ;;  %v1106_v61 = vrot.slane %v8358_v42, 7  ;;  %v8369_v1 = vpop.f32.mrb[27].mxu1 }
 0x125   : > { %v1121_v62 = vshll.u32 %v6150_v44, 16  ;;  %v6151_v0 = vrot.slane %v6150_v44, 9  ;;  %v6153_v7 = vrot.slane %v6150_v44, 10  ;;  %v1146_v9 = vmax.bf16 %v821_v46, %v820_v57  ;;  %v1325_v13 = vld [vmem:[#allocation2 + $0x4] sm:$0xc]  ;;  %v7226_v40 = vld [vmem:[%s10234_s2 + $0xc8] sm:$0xff]  }
 0x126   : > { %v1666_v10 = vsel %vm1659_vm11, %v8313_v63, %v1608_v59  ;;  %v8373_v25 = vld [vmem:[#allocation2 + $0x8] sm:$0xc]  ;;  %v1101_v48 = vrot.slane %v1099_v60, 7  ;;  %v1109_v16 = vsel %vm8134_vm14, %v1106_v61, %v1108_v31  ;;  %v8385_v8 = vsel %vm762_vm4, %v8109_v56, %v8115_v58  ;;  %v1328_v63 = vld [vmem:[#allocation2 + $0xc] sm:$0x7] }
 0x127   : > { %v1132_v14 = vsel %vm8139_vm15, %v6151_v0, %v1131_v45  ;;  %2410 = vmatprep.mubr.bf16.mxu1 %v1666_v10  ;;  %v1329_v15 = vld [vmem:[#allocation2 + $0x8] sm:$0x8]  ;;  %v1070_v17 = vld [vmem:[#allocation2 + $0x14] sm:$0x4]  ;;  %1110 = vst [vmem:[#allocation2 + $0x18] sm:$0x4] %v1109_v16  ;;  %v1144_v21 = vsel %vm8172_vm12, %v6153_v7, %v1143_v54  ;;  %vm760_vm5 = vcmp.ge.f32.partialorder %v700_v50, %v8104_v55 }
 0x128   : > { %v1080_v18 = vld [vmem:[#allocation2 + $0x14] sm:$0x8]  ;;  %v1123_v20 = vrot.slane %v1121_v62, 5  ;;  %1133 = vst [vmem:[#allocation2 + $0x1c] sm:$0x1] %v1132_v14  ;;  %v1148_v22 = vshrl.u32 %v1146_v9, 16  ;;  %v1071_v23 = vsel %vm8180_vm7, %v8341_v24, %v1070_v17  ;;  %v1104_v2 = vsel %vm8155_vm0, %v1101_v48, %v1103_v53 }
 0x129   : > { %v1081_v51 = vsel %vm8186_vm1, %v1078_v3, %v1080_v18  ;;  %1145 = vst [vmem:[#allocation2 + $0x1c] sm:$0x2] %v1144_v21  ;;  %v1607_v26 = vrot.slane %v8356_v33, 5  ;;  %1072 = vst [vmem:[#allocation2 + $0x14] sm:$0x4] %v1071_v23  ;;  %v6152_v30 = vrot.slane %v1121_v62, 10  ;;  %v8402_v24 = vcombine.low %v1325_v13, %v8287_v36 }
 0x12a   : > { %1082 = vst [vmem:[#allocation2 + $0x14] sm:$0x8] %v1081_v51  ;;  %1105 = vst [vmem:[#allocation2 + $0x18] sm:$0x2] %v1104_v2  ;;  %v1151_v31 = vmax.bf16 %v1148_v22, %v1146_v9  ;;  %v1189_v32 = vld [vmem:[#allocation2 + $0x20] sm:$0x2]  ;;  %v6175_v34 = vcombine.low %v8373_v25, %v1328_v63  ;;  %v8416_v45 = vsel %vm760_vm5, %v8109_v56, %v8115_v58 }
 0x12b   : > { %v8405_v38 = vpop.f32.mrb[28].mxu1  ;;  %v1125_v41 = vld [vmem:[#allocation2 + $0x18] sm:$0x8]  ;;  %v1165_v43 = vld [vmem:[#allocation2 + $0x1c] sm:$0x8]  ;;  %v1662_v44 = vsel %vm1659_vm11, %v8144_v11, %v1607_v26  ;;  %v8418_v36 = vcombine.low %v1329_v15, %v1328_v63  ;;  %vm763_vm2 = vcmp.ge.f32.partialorder %v8365_v28, %v8104_v55  ;;  %vm761_vm9 = vcmp.ge.f32.partialorder %v8369_v1, %v8104_v55  ;;  %v7227_v9 = vld [vmem:[%s10234_s2 + $0x88] sm:$0xff]  }
 0x12c   : > { %v8422_v46 = vpop.f32.mrb[29].mxu1  ;;  %v1126_v52 = vsel %vm8186_vm1, %v1123_v20, %v1125_v41  ;;  %v6154_v53 = vcombine.low %v1151_v31, %v1151_v31  ;;  %v1176_v54 = vld [vmem:[#allocation2 + $0x20] sm:$0x1]  ;;  %v8426_v57 = vcombine.high %v1151_v31, %v1151_v31  ;;  %v1201_v11 = vld [vmem:[#allocation2 + $0x20] sm:$0x4]  ;;  %2411 = vmatmul.mubr.bf16.vlgmr.msra.gmra.mrb[32].mxu1 %v1662_v44  ;;  %v1366_v61 = vrot.slane %v8402_v24, 2 }
 0x12d   : > { %v8430_v50 = vpop.f32.mrb[30].mxu1  ;;  %1127 = vst [vmem:[#allocation2 + $0x18] sm:$0x8] %v1126_v52  ;;  %v1160_v59 = vld [vmem:[#allocation2 + $0x1c] sm:$0x4]  ;;  %v8433_v62 = vshrl.u32 %v6175_v34, 16  ;;  %6759 = vmatpush3.bf16.msra.mxu1 %v7225_v27  ;;  %v805_v21 = vsel %vm763_vm2, %v8109_v56, %v8115_v58  ;;  %vm766_vm10 = vcmp.ge.f32.partialorder %v8405_v38, %v8104_v55  ;;  %vm764_vm3 = vcmp.ge.f32.partialorder %v8422_v46, %v8104_v55 }
 0x12e   : > { %v8435_v0 = vshll.u32 %v6175_v34, 16  ;;  %v6200_v3 = vrot.slane %v8418_v36, 7  ;;  %v719_v7 = vpop.f32.mrb[31].mxu1  ;;  %v1156_v10 = vshll.u32 %v6154_v53, 16  ;;  %v1163_v13 = vrot.slane %v6154_v53, 6  ;;  %6760 = vmatprep.subr.bf16.mxu1 %v7226_v40  ;;  %v7229_v14 = vld [vmem:[%s10234_s2 + $0xd0] sm:$0xff]  }
 0x12f   : > { %v6155_v48 = vrot.slane %v6154_v53, 11  ;;  %v1182_v16 = vshll.u32 %v8426_v57, 16  ;;  %v1112_v63 = vld [vmem:[#allocation2 + $0x18] sm:$0x4]  ;;  %v1137_v15 = vld [vmem:[#allocation2 + $0x1c] sm:$0x1]  ;;  %v1190_v17 = vsel %vm8172_vm12, %v8426_v57, %v1189_v32  ;;  %v823_v31 = vpack.c.bf16 %v805_v21, %v8385_v8 }
 0x130   : > { %v6158_v18 = vrot.slane %v8426_v57, 9  ;;  %v1682_v20 = vsel %vm1659_vm11, %v1366_v61, %v6200_v3  ;;  %v1113_v22 = vsel %vm8180_vm7, %v1099_v60, %v1112_v63  ;;  %v1138_v23 = vsel %vm8218_vm8, %v6152_v30, %v1137_v15  ;;  %1191 = vst [vmem:[#allocation2 + $0x20] sm:$0x2] %v1190_v17  ;;  %v7232_v27 = vld [vmem:[%s10234_s2 + $0x90] sm:$0xff]   ;;  %v7236_v40 = vld [vmem:[%s10234_s2 + $0xd8] sm:$0xff]  }
 0x131   : > { %v1158_v51 = vrot.slane %v1156_v10, 6  ;;  %v1166_v2 = vsel %vm8129_vm13, %v1163_v13, %v1165_v43  ;;  %2540 = vmatprep.mubr.bf16.mxu0 %v1682_v20  ;;  %1114 = vst [vmem:[#allocation2 + $0x18] sm:$0x4] %v1113_v22  ;;  %1139 = vst [vmem:[#allocation2 + $0x1c] sm:$0x1] %v1138_v23  ;;  %v1168_v26 = vrot.slane %v1156_v10, 7  ;;  %v1177_v28 = vsel %vm8139_vm15, %v6155_v48, %v1176_v54 }
 0x132   : > { %1167 = vst [vmem:[#allocation2 + $0x1c] sm:$0x8] %v1166_v2  ;;  %v6157_v42 = vrot.slane %v1182_v16, 9  ;;  %v1202_v60 = vsel %vm8134_vm14, %v6158_v18, %v1201_v11  ;;  %6761 = vmatpush3.bf16.msra.mxu1 %v7227_v9  ;;  %1178 = vst [vmem:[#allocation2 + $0x20] sm:$0x1] %v1177_v28  ;;  %v803_v32 = vsel %vm761_vm9, %v8109_v56, %v8115_v58  ;;  %v1358_v34 = vrot.slane %v1356_v47, 1 }
 0x133   : > { %v1161_v30 = vsel %vm8180_vm7, %v1158_v51, %v1160_v59  ;;  %1203 = vst [vmem:[#allocation2 + $0x20] sm:$0x4] %v1202_v60  ;;  %6762 = vmatprep.subr.bf16.mxu1 %v7229_v14  ;;  %v822_v41 = vpack.c.bf16 %v803_v32, %v8416_v45  ;;  %v1361_v8 = vrot.slane %v1359_v49, 2  ;;  %v1395_v43 = vrot.slane %v8433_v62, 1  ;;  %v8490_v1 = vld [vmem:[#allocation2 + $0x10] sm:$0xf] }
 0x134   : > { %1162 = vst [vmem:[#allocation2 + $0x1c] sm:$0x4] %v1161_v30  ;;  %v1396_v44 = vrot.slane %v8435_v0, 2  ;;  %vm767_vm6 = vcmp.ge.f32.partialorder %v8430_v50, %v8104_v55  ;;  %vm765_vm4 = vcmp.ge.f32.partialorder %v719_v7, %v8104_v55  ;;  %v808_v45 = vsel %vm766_vm10, %v8109_v56, %v8115_v58  ;;  %v1388_v52 = vld [vmem:[#allocation2 + $0xc] sm:$0x8]  ;;  %v7238_v38 = vld [vmem:[%s10234_s2 + $0x98] sm:$0xff]  }
 0x135   : > { %v1204_v47 = vmax.bf16 %v823_v31, %v822_v41  ;;  %v1362_v39 = vor.u32 %v1361_v8, %v1358_v34  ;;  %v806_v46 = vsel %vm764_vm3, %v8109_v56, %v8115_v58  ;;  %v809_v53 = vsel %vm767_vm6, %v8109_v56, %v8115_v58  ;;  %v7239_v11 = vld [vmem:[%s10234_s2 + $0xe0] sm:$0xff]   ;;  %v1327_v9 = vld [vmem:[#allocation2 + $0xc] sm:$0x3]  ;;  %v1389_v21 = vld [vmem:[#allocation2 + $0x10] sm:$0x7] }
 0x136   : > { %v1397_v49 = vor.u32 %v1396_v44, %v1395_v43  ;;  %6763 = vmatpush3.bf16.msra.mxu1 %v7232_v27  ;;  %v807_v55 = vsel %vm765_vm4, %v8109_v56, %v8115_v58  ;;  %v6178_v54 = vcombine.low %v1388_v52, %v8490_v1  ;;  %v825_v3 = vpack.c.bf16 %v809_v53, %v808_v45  ;;  %v7237_v14 = vld [vmem:[%s10234_s2 + $0x208] sm:$0xff]   ;;  %v7241_v22 = vld [vmem:[%s10234_s2 + $0xa0] sm:$0xff]   ;;  %v7240_v8 = vld [vmem:[%s10234_s2 + $0x210] sm:$0xff]  }
 0x137   : > { %6764 = vmatprep.subr.bf16.mxu1 %v7236_v40  ;;  %v1195_v50 = vld [vmem:[#allocation2 + $0x20] sm:$0x2]  ;;  %v1206_v59 = vshrl.u32 %v1204_v47, 16  ;;  %v824_v7 = vpack.c.bf16 %v807_v55, %v806_v46  ;;  %v1421_v58 = vrot.slane %v8435_v0, 1  ;;  %v1224_v51 = vld [vmem:[#allocation2 + $0x24] sm:$0x1]  ;;  %v8537_v28 = vcombine.low %v8373_v25, %v1327_v9 }
 0x138   : > { %v1611_v61 = vrot.slane %v1397_v49, 5  ;;  %v1196_v13 = vsel %vm8155_vm0, %v6157_v42, %v1195_v50  ;;  %v8516_v48 = vshrl.u32 %v6178_v54, 16  ;;  %v8518_v56 = vshll.u32 %v6178_v54, 16  ;;  %v7242_v42 = vld [vmem:[%s10234_s2 + $0xe8] sm:$0xff]   ;;  %v1236_v57 = vld [vmem:[#allocation2 + $0x24] sm:$0x2] }
 0x139   : > { %v1170_v10 = vld [vmem:[#allocation2 + $0x1c] sm:$0x8]  ;;  %v1185_v15 = vld [vmem:[#allocation2 + $0x20] sm:$0x1]  ;;  %1197 = vst [vmem:[#allocation2 + $0x20] sm:$0x2] %v1196_v13  ;;  %v1209_v17 = vmax.bf16 %v1206_v59, %v1204_v47  ;;  %v1262_v20 = vmax.bf16 %v825_v3, %v824_v7  ;;  %v1422_v2 = vor.u32 %v1421_v58, %v8433_v62  ;;  %v8550_v41 = vcombine.low %v1388_v52, %v1389_v21 }
 0x13a   : > { %v1171_v63 = vsel %vm8186_vm1, %v1168_v26, %v1170_v10  ;;  %v1678_v18 = vsel %vm1659_vm11, %v1362_v39, %v1611_v61  ;;  %6765 = vmatpush3.bf16.msra.mxu1 %v7238_v38  ;;  %v1186_v23 = vsel %vm8218_vm8, %v1182_v16, %v1185_v15  ;;  %v1452_v26 = vrot.slane %v8518_v56, 1  ;;  %v1259_v16 = vld [vmem:[#allocation2 + $0x24] sm:$0x8]  ;;  %v1251_v25 = vld [vmem:[#allocation2 + $0x24] sm:$0x4]  ;;  %v7244_v49 = vld [vmem:[%s10234_s2 + $0xa8] sm:$0xff]  }
 0x13b   : > { %1172 = vst [vmem:[#allocation2 + $0x1c] sm:$0x8] %v1171_v63  ;;  %2541 = vmatmul.mubr.bf16.vlgmr.msra.gmra.mrb[0].mxu0 %v1678_v18  ;;  %6766 = vmatprep.subr.bf16.mxu1 %v7239_v11  ;;  %1187 = vst [vmem:[#allocation2 + $0x20] sm:$0x1] %v1186_v23  ;;  %v8542_v60 = vcombine.low %v1209_v17, %v1209_v17  ;;  %v8544_v27 = vcombine.high %v1209_v17, %v1209_v17  ;;  %v1264_v30 = vshrl.u32 %v1262_v20, 16  ;;  %v7770_v31 = vld [vmem:[%s10234_s2 + $0x200] sm:$0xff]  }
 0x13c   : > { %7048 = vmatpush3.bf16.msra.mxu0 %v7770_v31  ;;  %v1278_v32 = vld [vmem:[#allocation2 + $0x28] sm:$0x2]  ;;  %v1453_v34 = vor.u32 %v1452_v26, %v8516_v48  ;;  %v1616_v40 = vrot.slane %v1422_v2, 2  ;;  %v1372_v39 = vrot.slane %v8537_v28, 2  ;;  %v1218_v45 = vld [vmem:[#allocation2 + $0x20] sm:$0x8]  ;;  %v8575_v61 = vcombine.low %v8490_v1, %v8490_v1 }
 0x13d   : > { %7049 = vmatprep.subr.bf16.mxu0 %v7237_v14  ;;  %v1214_v43 = vshll.u32 %v8542_v60, 16  ;;  %v6160_v44 = vrot.slane %v8542_v60, 9  ;;  %v6162_v47 = vrot.slane %v8542_v60, 10  ;;  %v1249_v52 = vrot.slane %v8544_v27, 7  ;;  %v7246_v55 = vld [vmem:[%s10234_s2 + $0xf0] sm:$0xff]   ;;  %v7243_v1 = vld [vmem:[%s10234_s2 + $0x218] sm:$0xff]  }
 0x13e   : > { %6767 = vmatpush3.bf16.msra.mxu1 %v7241_v22  ;;  %v1260_v38 = vsel %vm8129_vm13, %v8544_v27, %v1259_v16  ;;  %v1267_v46 = vmax.bf16 %v1264_v30, %v1262_v20  ;;  %v1625_v53 = vrot.slane %v1453_v34, 7  ;;  %v1275_v59 = vld [vmem:[#allocation2 + $0x28] sm:$0x1]  ;;  %v8577_v3 = vld [vmem:[#allocation2 + $0x14] sm:$0xf]  ;;  %v1242_v9 = vshll.u32 %v8544_v27, 16 }
 0x13f   : > { %6768 = vmatprep.subr.bf16.mxu1 %v7242_v42  ;;  %v1216_v54 = vrot.slane %v1214_v43, 5  ;;  %v1225_v11 = vsel %vm8139_vm15, %v6160_v44, %v1224_v51  ;;  %v1237_v50 = vsel %vm8172_vm12, %v6162_v47, %v1236_v57  ;;  %1261 = vst [vmem:[#allocation2 + $0x24] sm:$0x8] %v1260_v38  ;;  %v1420_v7 = vld [vmem:[#allocation2 + $0x14] sm:$0xe]  ;;  %v1252_v10 = vsel %vm8134_vm14, %v1249_v52, %v1251_v25  ;;  %v7254_v57 = vld [vmem:[%s10234_s2 + $0xf8] sm:$0xff]  }
 0x140   : > { %7050 = vmatpush3.bf16.msra.mxu0 %v7237_v14  ;;  %1226 = vst [vmem:[#allocation2 + $0x24] sm:$0x1] %v1225_v11  ;;  %1238 = vst [vmem:[#allocation2 + $0x24] sm:$0x2] %v1237_v50  ;;  %v6164_v13 = vcombine.low %v1267_v46, %v1267_v46  ;;  %v1279_v58 = vsel %vm8172_vm12, %v1267_v46, %v1278_v32  ;;  %v1290_v63 = vld [vmem:[#allocation2 + $0x28] sm:$0x4]  ;;  %v8589_v17 = vcombine.high %v1267_v46, %v1267_v46 }
 0x141   : > { %v1305_v15 = vld [vmem:[#allocation2 + $0x28] sm:$0x8]  ;;  %7051 = vmatprep.subr.bf16.mxu0 %v7240_v8  ;;  %v1219_v14 = vsel %vm8186_vm1, %v1216_v54, %v1218_v45  ;;  %1253 = vst [vmem:[#allocation2 + $0x24] sm:$0x4] %v1252_v10  ;;  %1280 = vst [vmem:[#allocation2 + $0x28] sm:$0x2] %v1279_v58  ;;  %v1701_v20 = vsel %vm1659_vm11, %v1616_v40, %v1625_v53 }
 0x142   : > { %v1316_v18 = vld [vmem:[#allocation2 + $0x2c] sm:$0x1]  ;;  %v6201_v21 = vrot.slane %v8550_v41, 7  ;;  %v1419_v22 = vld [vmem:[#allocation2 + $0x18] sm:$0x1]  ;;  %6769 = vmatpush3.bf16.msra.mxu1 %v7244_v49  ;;  %v7250_v23 = vld [vmem:[%s10234_s2 + $0xb0] sm:$0xff]   ;;  %2418 = vmatprep.mubr.bf16.mxu1 %v1701_v20 }
 0x143   : > { %1220 = vst [vmem:[#allocation2 + $0x20] sm:$0x8] %v1219_v14  ;;  %v1272_v51 = vshll.u32 %v6164_v13, 16  ;;  %v6166_v2 = vrot.slane %v6164_v13, 9  ;;  %v6181_v26 = vcombine.low %v8577_v3, %v1419_v22  ;;  %v8597_v42 = vcombine.low %v1420_v7, %v1419_v22  ;;  %v1448_v60 = vld [vmem:[#allocation2 + $0x18] sm:$0xe]  ;;  %6770 = vmatprep.subr.bf16.mxu1 %v7246_v55 }
 0x144   : > { %v6161_v16 = vrot.slane %v1214_v43, 10  ;;  %v1303_v30 = vrot.slane %v8589_v17, 6  ;;  %v6168_v31 = vrot.slane %v8589_v17, 11  ;;  %v8605_v25 = vsel %vm1659_vm11, %v1372_v39, %v6201_v21  ;;  %v1450_v32 = vld [vmem:[#allocation2 + $0x1c] sm:$0x3]  ;;  %7052 = vmatpush3.bf16.msra.mxu0 %v7240_v8  ;;  %v7247_v34 = vld [vmem:[%s10234_s2 + $0x220] sm:$0xff]  }
 0x145   : > { %v1244_v40 = vrot.slane %v1242_v9, 7  ;;  %v1276_v44 = vsel %vm8218_vm8, %v1272_v51, %v1275_v59  ;;  %v1291_v43 = vsel %vm8134_vm14, %v6166_v2, %v1290_v63  ;;  %2419 = vmatmul.mubr.bf16.gmra.mrb[36].mxu1 %v8605_v25  ;;  %v6210_v47 = vrot.slane %v8597_v42, 13  ;;  %v1449_v39 = vld [vmem:[#allocation2 + $0x1c] sm:$0x1]  ;;  %v1451_v49 = vld [vmem:[#allocation2 + $0x18] sm:$0xc]  ;;  %7053 = vmatprep.subr.bf16.mxu0 %v7243_v1 }
 0x146   : > { %1277 = vst [vmem:[#allocation2 + $0x28] sm:$0x1] %v1276_v44  ;;  %v6165_v8 = vrot.slane %v1272_v51, 9  ;;  %1292 = vst [vmem:[#allocation2 + $0x28] sm:$0x4] %v1291_v43  ;;  %v1296_v45 = vshll.u32 %v8589_v17, 16  ;;  %v1306_v52 = vsel %vm8129_vm13, %v1303_v30, %v1305_v15  ;;  %v1317_v38 = vsel %vm8139_vm15, %v6168_v31, %v1316_v18  ;;  %6771 = vmatpush3.bf16.msra.mxu1 %v7250_v23 }
 0x147   : > { %v7256_v46 = vld [vmem:[%s10234_s2 + $0xb8] sm:$0xff]   ;;  %1307 = vst [vmem:[#allocation2 + $0x28] sm:$0x8] %v1306_v52  ;;  %1318 = vst [vmem:[#allocation2 + $0x2c] sm:$0x1] %v1317_v38  ;;  %v1717_v53 = vsel %vm1659_vm11, %v8575_v61, %v6210_v47  ;;  %v1425_v55 = vrot.slane %v8516_v48, 1  ;;  %6772 = vmatprep.subr.bf16.mxu1 %v7254_v57  ;;  %v6184_v15 = vcombine.low %v1448_v60, %v1450_v32 }
 0x148   : > { %v1426_v54 = vrot.slane %v8518_v56, 2  ;;  %v8630_v11 = vshrl.u32 %v6181_v26, 16  ;;  %v8632_v50 = vld [vmem:[#allocation2 + $0x1c] sm:$0xc]  ;;  %v1483_v59 = vld [vmem:[#allocation2 + $0x20] sm:$0x7]  ;;  %2548 = vmatprep.mubr.bf16.mxu0 %v1717_v53  ;;  %v8639_v14 = vcombine.low %v1448_v60, %v1449_v39  ;;  %v8641_v17 = vcombine.low %v1451_v49, %v1450_v32  ;;  %7054 = vmatpush3.bf16.msra.mxu0 %v7243_v1 }
 0x149   : > { %v1484_v7 = vld [vmem:[#allocation2 + $0x1c] sm:$0x8]  ;;  %v7257_v10 = vld [vmem:[%s10234_s2 + $0x1c0] sm:$0xff]   ;;  %v8637_v63 = vshll.u32 %v6181_v26, 16  ;;  %v1284_v22 = vld [vmem:[#allocation2 + $0x28] sm:$0x2]  ;;  %7055 = vmatprep.subr.bf16.mxu0 %v7247_v34 }
 0x14a   : > { %v1230_v13 = vld [vmem:[#allocation2 + $0x24] sm:$0x1]  ;;  %v1246_v58 = vld [vmem:[#allocation2 + $0x24] sm:$0x2]  ;;  %v1255_v21 = vld [vmem:[#allocation2 + $0x24] sm:$0x4]  ;;  %v1427_v23 = vor.u32 %v1426_v54, %v1425_v55  ;;  %v1285_v26 = vsel %vm8155_vm0, %v6165_v8, %v1284_v22  ;;  %6773 = vmatpush3.bf16.msra.mxu1 %v7256_v46 }
 0x14b   : > { %v1231_v18 = vsel %vm8218_vm8, %v6161_v16, %v1230_v13  ;;  %v1247_v20 = vsel %vm8155_vm0, %v1244_v40, %v1246_v58  ;;  %v1456_v51 = vrot.slane %v8630_v11, 5  ;;  %v7255_v2 = vld [vmem:[%s10234_s2 + $0x228] sm:$0xff]   ;;  %v1256_v1 = vsel %vm8180_vm7, %v1242_v9, %v1255_v21  ;;  %1286 = vst [vmem:[#allocation2 + $0x28] sm:$0x2] %v1285_v26  ;;  %6838 = vmatprep.subr.bf16.mxu1 %v7257_v10  ;;  %v7258_v44 = vld [vmem:[%s10234_s2 + $0x230] sm:$0xff]   ;;  %v7263_v21 = vld [vmem:[%s10234_s2 + $0x238] sm:$0xff]  }
 0x14c   : > { %1232 = vst [vmem:[#allocation2 + $0x24] sm:$0x1] %v1231_v18  ;;  %1248 = vst [vmem:[#allocation2 + $0x24] sm:$0x2] %v1247_v20  ;;  %v1298_v60 = vrot.slane %v1296_v45, 6  ;;  %v1457_v57 = vrot.slane %v8637_v63, 6  ;;  %v6187_v40 = vcombine.low %v8632_v50, %v1483_v59  ;;  %v8663_v9 = vcombine.low %v1484_v7, %v1483_v59  ;;  %7056 = vmatpush3.bf16.msra.mxu0 %v7247_v34 }
 0x14d   : > { %1257 = vst [vmem:[#allocation2 + $0x24] sm:$0x4] %v1256_v1  ;;  %v1308_v16 = vrot.slane %v1296_v45, 7  ;;  %v8658_v30 = vshrl.u32 %v6184_v15, 16  ;;  %v8660_v31 = vshll.u32 %v6184_v15, 16  ;;  %v1619_v27 = vrot.slane %v1427_v23, 2  ;;  %7057 = vmatprep.subr.bf16.mxu0 %v7255_v2 }
 0x14e   : > { %v1458_v32 = vor.u32 %v1457_v57, %v1456_v51  ;;  %v1300_v43 = vld [vmem:[#allocation2 + $0x28] sm:$0x4]  ;;  %v1485_v47 = vrot.slane %v8637_v63, 1  ;;  %v1633_v49 = vrot.slane %v8639_v14, 5  ;;  %v1492_v8 = vrot.slane %v8641_v17, 2 }
 0x14f   : > { %v1517_v39 = vrot.slane %v8660_v31, 1  ;;  %v1301_v45 = vsel %vm8180_vm7, %v1298_v60, %v1300_v43  ;;  %v1310_v52 = vld [vmem:[#allocation2 + $0x28] sm:$0x8]  ;;  %v8674_v34 = vshrl.u32 %v6187_v40, 16  ;;  %v8676_v46 = vshll.u32 %v6187_v40, 16 }
 0x150   : > { %v1628_v38 = vrot.slane %v1458_v32, 7  ;;  %1302 = vst [vmem:[#allocation2 + $0x28] sm:$0x4] %v1301_v45  ;;  %v1311_v53 = vsel %vm8186_vm1, %v1308_v16, %v1310_v52  ;;  %v6215_v54 = vrot.slane %v8663_v9, 7  ;;  %v1489_v59 = vrot.slane %v8658_v30, 1  ;;  %7058 = vmatpush3.bf16.msra.mxu0 %v7255_v2 }
 0x151   : > { %v1518_v55 = vor.u32 %v1517_v39, %v8658_v30  ;;  %1312 = vst [vmem:[#allocation2 + $0x28] sm:$0x8] %v1311_v53  ;;  %v1490_v10 = vrot.slane %v8660_v31, 2  ;;  %v1521_v13 = vrot.slane %v8674_v34, 1  ;;  %v1522_v58 = vrot.slane %v8676_v46, 2  ;;  %7059 = vmatprep.subr.bf16.mxu0 %v7258_v44 }
 0x152   : > { %v1713_v7 = vsel %vm1659_vm11, %v1619_v27, %v1628_v38  ;;  %v1486_v15 = vor.u32 %v1485_v47, %v8630_v11  ;;  %v1753_v20 = vsel %vm1659_vm11, %v1492_v8, %v6215_v54  ;;  %v1514_v23 = vld [vmem:[#allocation2 + $0x20] sm:$0x8]  ;;  %v1547_v2 = vrot.slane %v8676_v46, 1  ;;  %v1482_v27 = vld [vmem:[#allocation2 + $0x20] sm:$0x3] }
 0x153   : > { %2549 = vmatmul.mubr.bf16.gmra.mrb[4].mxu0 %v1713_v7  ;;  %v1634_v18 = vrot.slane %v1518_v55, 5  ;;  %v1523_v22 = vor.u32 %v1522_v58, %v1521_v13  ;;  %v1733_v57 = vsel %vm1659_vm11, %v8577_v3, %v1633_v49  ;;  %v1491_v16 = vor.u32 %v1490_v10, %v1489_v59  ;;  %v1545_v47 = vld [vmem:[#allocation2 + $0x2c] sm:$0x1] }
 0x154   : > { %2556 = vmatprep.mubr.bf16.mxu0 %v1753_v20  ;;  %v1516_v51 = vld [vmem:[#allocation2 + $0x24] sm:$0xf]  ;;  %7060 = vmatpush3.bf16.msra.mxu0 %v7258_v44  ;;  %v1548_v45 = vor.u32 %v1547_v2, %v8674_v34  ;;  %v8706_v49 = vcombine.low %v8632_v50, %v1482_v27 }
 0x155   : > { %v1737_v1 = vsel %vm1659_vm11, %v1486_v15, %v1634_v18  ;;  %v6190_v26 = vcombine.low %v1514_v23, %v1516_v51  ;;  %v1515_v60 = vld [vmem:[#allocation2 + $0x24] sm:$0x7]  ;;  %v1637_v32 = vrot.slane %v1523_v22, 5  ;;  %7061 = vmatprep.subr.bf16.mxu0 %v7263_v21  ;;  %v6191_v10 = vcombine.low %v1516_v51, %v1516_v51 }
 0x156   : > { %2426 = vmatprep.mubr.bf16.mxu1 %v1737_v1  ;;  %v8701_v8 = vcombine.low %v1514_v23, %v1515_v60  ;;  %v1642_v18 = vrot.slane %v1548_v45, 2  ;;  %v1498_v22 = vrot.slane %v8706_v49, 2  ;;  %v6199_v23 = vrot.slane %v8537_v28, 6  ;;  %v1321_v1 = vld [vmem:[#allocation2] sm:$0xe] }
 0x157   : > { %2427 = vmatmul.mubr.bf16.gmra.mrb[40].mxu1 %v1733_v57  ;;  %v8696_v40 = vshrl.u32 %v6190_v26, 16  ;;  %v8698_v43 = vshll.u32 %v6190_v26, 16  ;;  %v1749_v39 = vsel %vm1659_vm11, %v1491_v16, %v1637_v32  ;;  %v1351_v57 = vrot.slane %v8356_v33, 1  ;;  %v7771_v32 = vld [vmem:[#allocation2 + $0x4] sm:$0x1] }
 0x158   : > { %v8708_v38 = vld [vmem:[#allocation2 + $0x28] sm:$0xf]  ;;  %7062 = vmatpush3.bf16.msra.mxu0 %v7263_v21  ;;  %v6216_v50 = vrot.slane %v8701_v8, 7  ;;  %v6170_v27 = vcombine.low %v1321_v1, %v7771_v32  ;;  %v1387_v33 = vrot.slane %v8418_v36, 3  ;;  %v7265_v1 = vld [vmem:[%s10234_s2 + $0x1d0] sm:$0xff]  }
 0x159   : > { %v1578_v52 = vrot.slane %v8698_v43, 1  ;;  %v1546_v44 = vld [vmem:[#allocation2 + $0x28] sm:$0xe]  ;;  %v8711_v53 = vcombine.low %v8708_v38, %v1545_v47  ;;  %v1551_v54 = vrot.slane %v8696_v40, 1  ;;  %v1552_v59 = vrot.slane %v8698_v43, 2 }
 0x15a   : > { %v8713_v55 = vcombine.low %v1546_v44, %v1545_v47  ;;  %v8732_v16 = vsel %vm1659_vm11, %v1498_v22, %v6216_v50  ;;  %v1674_v47 = vsel %vm1659_vm11, %v1351_v57, %v6199_v23  ;;  %v1382_v44 = vrot.slane %v8435_v0, 3  ;;  %v7260_v0 = vld [vmem:[%s10234_s2 + $0x180] sm:$0xff]   ;;  %v7262_v36 = vld [vmem:[%s10234_s2 + $0x1c8] sm:$0xff]   ;;  %v7266_v57 = vld [vmem:[%s10234_s2 + $0x190] sm:$0xff]  }
 0x15b   : > { %2557 = vmatmul.mubr.bf16.gmra.mrb[8].mxu0 %v1749_v39  ;;  %v1579_v7 = vor.u32 %v1578_v52, %v8696_v40  ;;  %v1563_v58 = vshrl.u32 %v8711_v53, 16  ;;  %v1566_v15 = vshll.u32 %v8711_v53, 16  ;;  %v1553_v26 = vor.u32 %v1552_v59, %v1551_v54  ;;  %v1577_v22 = vld [vmem:[#allocation2 + $0x2c] sm:$0xc] }
 0x15c   : > { %v6225_v13 = vrot.slane %v8713_v55, 13  ;;  %v1379_v39 = vrot.slane %v8433_v62, 2  ;;  %v6198_v54 = vrot.slane %v8402_v24, 6  ;;  %v8747_v62 = vcombine.low %v8577_v3, %v8577_v3  ;;  %v8760_v3 = vld [vmem:[#allocation2 + $0x30] sm:$0x3] }
 0x15d   : > { %v1651_v20 = vrot.slane %v1579_v7, 7  ;;  %v1582_v51 = vrot.slane %v1563_v58, 5  ;;  %v1583_v2 = vrot.slane %v1566_v15, 6  ;;  %v1645_v45 = vrot.slane %v1553_v26, 2 }
 0x15e   : > { %v1788_v21 = vsel %vm1659_vm11, %v6191_v10, %v6225_v13  ;;  %v1345_v7 = vrot.slane %v6170_v27, 1  ;;  %v8741_v50 = vor.u32 %v1382_v44, %v1379_v39  ;;  %v1694_v13 = vsel %vm1659_vm11, %v1387_v33, %v8575_v61 }
 0x15f   : > { %v1772_v60 = vsel %vm1659_vm11, %v1642_v18, %v1651_v20  ;;  %2564 = vmatprep.mubr.bf16.mxu0 %v1788_v21  ;;  %v1584_v28 = vor.u32 %v1583_v2, %v1582_v51  ;;  %v6204_v24 = vrot.slane %v8550_v41, 3  ;;  %v6212_v20 = vrot.slane %v8641_v17, 14  ;;  %v7264_v41 = vld [vmem:[%s10234_s2 + $0x188] sm:$0xff]  }
 0x160   : > { %2434 = vmatprep.mubr.bf16.mxu1 %v1772_v60  ;;  %v1670_v18 = vsel %vm1659_vm11, %v1345_v7, %v6198_v54  ;;  %v6207_v23 = vrot.slane %v8597_v42, 9  ;;  %v1513_v21 = vrot.slane %v8663_v9, 3  ;;  %v6197_v51 = vcombine.low %v1577_v22, %v8760_v3  ;;  %v7267_v9 = vld [vmem:[%s10234_s2 + $0x1d8] sm:$0xff]   ;;  %v7272_v54 = vld [vmem:[%s10234_s2 + $0x1a0] sm:$0xff]  }
 0x161   : > { %2435 = vmatmul.mubr.bf16.gmra.mrb[44].mxu1 %v8732_v16  ;;  %v1654_v52 = vrot.slane %v1584_v28, 7  ;;  %v1709_v61 = vsel %vm1659_vm11, %v6204_v24, %v8747_v62  ;;  %v6214_v60 = vrot.slane %v8706_v49, 6  ;;  %v1488_v28 = vrot.slane %v8639_v14, 1  ;;  %v7268_v49 = vld [vmem:[%s10234_s2 + $0x198] sm:$0xff]   ;;  %v7277_v24 = vld [vmem:[%s10234_s2 + $0x1b0] sm:$0xff]  }
 0x162   : > { %2475 = vmatprep.mubr.bf16.mxu1 %v1674_v47  ;;  %v1729_v26 = vsel %vm1659_vm11, %v6207_v23, %v6212_v20  ;;  %v1765_v2 = vsel %vm1659_vm11, %v1513_v21, %v6191_v10  ;;  %v6222_v32 = vrot.slane %v8713_v55, 9  ;;  %v6227_v27 = vrot.slane %v6197_v51, 14  ;;  %v7269_v47 = vld [vmem:[%s10234_s2 + $0x1e0] sm:$0xff]  }
 0x163   : > { %v1784_v59 = vsel %vm1659_vm11, %v1645_v45, %v1654_v52  ;;  %v1745_v10 = vsel %vm1659_vm11, %v1488_v28, %v6214_v60  ;;  %v6213_v45 = vrot.slane %v8641_v17, 6  ;;  %v8793_v55 = vcombine.low %v8708_v38, %v8708_v38  ;;  %v7274_v17 = vld [vmem:[%s10234_s2 + $0x1e8] sm:$0xff]  }
 0x164   : > { %2565 = vmatmul.mubr.bf16.gmra.mrb[12].mxu0 %v1784_v59  ;;  %v1800_v39 = vsel %vm1659_vm11, %v6222_v32, %v6227_v27  ;;  %v1411_v52 = vrot.slane %v8516_v48, 2  ;;  %v1414_v44 = vrot.slane %v8518_v56, 3  ;;  %v1487_v33 = vrot.slane %v8597_v42, 1  ;;  %v7275_v42 = vld [vmem:[%s10234_s2 + $0x1a8] sm:$0xff]  }
 0x165   : > { %7063 = vmatprep.mubr.bf16.mxu0 %v1694_v13  ;;  %v6219_v59 = vrot.slane %v8701_v8, 3  ;;  %v7276_v8 = vld [vmem:[%s10234_s2 + $0x1f0] sm:$0xff]   ;;  %v1442_v20 = vrot.slane %v8637_v63, 7  ;;  %v1540_v63 = vrot.slane %v8698_v43, 3  ;;  %v1505_v60 = vrot.slane %v8674_v34, 2 }
 0x166   : > { %v1741_v38 = vsel %vm1659_vm11, %v1487_v33, %v6213_v45  ;;  %v1415_v56 = vor.u32 %v1414_v44, %v1411_v52  ;;  %v1568_v28 = vrot.slane %v1566_v15, 7 }
 0x167   : > { %v1780_v48 = vsel %vm1659_vm11, %v6219_v59, %v8793_v55 }
 0x168   : > { %v1614_v7 = vrot.slane %v1415_v56, 5 }
 0x169   : > { %2476 = vmatmul.mubr.bf16.vlgmr.msra.gmra.mrb[48].mxu1 %v1670_v18  ;;  %v1439_v18 = vrot.slane %v8630_v11, 6  ;;  %v1537_v11 = vrot.slane %v8696_v40, 2  ;;  %v1565_v40 = vrot.slane %v1563_v58, 6 }
 0x16a   : > { %6839 = vmatpush3.bf16.msra.mxu1 %v7260_v0  ;;  %2483 = vmatprep.mubr.bf16.mxu1 %v1709_v61  ;;  %v1475_v0 = vrot.slane %v8660_v31, 7  ;;  %v7279_v31 = vld [vmem:[%s10234_s2 + $0x1b8] sm:$0xff]  }
 0x16b   : > { %6840 = vmatprep.subr.bf16.mxu1 %v7262_v36  ;;  %v7278_v36 = vld [vmem:[%s10234_s2 + $0x1f8] sm:$0xff]   ;;  %v1443_v22 = vor.u32 %v1442_v20, %v1439_v18  ;;  %v7289_v18 = vld [vmem:[%s10235_s3 + $0xd0] sm:$0xff]  }
 0x16c   : > { %7064 = vmatmul.mubr.bf16.vlgmr.msra.gmra.mrb[16].mxu0 %v1729_v26  ;;  %v1541_v26 = vor.u32 %v1540_v63, %v1537_v11  ;;  %v7293_v11 = vld [vmem:[%s10235_s3 + $0xd8] sm:$0xff]  }
 0x16d   : > { %7067 = vmatprep.mubr.bf16.mxu0 %v1765_v2  ;;  %v1622_v21 = vrot.slane %v1443_v22, 2 }
 0x16e   : > { %6841 = vmatpush3.bf16.msra.mxu1 %v7264_v41  ;;  %v1574_v41 = vld [vmem:[#allocation2 + $0x2c] sm:$0xe]  ;;  %v1640_v43 = vrot.slane %v1541_v26, 5  ;;  %v7296_v26 = vld [vmem:[%s10235_s3 + $0x18] sm:$0xff]  }
 0x16f   : > { %6842 = vmatprep.subr.bf16.mxu1 %v7265_v1  ;;  %v6196_v23 = vcombine.low %v1574_v41, %v8760_v3  ;;  %v6211_v3 = vrot.slane %v8639_v14, 13 }
 0x171   : > { %2484 = vmatmul.mubr.bf16.gmra.mrb[52].mxu1 %v1694_v13  ;;  %v1472_v13 = vrot.slane %v8658_v30, 6  ;;  %v1690_v30 = vsel %vm1659_vm11, %v8741_v50, %v1614_v7  ;;  %v1596_v51 = vshrl.u32 %v6196_v23, 16  ;;  %v1721_v27 = vsel %vm1659_vm11, %v8747_v62, %v6211_v3  ;;  %v7284_v7 = vld [vmem:[%s10235_s3] sm:$0xff]   ;;  %v7301_v3 = vld [vmem:[%s10235_s3 + $0xe8] sm:$0xff]  }
 0x172   : > { %6843 = vmatpush3.bf16.msra.mxu1 %v7266_v57  ;;  %2491 = vmatprep.mubr.bf16.mxu1 %v1745_v10  ;;  %v1508_v57 = vrot.slane %v8676_v46, 3  ;;  %v1569_v10 = vor.u32 %v1568_v28, %v1565_v40 }
 0x173   : > { %6844 = vmatprep.subr.bf16.mxu1 %v7267_v9  ;;  %v1476_v61 = vor.u32 %v1475_v0, %v1472_v13  ;;  %v7285_v13 = vld [vmem:[%s10235_s3 + $0xc8] sm:$0xff]  }
 0x174   : > { %7068 = vmatmul.mubr.bf16.gmra.mrb[20].mxu0 %v1800_v39  ;;  %v1509_v32 = vor.u32 %v1508_v57, %v1505_v60  ;;  %v1648_v14 = vrot.slane %v1569_v10, 2  ;;  %v7287_v0 = vld [vmem:[%s10235_s3 + $0x48] sm:$0xff]   ;;  %v7298_v60 = vld [vmem:[%s10235_s3 + $0xa0] sm:$0xff]   ;;  %v7305_v10 = vld [vmem:[%s10235_s3 + $0xf0] sm:$0xff]  }
 0x175   : > { %v1631_v1 = vrot.slane %v1476_v61, 7  ;;  %v7300_v57 = vld [vmem:[%s10235_s3 + $0x20] sm:$0xff]  }
 0x176   : > { %6845 = vmatpush3.bf16.msra.mxu1 %v7268_v49  ;;  %v1761_v34 = vsel %vm1659_vm11, %v1509_v32, %v1640_v43  ;;  %v7303_v43 = vld [vmem:[%s10235_s3 + $0x68] sm:$0xff]  }
 0x177   : > { %6846 = vmatprep.subr.bf16.mxu1 %v7269_v47  ;;  %v1725_v50 = vsel %vm1659_vm11, %v1622_v21, %v1631_v1  ;;  %v1575_v47 = vld [vmem:[#allocation2 + $0x30] sm:$0x1]  ;;  %v7295_v21 = vld [vmem:[%s10235_s3 + $0x58] sm:$0xff]   ;;  %v7302_v32 = vld [vmem:[%s10235_s3 + $0xa8] sm:$0xff]  }
 0x178   : > { %v6195_v58 = vcombine.low %v1574_v41, %v1575_v47  ;;  %v7290_v41 = vld [vmem:[%s10235_s3 + $0x90] sm:$0xff]  }
 0x179   : > { %2492 = vmatmul.mubr.bf16.gmra.mrb[56].mxu1 %v1741_v38  ;;  %v7292_v1 = vld [vmem:[%s10235_s3 + $0x10] sm:$0xff]  }
 0x17a   : > { %6847 = vmatpush3.bf16.msra.mxu1 %v7272_v54  ;;  %2499 = vmatprep.mubr.bf16.mxu1 %v1780_v48  ;;  %v6226_v15 = vrot.slane %v6195_v58, 13 }
 0x17b   : > { %6848 = vmatprep.subr.bf16.mxu1 %v7274_v17 }
 0x17c   : > { %v1792_v39 = vsel %vm1659_vm11, %v8793_v55, %v6226_v15  ;;  %v7281_v55 = vld [vmem:[%s10235_s3 + $0xc0] sm:$0xff]   ;;  %v7306_v15 = vld [vmem:[%s10235_s3 + $0xb0] sm:$0xff]  }
 0x17d   : > { %6912 = vmatprep.subr.bf16.mxu0 %v7281_v55  ;;  %v7310_v55 = vld [vmem:[%s10235_s3 + $0xb8] sm:$0xff]  }
 0x17e   : > { %6849 = vmatpush3.bf16.msra.mxu1 %v7275_v42  ;;  %v7282_v42 = vld [vmem:[%s10235_s3 + $0x80] sm:$0xff]  }
 0x17f   : > { %6850 = vmatprep.subr.bf16.mxu1 %v7276_v8  ;;  %v7283_v8 = vld [vmem:[%s10235_s3 + $0x40] sm:$0xff]   ;;  %6913 = vmatpush3.bf16.msra.mxu0 %v7282_v42 }
 0x180   : > { %6914 = vmatprep.subr.bf16.mxu0 %v7285_v13 }
 0x181   : > { %2500 = vmatmul.mubr.bf16.gmra.mrb[60].mxu1 %v1765_v2  ;;  %v1599_v2 = vshll.u32 %v6196_v23, 16 }
 0x182   : > { %6851 = vmatpush3.bf16.msra.mxu1 %v7277_v24  ;;  %2605 = vmatprep.mubr.bf16.mxu1 %v1690_v30  ;;  %v7286_v24 = vld [vmem:[%s10235_s3 + $0x88] sm:$0xff]   ;;  %v7291_v30 = vld [vmem:[%s10235_s3 + $0x50] sm:$0xff]  }
 0x183   : > { %6852 = vmatprep.subr.bf16.mxu1 %v7278_v36  ;;  %v1601_v9 = vrot.slane %v1599_v2, 7  ;;  %v7288_v36 = vld [vmem:[%s10235_s3 + $0x8] sm:$0xff]   ;;  %6915 = vmatpush3.bf16.msra.mxu0 %v7286_v24  ;;  %v7299_v2 = vld [vmem:[%s10235_s3 + $0x60] sm:$0xff]  }
 0x184   : > { %6916 = vmatprep.subr.bf16.mxu0 %v7289_v18 }
 0x186   : > { %6853 = vmatpush3.bf16.msra.mxu1 %v7279_v31 }
 0x187   : > { %6890 = vmatprep.subr.bf16.mxu1 %v7283_v8  ;;  %6917 = vmatpush3.bf16.msra.mxu0 %v7290_v41  ;;  %v7312_v8 = vld [vmem:[%s10235_s3 + $0x38] sm:$0xff]  }
 0x188   : > { %6918 = vmatprep.subr.bf16.mxu0 %v7293_v11 }
 0x189   : > { %2606 = vmatmul.mubr.bf16.vlgmr.msra.gmra.mrb[64].mxu1 %v8605_v25  ;;  %v1598_v25 = vrot.slane %v1596_v51, 6  ;;  %v7297_v51 = vld [vmem:[%s10235_s3 + $0xe0] sm:$0xff]  }
 0x18a   : > { %2613 = vmatprep.mubr.bf16.mxu1 %v1725_v50  ;;  %6891 = vmatpush3.bf16.msra.mxu1 %v7284_v7  ;;  %v7294_v50 = vld [vmem:[%s10235_s3 + $0x98] sm:$0xff]   ;;  %v7319_v7 = vld [vmem:[%s10235_s3 + $0x1c0] sm:$0xff]  }
 0x18b   : > { %v1602_v46 = vor.u32 %v1601_v9, %v1598_v25  ;;  %6892 = vmatprep.subr.bf16.mxu1 %v7287_v0  ;;  %6919 = vmatpush3.bf16.msra.mxu0 %v7294_v50  ;;  %v7327_v0 = vld [vmem:[%s10235_s3 + $0x140] sm:$0xff]  }
 0x18c   : > { %6920 = vmatprep.subr.bf16.mxu0 %v7297_v51 }
 0x18d   : > { %v1657_v49 = vrot.slane %v1602_v46, 7 }
 0x18e   : > { %6893 = vmatpush3.bf16.msra.mxu1 %v7288_v36 }
 0x18f   : > { %v1796_v53 = vsel %vm1659_vm11, %v1648_v14, %v1657_v49  ;;  %6894 = vmatprep.subr.bf16.mxu1 %v7291_v30  ;;  %6921 = vmatpush3.bf16.msra.mxu0 %v7298_v60  ;;  %v7307_v49 = vld [vmem:[%s10235_s3 + $0x70] sm:$0xff]  }
 0x190   : > { %6922 = vmatprep.subr.bf16.mxu0 %v7301_v3 }
 0x191   : > { %2614 = vmatmul.mubr.bf16.gmra.mrb[68].mxu1 %v1721_v27 }
 0x192   : > { %2621 = vmatprep.mubr.bf16.mxu1 %v1761_v34  ;;  %6895 = vmatpush3.bf16.msra.mxu1 %v7292_v1  ;;  %v7304_v34 = vld [vmem:[%s10235_s3 + $0x28] sm:$0xff]  }
 0x193   : > { %6896 = vmatprep.subr.bf16.mxu1 %v7295_v21  ;;  %6923 = vmatpush3.bf16.msra.mxu0 %v7302_v32 }
 0x194   : > { %6924 = vmatprep.subr.bf16.mxu0 %v7305_v10 }
 0x196   : > { %6897 = vmatpush3.bf16.msra.mxu1 %v7296_v26 }
 0x197   : > { %6898 = vmatprep.subr.bf16.mxu1 %v7299_v2  ;;  %6925 = vmatpush3.bf16.msra.mxu0 %v7306_v15 }
 0x199   : > { %2622 = vmatmul.mubr.bf16.gmra.mrb[72].mxu1 %v8732_v16 }
 0x19a   : > { %2629 = vmatprep.mubr.bf16.mxu1 %v1796_v53  ;;  %6899 = vmatpush3.bf16.msra.mxu1 %v7300_v57 }
 0x19b   : > { %6900 = vmatprep.subr.bf16.mxu1 %v7303_v43 }
 0x19e   : > { %6901 = vmatpush3.bf16.msra.mxu1 %v7304_v34 }
 0x19f   : > { %6902 = vmatprep.subr.bf16.mxu1 %v7307_v49 }
 0x1a1   : > { %2630 = vmatmul.mubr.bf16.gmra.mrb[76].mxu1 %v1792_v39 }
 0x1ff   : > { %v6734_v62 = vpop.f32.mrb[32].mxu1 }
 0x200   : > { %v6735_v45 = vpop.f32.mrb[33].mxu1 }
 0x201   : > { %v8848_v52 = vadd.f32 %v6735_v45, %v6734_v62  ;;  %v6737_v44 = vpop.f32.mrb[34].mxu1  ;;  %v7308_v62 = vld [vmem:[%s10235_s3 + $0x30] sm:$0xff]   ;;  %v7309_v45 = vld [vmem:[%s10235_s3 + $0xf8] sm:$0xff]  }
 0x202   : > { %v6738_v33 = vpop.f32.mrb[35].mxu1  ;;  %6903 = vmatpush3.bf16.msra.mxu1 %v7308_v62  ;;  %6926 = vmatprep.subr.bf16.mxu0 %v7309_v45 }
 0x203   : > { %v8850_v54 = vadd.f32 %v6738_v33, %v6737_v44  ;;  %6927 = vmatpush3.bf16.msra.mxu0 %v7310_v55 }
 0x204   : > { %6956 = vmatprep.subr.bf16.mxu0 %v7319_v7 }
 0x20e   : > { %v6814_v59 = vpop.f32.mrb[0].mxu0 }
 0x20f   : > { %v6815_v17 = vpop.f32.mrb[1].mxu0 }
 0x210   : > { %v8852_v38 = vadd.f32 %v6815_v17, %v6814_v59  ;;  %v6817_v16 = vpop.f32.mrb[2].mxu0  ;;  %v7311_v59 = vld [vmem:[%s10235_s3 + $0x78] sm:$0xff]  }
 0x211   : > { %v6818_v48 = vpop.f32.mrb[3].mxu0  ;;  %6904 = vmatprep.subr.bf16.mxu1 %v7311_v59 }
 0x212   : > { %v8854_v56 = vadd.f32 %v6818_v48, %v6817_v16  ;;  %6905 = vmatpush3.bf16.msra.mxu1 %v7312_v8 }
 0x213   : > { %6934 = vmatprep.subr.bf16.mxu1 %v7327_v0 }
 0x218   : > { %v6740_v20 = vpop.f32.mrb[36].mxu1 }
 0x219   : > { %v6741_v61 = vpop.f32.mrb[37].mxu1 }
 0x21a   : > { %v8886_v31 = vadd.f32 %v6741_v61, %v6740_v20  ;;  %v6743_v22 = vpop.f32.mrb[38].mxu1 }
 0x21b   : > { %v6744_v23 = vpop.f32.mrb[39].mxu1 }
 0x21c   : > { %v8897_v63 = vadd.f32 %v6744_v23, %v6743_v22 }
 0x226   : > { %v6820_v40 = vpop.f32.mrb[4].mxu0 }
 0x227   : > { %v6821_v28 = vpop.f32.mrb[5].mxu0 }
 0x228   : > { %v8926_v25 = vadd.f32 %v6821_v28, %v6820_v40  ;;  %v6823_v9 = vpop.f32.mrb[6].mxu0 }
 0x229   : > { %v6824_v27 = vpop.f32.mrb[7].mxu0 }
 0x22a   : > { %v8937_v46 = vadd.f32 %v6824_v27, %v6823_v9  ;;  %v6746_v14 = vpop.f32.mrb[40].mxu1 }
 0x22b   : > { %v6747_v47 = vpop.f32.mrb[41].mxu1 }
 0x22c   : > { %v8942_v58 = vadd.f32 %v6747_v47, %v6746_v14  ;;  %v6749_v53 = vpop.f32.mrb[42].mxu1 }
 0x22d   : > { %v6750_v39 = vpop.f32.mrb[43].mxu1 }
 0x22e   : > { %v8953_v44 = vadd.f32 %v6750_v39, %v6749_v53  ;;  %v6826_v33 = vpop.f32.mrb[8].mxu0 }
 0x22f   : > { %v6827_v17 = vpop.f32.mrb[9].mxu0 }
 0x230   : > { %v8958_v16 = vadd.f32 %v6827_v17, %v6826_v33  ;;  %v6829_v48 = vpop.f32.mrb[10].mxu0 }
 0x231   : > { %v6830_v42 = vpop.f32.mrb[11].mxu0 }
 0x232   : > { %v6831_v13 = vadd.f32 %v6830_v42, %v6829_v48 }
 0x234   : > { %v6752_v24 = vpop.f32.mrb[44].mxu1 }
 0x235   : > { %v6753_v36 = vpop.f32.mrb[45].mxu1 }
 0x236   : > { %v6754_v18 = vadd.f32 %v6753_v36, %v6752_v24  ;;  %v6755_v20 = vpop.f32.mrb[46].mxu1 }
 0x237   : > { %v6756_v30 = vpop.f32.mrb[47].mxu1  ;;  %v6832_v22 = vpop.f32.mrb[12].mxu0 }
 0x238   : > { %v6757_v61 = vadd.f32 %v6756_v30, %v6755_v20  ;;  %v6833_v41 = vpop.f32.mrb[13].mxu0 }
 0x239   : > { %v6834_v23 = vadd.f32 %v6833_v41, %v6832_v22  ;;  %v6835_v1 = vpop.f32.mrb[14].mxu0 }
 0x23a   : > { %v6836_v11 = vpop.f32.mrb[15].mxu0 }
 0x23b   : > { %v6837_v50 = vadd.f32 %v6836_v11, %v6835_v1 }
 0x23c   : > { %v6774_v21 = vpop.f32.mrb[48].mxu1 }
 0x23d   : > { %v6775_v26 = vpop.f32.mrb[49].mxu1 }
 0x23e   : > { %v6776_v51 = vadd.f32 %v6775_v26, %v6774_v21  ;;  %v6777_v2 = vpop.f32.mrb[50].mxu1 }
 0x23f   : > { %v6778_v60 = vpop.f32.mrb[51].mxu1  ;;  %v8973_v40 = vpop.f32.mrb[16].mxu0 }
 0x240   : > { %v2478_v57 = vadd.f32 %v6776_v51, %v8848_v52  ;;  %v6779_v3 = vadd.f32 %v6778_v60, %v6777_v2  ;;  %v2672_v43 = vpop.f32.mrb[17].mxu0 }
 0x241   : > { %v8976_v9 = vpop.f32.mrb[18].mxu0 }
 0x242   : > { %v2481_v28 = vadd.f32 %v6779_v3, %v8850_v54  ;;  %v2543_v32 = vadd.f32 %v8852_v38, %v2478_v57  ;;  %v2675_v27 = vpop.f32.mrb[19].mxu0 }
 0x244   : > { %v6780_v34 = vpop.f32.mrb[52].mxu1  ;;  %v2546_v10 = vadd.f32 %v8854_v56, %v2481_v28 }
 0x245   : > { %v6781_v14 = vpop.f32.mrb[53].mxu1 }
 0x246   : > { %v6782_v49 = vadd.f32 %v6781_v14, %v6780_v34  ;;  %v6783_v47 = vpop.f32.mrb[54].mxu1 }
 0x247   : > { %v6784_v53 = vpop.f32.mrb[55].mxu1  ;;  %v8981_v39 = vpop.f32.mrb[20].mxu0 }
 0x248   : > { %v2486_v52 = vadd.f32 %v6782_v49, %v8886_v31  ;;  %v6785_v15 = vadd.f32 %v6784_v53, %v6783_v47  ;;  %v8983_v62 = vpop.f32.mrb[21].mxu0 }
 0x249   : > { %v8986_v45 = vpop.f32.mrb[22].mxu0 }
 0x24a   : > { %v2489_v54 = vadd.f32 %v6785_v15, %v8897_v63  ;;  %v2551_v38 = vadd.f32 %v8926_v25, %v2486_v52  ;;  %v8989_v33 = vpop.f32.mrb[23].mxu0 }
 0x24c   : > { %v6786_v56 = vpop.f32.mrb[56].mxu1  ;;  %v2554_v59 = vadd.f32 %v8937_v46, %v2489_v54 }
 0x24d   : > { %v6787_v17 = vpop.f32.mrb[57].mxu1 }
 0x24e   : > { %v6788_v48 = vadd.f32 %v6787_v17, %v6786_v56  ;;  %v6789_v55 = vpop.f32.mrb[58].mxu1 }
 0x24f   : > { %v6790_v31 = vpop.f32.mrb[59].mxu1 }
 0x250   : > { %v2494_v42 = vadd.f32 %v6788_v48, %v8942_v58  ;;  %v6791_v8 = vadd.f32 %v6790_v31, %v6789_v55 }
 0x252   : > { %v2497_v7 = vadd.f32 %v6791_v8, %v8953_v44  ;;  %v2559_v63 = vadd.f32 %v8958_v16, %v2494_v42 }
 0x254   : > { %v6792_v0 = vpop.f32.mrb[60].mxu1  ;;  %v2562_v24 = vadd.f32 %v6831_v13, %v2497_v7  ;;  %v9002_v13 = vld [vmem:[%s10236_s4 + $0x1] ss:$0 sm:$0xff] }
 0x255   : > { %v6793_v36 = vpop.f32.mrb[61].mxu1 }
 0x256   : > { %v6794_v25 = vadd.f32 %v6793_v36, %v6792_v0  ;;  %v6795_v20 = vpop.f32.mrb[62].mxu1 }
 0x257   : > { %v6796_v30 = vpop.f32.mrb[63].mxu1 }
 0x258   : > { %v2502_v22 = vadd.f32 %v6794_v25, %v6754_v18  ;;  %v6797_v41 = vadd.f32 %v6796_v30, %v6795_v20  ;;  %v2766_v30 = vld [vmem:[#allocation3 + $0x4] sm:$0x1] }
 0x25a   : > { %v2505_v46 = vadd.f32 %v6797_v41, %v6757_v61  ;;  %v8995_v1 = vadd.f32 %v6834_v23, %v2502_v22  ;;  %v9008_v61 = vld [vmem:[%s10237_s5 + $0x1] ss:$0 sm:$0xff]  ;;  %v2778_v22 = vld [vmem:[#allocation3 + $0x4] sm:$0x2] }
 0x25b   : > { %v9013_v23 = vld [vmem:[%s10238_s6 + $0x1] ss:$0 sm:$0xff] }
 0x25c   : > { %v6854_v11 = vpop.f32.mrb[64].mxu1  ;;  %v8997_v21 = vadd.f32 %v6837_v50, %v2505_v46 }
 0x25d   : > { %v6855_v58 = vpop.f32.mrb[65].mxu1 }
 0x25e   : > { %v6856_v26 = vadd.f32 %v6855_v58, %v6854_v11  ;;  %v6857_v51 = vpop.f32.mrb[66].mxu1 }
 0x25f   : > { %v6858_v44 = vpop.f32.mrb[67].mxu1 }
 0x260   : > { %v2608_v2 = vadd.f32 %v6856_v26, %v2543_v32  ;;  %v6859_v16 = vadd.f32 %v6858_v44, %v6857_v51  ;;  %v2760_v51 = vld [vmem:[#allocation3] sm:$0x8] }
 0x262   : > { %v2673_v60 = vadd.f32 %v2672_v43, %v2608_v2  ;;  %v2611_v18 = vadd.f32 %v6859_v16, %v2546_v10 }
 0x264   : > { %vm2708_vm5 = vcmp.ge.f32.partialorder %v2673_v60, %v9002_v13  ;;  %v2676_v50 = vadd.f32 %v2675_v27, %v2611_v18  ;;  %v6860_v57 = vpop.f32.mrb[68].mxu1 }
 0x265   : > { %v6861_v3 = vpop.f32.mrb[69].mxu1  ;;  %v2726_v32 = vsel %vm2708_vm5, %v9008_v61, %v9013_v23 }
 0x266   : > { %vm2709_vm2 = vcmp.ge.f32.partialorder %v2676_v50, %v9002_v13  ;;  %v6862_v28 = vadd.f32 %v6861_v3, %v6860_v57  ;;  %v6863_v43 = vpop.f32.mrb[70].mxu1 }
 0x267   : > { %v2727_v34 = vsel %vm2709_vm2, %v9008_v61, %v9013_v23  ;;  %v6864_v10 = vpop.f32.mrb[71].mxu1 }
 0x268   : > { %v2734_v14 = vpack.c.bf16 %v2727_v34, %v2726_v32  ;;  %v2616_v49 = vadd.f32 %v6862_v28, %v2551_v38  ;;  %v6865_v47 = vadd.f32 %v6864_v10, %v6863_v43 }
 0x26a   : > { %v2744_v53 = vrot.slane %v2734_v14, 4  ;;  %v2681_v52 = vadd.f32 %v8973_v40, %v2616_v49  ;;  %v2619_v27 = vadd.f32 %v6865_v47, %v2554_v59 }
 0x26c   : > { %v2746_v15 = vmax.bf16 %v2744_v53, %v2734_v14  ;;  %vm2710_vm9 = vcmp.ge.f32.partialorder %v2681_v52, %v9002_v13  ;;  %v2684_v54 = vadd.f32 %v8976_v9, %v2619_v27  ;;  %v6866_v56 = vpop.f32.mrb[72].mxu1  ;;  %v2803_v52 = vld [vmem:[#allocation3 + $0x4] sm:$0x8] }
 0x26d   : > { %v6867_v17 = vpop.f32.mrb[73].mxu1  ;;  %v2728_v38 = vsel %vm2710_vm9, %v9008_v61, %v9013_v23 }
 0x26e   : > { %v2748_v48 = vshrl.u32 %v2746_v15, 16  ;;  %vm2711_vm10 = vcmp.ge.f32.partialorder %v2684_v54, %v9002_v13  ;;  %v6868_v55 = vadd.f32 %v6867_v17, %v6866_v56  ;;  %v6869_v31 = vpop.f32.mrb[74].mxu1  ;;  %v2814_v17 = vld [vmem:[#allocation3 + $0x8] sm:$0x1] }
 0x26f   : > { %v2729_v42 = vsel %vm2711_vm10, %v9008_v61, %v9013_v23  ;;  %v6870_v40 = vpop.f32.mrb[75].mxu1  ;;  %vm7838_vm10 = vmmov 0  }
 0x270   : > { %v2751_v59 = vmax.bf16 %v2748_v48, %v2746_v15  ;;  %v2735_v8 = vpack.c.bf16 %v2729_v42, %v2728_v38  ;;  %v2624_v7 = vadd.f32 %v6868_v55, %v2559_v63  ;;  %v6871_v0 = vadd.f32 %v6870_v40, %v6869_v31  ;;  %v2798_v31 = vld [vmem:[#allocation3 + $0x4] sm:$0x4] }
 0x272   : > { %v6303_v36 = vcombine.low %v2751_v59, %v2751_v59  ;;  %v2782_v9 = vrot.slane %v2735_v8, 4  ;;  %v2689_v25 = vadd.f32 %v8983_v62, %v2624_v7  ;;  %v2627_v20 = vadd.f32 %v6871_v0, %v2562_v24  ;;  %v2846_v59 = vld [vmem:[#allocation3 + $0x8] sm:$0x8] }
 0x274   : > { %v2756_v41 = vshll.u32 %v6303_v36, 16  ;;  %v6304_v46 = vrot.slane %v6303_v36, 9  ;;  %v6306_v11 = vrot.slane %v6303_v36, 10  ;;  %v2784_v58 = vmax.bf16 %v2782_v9, %v2735_v8  ;;  %v6872_v26 = vpop.f32.mrb[76].mxu1  ;;  %v2839_v9 = vld [vmem:[#allocation3 + $0x8] sm:$0x4] }
 0x275   : > { %vm2712_vm3 = vcmp.ge.f32.partialorder %v2689_v25, %v9002_v13  ;;  %v2692_v44 = vadd.f32 %v8989_v33, %v2627_v20  ;;  %v6873_v2 = vpop.f32.mrb[77].mxu1 }
 0x276   : > { %v2758_v63 = vrot.slane %v2756_v41, 5  ;;  %v2767_v16 = vsel %vm8139_vm15, %v6304_v46, %v2766_v30  ;;  %v2779_v62 = vsel %vm8172_vm12, %v6306_v11, %v2778_v22  ;;  %v6875_v24 = vpop.f32.mrb[78].mxu1  ;;  %v2786_v60 = vshrl.u32 %v2784_v58, 16  ;;  %v2834_v22 = vld [vmem:[#allocation3 + $0x8] sm:$0x2] }
 0x277   : > { %2768 = vst [vmem:[#allocation3 + $0x4] sm:$0x1] %v2767_v16  ;;  %2780 = vst [vmem:[#allocation3 + $0x4] sm:$0x2] %v2779_v62  ;;  %vm2713_vm6 = vcmp.ge.f32.partialorder %v2692_v44, %v9002_v13  ;;  %v6874_v18 = vadd.f32 %v6873_v2, %v6872_v26  ;;  %v6876_v50 = vpop.f32.mrb[79].mxu1  ;;  %v2730_v33 = vsel %vm2712_vm3, %v9008_v61, %v9013_v23  ;;  %v6305_v53 = vrot.slane %v2756_v41, 10 }
 0x278   : > { %v2761_v57 = vsel %vm8186_vm1, %v2758_v63, %v2760_v51  ;;  %v2731_v3 = vsel %vm2713_vm6, %v9008_v61, %v9013_v23  ;;  %v6877_v28 = vadd.f32 %v6876_v50, %v6875_v24  ;;  %v2789_v43 = vmax.bf16 %v2786_v60, %v2784_v58  ;;  %v9062_v46 = vld [vmem:[#allocation3 + $0x10] sm:$0x3]  ;;  %v9070_v2 = vld [vmem:[#allocation3 + $0xc] sm:$0x8]  ;;  %v2880_v50 = vld [vmem:[#allocation3 + $0xc] sm:$0x4] }
 0x279   : > { %2762 = vst [vmem:[#allocation3] sm:$0x8] %v2761_v57  ;;  %v2736_v32 = vpack.c.bf16 %v2731_v3, %v2730_v33  ;;  %v2632_v34 = vadd.f32 %v6874_v18, %v8995_v1  ;;  %v6328_v37 = vcombine.low %v9070_v2, %v9062_v46  ;;  %v2865_v18 = vld [vmem:[#allocation3 + $0xc] sm:$0x1] }
 0x27a   : > { %v2635_v10 = vadd.f32 %v6877_v28, %v8997_v21  ;;  %v6307_v14 = vcombine.low %v2789_v43, %v2789_v43  ;;  %v7325_v3 = vld [vmem:[#allocation3] ss:$0 sps:$4 sm:$0x77]  }
 0x27b   : > { %v2818_v49 = vrot.slane %v2736_v32, 4  ;;  %v2697_v47 = vadd.f32 %v8981_v39, %v2632_v34  ;;  %v3018_v28 = vshrl.u32 %v6328_v37, 16  ;;  %v3021_v43 = vshll.u32 %v6328_v37, 16 }
 0x27c   : > { %v2700_v27 = vadd.f32 %v8986_v45, %v2635_v10  ;;  %v2794_v15 = vshll.u32 %v6307_v14, 16  ;;  %v2801_v54 = vrot.slane %v6307_v14, 6  ;;  %v6308_v56 = vrot.slane %v6307_v14, 11 }
 0x27d   : > { %v2820_v48 = vmax.bf16 %v2818_v49, %v2736_v32  ;;  %vm2714_vm4 = vcmp.ge.f32.partialorder %v2697_v47, %v9002_v13  ;;  %v2898_v12 = vshll.u32 %v7325_v3, 16 }
 0x27e   : > { %v2772_v55 = vld [vmem:[#allocation3 + $0x4] sm:$0x1]  ;;  %vm2715_vm5 = vcmp.ge.f32.partialorder %v2700_v27, %v9002_v13  ;;  %v2796_v21 = vrot.slane %v2794_v15, 6  ;;  %v2804_v39 = vsel %vm8129_vm13, %v2801_v54, %v2803_v52  ;;  %v2815_v45 = vsel %vm8139_vm15, %v6308_v56, %v2814_v17 }
 0x27f   : > { %v2773_v1 = vsel %vm8218_vm8, %v6305_v53, %v2772_v55  ;;  %2805 = vst [vmem:[#allocation3 + $0x4] sm:$0x8] %v2804_v39  ;;  %v2822_v38 = vshrl.u32 %v2820_v48, 16  ;;  %v2732_v42 = vsel %vm2714_vm4, %v9008_v61, %v9013_v23  ;;  %v2733_v40 = vsel %vm2715_vm5, %v9008_v61, %v9013_v23  ;;  %2816 = vst [vmem:[#allocation3 + $0x8] sm:$0x1] %v2815_v45 }
 0x280   : > { %2774 = vst [vmem:[#allocation3 + $0x4] sm:$0x1] %v2773_v1  ;;  %v2799_v13 = vsel %vm8180_vm7, %v2796_v21, %v2798_v31  ;;  %v2737_v8 = vpack.c.bf16 %v2733_v40, %v2732_v42  ;;  %v2806_v20 = vrot.slane %v2794_v15, 7  ;;  %v2886_v16 = vld [vmem:[#allocation3] sm:$0x8]  ;;  %v3020_v54 = vrot.slane %v3018_v28, 2 }
 0x281   : > { %2800 = vst [vmem:[#allocation3 + $0x4] sm:$0x4] %v2799_v13  ;;  %v2825_v7 = vmax.bf16 %v2822_v38, %v2820_v48  ;;  %v3023_v56 = vrot.slane %v3021_v43, 3  ;;  %v2896_v39 = vshrl.u32 %v7325_v3, 16  ;;  %v2900_v45 = vrot.slane %v2898_v12, 1 }
 0x282   : > { %v2850_v0 = vrot.slane %v2737_v8, 4  ;;  %v6329_v13 = vcombine.low %v9062_v46, %v9062_v46 }
 0x283   : > { %v6309_v36 = vcombine.low %v2825_v7, %v2825_v7  ;;  %v2847_v6 = vsel %vm8129_vm13, %v2825_v7, %v2846_v59  ;;  %v3024_v40 = vor.u32 %v3023_v56, %v3020_v54  ;;  %vm3098_vm13 = vcmask 1045504  }
 0x284   : > { %2848 = vst [vmem:[#allocation3 + $0x8] sm:$0x8] %v2847_v6  ;;  %v2852_v25 = vmax.bf16 %v2850_v0, %v2737_v8  ;;  %v2905_v8 = vrot.slane %v7320_v35, 1  ;;  %v9126_v46 = vrot.slane %v6329_v13, 10 }
 0x285   : > { %v2830_v30 = vshll.u32 %v6309_v36, 16  ;;  %v2837_v61 = vrot.slane %v6309_v36, 7  ;;  %v2883_v36 = vld [vmem:[#allocation3] sm:$0x3] }
 0x286   : > { %v2808_v23 = vld [vmem:[#allocation3 + $0x4] sm:$0x8]  ;;  %v2854_v41 = vshrl.u32 %v2852_v25, 16  ;;  %v2890_v10 = vld [vmem:[#allocation3 + $0x8] sm:$0x1] }
 0x287   : > { %v2809_v11 = vsel %vm8186_vm1, %v2806_v20, %v2808_v23  ;;  %v2832_v58 = vrot.slane %v2830_v30, 7  ;;  %v2840_v26 = vsel %vm8134_vm14, %v2837_v61, %v2839_v9  ;;  %v9068_v51 = vld [vmem:[#allocation3 + $0x4] sm:$0x3]  ;;  %v7326_v23 = vld [vmem:[#allocation3 + $0x8] ss:$0 sps:$4 sm:$0xee]  }
 0x288   : > { %2810 = vst [vmem:[#allocation3 + $0x4] sm:$0x8] %v2809_v11  ;;  %2841 = vst [vmem:[#allocation3 + $0x8] sm:$0x4] %v2840_v26  ;;  %v2857_v44 = vmax.bf16 %v2854_v41, %v2852_v25  ;;  %v9079_v60 = vcombine.low %v2886_v16, %v9068_v51  ;;  %v2887_v52 = vld [vmem:[#allocation3 + $0x4] sm:$0x1]  ;;  %v6320_v1 = vcombine.low %v9068_v51, %v9068_v51 }
 0x289   : > { %v2835_v63 = vsel %vm8155_vm0, %v2832_v58, %v2834_v22  ;;  %v6315_v31 = vcombine.low %v2886_v16, %v2887_v52  ;;  %v9124_v41 = vrot.slane %v3024_v40, 3 }
 0x28a   : > { %2836 = vst [vmem:[#allocation3 + $0x8] sm:$0x2] %v2835_v63  ;;  %v6310_v62 = vcombine.low %v2857_v44, %v2857_v44  ;;  %v2869_v24 = vsel %vm8172_vm12, %v2857_v44, %v2868_v4  ;;  %v2919_v29 = vshll.u32 %v9079_v60, 16  ;;  %v2916_v38 = vshrl.u32 %v9079_v60, 16 }
 0x28b   : > { %2870 = vst [vmem:[#allocation3 + $0xc] sm:$0x2] %v2869_v24  ;;  %v6330_v7 = vrot.slane %v6320_v1, 6  ;;  %v3027_v6 = vrot.slane %v6315_v31, 1  ;;  %v2911_v11 = vrot.slane %v6315_v31, 3 }
 0x28c   : > { %v2862_v57 = vshll.u32 %v6310_v62, 16  ;;  %v6312_v33 = vrot.slane %v6310_v62, 9  ;;  %v2945_v48 = vrot.slane %v2919_v29, 1 }
 0x28e   : > { %v2866_v32 = vsel %vm8218_vm8, %v2862_v57, %v2865_v18  ;;  %v2881_v34 = vsel %vm8134_vm14, %v6312_v33, %v2880_v50  ;;  %v6311_v15 = vrot.slane %v2862_v57, 9  ;;  %v2946_v59 = vor.u32 %v2945_v48, %v2916_v38 }
 0x28f   : > { %v2843_v14 = vld [vmem:[#allocation3 + $0x8] sm:$0x4]  ;;  %2867 = vst [vmem:[#allocation3 + $0xc] sm:$0x1] %v2866_v32  ;;  %2882 = vst [vmem:[#allocation3 + $0xc] sm:$0x4] %v2881_v34 }
 0x290   : > { %v9086_v49 = vld [vmem:[#allocation3 + $0x4] sm:$0xc]  ;;  %v2844_v53 = vsel %vm8180_vm7, %v2830_v30, %v2843_v14  ;;  %v2901_v30 = vor.u32 %v2900_v45, %v2896_v39  ;;  %v3028_v58 = vrot.slane %v2946_v59, 1  ;;  %v9140_v50 = vshrl.u32 %v7326_v23, 16  ;;  %v7324_v14 = vld [vmem:[%s10235_s3 + $0x180] sm:$0xff]   ;;  %v7331_v59 = vld [vmem:[%s10235_s3 + $0x188] sm:$0xff]  }
 0x291   : > { %v2891_v47 = vld [vmem:[#allocation3 + $0x4] sm:$0x8]  ;;  %v6318_v27 = vcombine.low %v9086_v49, %v2890_v10  ;;  %2845 = vst [vmem:[#allocation3 + $0x8] sm:$0x4] %v2844_v53  ;;  %v9112_v9 = vcombine.low %v9086_v49, %v9086_v49  ;;  %v3035_v26 = vrot.slane %v9086_v49, 6  ;;  %v9142_v57 = vshll.u32 %v7326_v23, 16 }
 0x292   : > { %v9091_v5 = vcombine.low %v2891_v47, %v2890_v10  ;;  %v2874_v17 = vld [vmem:[#allocation3 + $0xc] sm:$0x2]  ;;  %v2962_v47 = vrot.slane %v9140_v50, 6 }
 0x293   : > { %v2875_v55 = vsel %vm8155_vm0, %v6311_v15, %v2874_v17  ;;  %v9099_v21 = vshll.u32 %v6318_v27, 16  ;;  %v9105_v19 = vshrl.u32 %v6318_v27, 16  ;;  %vm10265_vm0 = vcmask 1041408   ;;  %v7330_v15 = vld [vmem:[%s10235_s3 + $0x1c8] sm:$0xff]  }
 0x294   : > { %2876 = vst [vmem:[#allocation3 + $0xc] sm:$0x2] %v2875_v55  ;;  %v2976_v42 = vrot.slane %v9091_v5, 1  ;;  %v3055_v62 = vsel %vm10265_vm0, %v2883_v36, %v3027_v6  ;;  %vm10266_vm14 = vmmov %vm10265_vm0  ;;  %v3002_v49 = vrot.slane %v9142_v57, 1  ;;  %v2965_v53 = vrot.slane %v9142_v57, 7  ;;  %v7328_v36 = vld [vmem:[%s10235_s3 + $0x100] sm:$0xff]  }
 0x295   : > { %v2974_v0 = vrot.slane %v9099_v21, 1  ;;  %v2933_v4 = vrot.slane %v9105_v19, 2  ;;  %v3064_v24 = vsel %vm10266_vm14, %v2911_v11, %v9112_v9  ;;  %vm10267_vm15 = vmmov %vm10265_vm0  ;;  %v2936_v32 = vrot.slane %v9099_v21, 3  ;;  %v7336_v11 = vld [vmem:[%s10235_s3 + $0x1d0] sm:$0xff]  }
 0x296   : > { %v3037_v61 = vrot.slane %v2976_v42, 6  ;;  %v9130_v44 = vld [vmem:[#allocation3 + $0xc] ss:$0 sps:$4 sm:$0x33]   ;;  %v3061_v18 = vsel %vm10267_vm15, %v2905_v8, %v6330_v7  ;;  %v3003_v56 = vor.u32 %v3002_v49, %v9140_v50  ;;  %v2966_v48 = vor.u32 %v2965_v53, %v2962_v47  ;;  %vm10268_vm12 = vmmov %vm10265_vm0  ;;  %v7349_v47 = vld [vmem:[%s10235_s3 + $0x1a8] sm:$0xff]  }
 0x297   : > { %v2975_v37 = vor.u32 %v2974_v0, %v9105_v19  ;;  %v6338_v3 = vrot.slane %v9130_v44, 10  ;;  %v9147_v34 = vld [vmem:[#allocation3 + $0xc] ss:$0 sps:$4 sm:$0x77]   ;;  %v2941_v39 = vrot.slane %v9091_v5, 3  ;;  %v3058_v40 = vsel %vm10268_vm12, %v2901_v30, %v3028_v58  ;;  %vm10269_vm7 = vmmov %vm10265_vm0 }
 0x298   : > { %v9114_v25 = vld [vmem:[#allocation3 + $0x8] sm:$0x6]  ;;  %v3085_v28 = vsel %vm1659_vm11, %v3061_v18, %v3037_v61  ;;  %v2988_v54 = vshrl.u32 %v9147_v34, 16  ;;  %v2991_v55 = vshll.u32 %v9147_v34, 16  ;;  %v3045_v45 = vrot.slane %v3003_v56, 3  ;;  %vm10270_vm1 = vmmov %vm10265_vm0  ;;  %v7332_v61 = vld [vmem:[%s10235_s3 + $0x148] sm:$0xff]  }
 0x299   : > { %v9116_v20 = vld [vmem:[#allocation3 + $0x8] sm:$0xc]  ;;  %v9120_v22 = vcombine.low %v9114_v25, %v9114_v25  ;;  %v3036_v12 = vrot.slane %v2975_v37, 6  ;;  %v3044_v31 = vrot.slane %v9114_v25, 3  ;;  %v3081_v0 = vsel %vm1659_vm11, %v3055_v62, %v3035_v26  ;;  %v7337_v37 = vld [vmem:[%s10235_s3 + $0x190] sm:$0xff]   ;;  %v7333_v62 = vld [vmem:[%s10235_s3 + $0x108] sm:$0xff]  }
 0x29a   : > { %v6323_v16 = vcombine.low %v9116_v20, %v9116_v20  ;;  %v3040_v35 = vrot.slane %v9116_v20, 6  ;;  %v2990_v1 = vrot.slane %v2988_v54, 6  ;;  %v2993_v8 = vrot.slane %v2991_v55, 7  ;;  %vm10271_vm8 = vmmov %vm10265_vm0  ;;  %v7338_v18 = vld [vmem:[%s10235_s3 + $0x150] sm:$0xff]   ;;  %v7346_v49 = vld [vmem:[%s10235_s3 + $0x160] sm:$0xff]  }
 0x29b   : > { %v6334_v63 = vrot.slane %v9120_v22, 13  ;;  %v2973_v33 = vld [vmem:[#allocation3 + $0xc] sm:$0x6]  ;;  %v3083_v7 = vsel %vm1659_vm11, %v3058_v40, %v3036_v12  ;;  %v3033_v6 = vrot.slane %v2966_v48, 1  ;;  %v3070_v30 = vsel %vm10270_vm1, %v9068_v51, %v2976_v42  ;;  %v3000_v12 = vld [vmem:[#allocation3 + $0x10] sm:$0x1]  ;;  %vm10272_vm2 = vmmov %vm10265_vm0 }
 0x29c   : > { %v6326_v43 = vcombine.low %v2973_v33, %v2973_v33  ;;  %v3106_v27 = vsel %vm3098_vm13, %v3085_v28, %v6323_v16  ;;  %v3049_v13 = vrot.slane %v2973_v33, 3  ;;  %v3079_v25 = vsel %vm10269_vm7, %v2941_v39, %v6323_v16  ;;  %v7339_v28 = vld [vmem:[%s10235_s3 + $0x110] sm:$0xff]   ;;  %v7347_v53 = vld [vmem:[%s10235_s3 + $0x120] sm:$0xff]   ;;  %v7356_v48 = vld [vmem:[%s10235_s3 + $0x1f8] sm:$0xff]  }
 0x29d   : > { %v3087_v10 = vsel %vm1659_vm11, %v3064_v24, %v6334_v63  ;;  %v3103_v20 = vsel %vm3098_vm13, %v3083_v7, %v3045_v45  ;;  %v2994_v23 = vor.u32 %v2993_v8, %v2990_v1  ;;  %v3100_v26 = vsel %vm3098_vm13, %v3081_v0, %v3044_v31  ;;  %v7357_v40 = vld [vmem:[%s10235_s3 + $0x1b8] sm:$0xff]   ;;  %vm10273_vm9 = vmmov %vm10265_vm0 }
 0x29e   : > { %v3109_v52 = vsel %vm3098_vm13, %v3087_v10, %v6338_v3  ;;  %v6336_v17 = vrot.slane %v6326_v43, 13  ;;  %3734 = vmatprep.mubr.bf16.mxu1 %v3103_v20  ;;  %v3091_v63 = vsel %vm1659_vm11, %v3070_v30, %v3040_v35  ;;  %v2937_v5 = vor.u32 %v2936_v32, %v2933_v4  ;;  %v7341_v3 = vld [vmem:[%s10235_s3 + $0x198] sm:$0xff]   ;;  %v7344_v43 = vld [vmem:[%s10235_s3 + $0x1e0] sm:$0xff]   ;;  %v7354_v35 = vld [vmem:[%s10235_s3 + $0x170] sm:$0xff]  }
 0x29f   : > { %3775 = vmatprep.mubr.bf16.mxu0 %v3109_v52  ;;  %3735 = vmatmul.mubr.bf16.vlgmr.msra.gmra.mrb[80].mxu1 %v3100_v26  ;;  %v3115_v42 = vsel %vm3098_vm13, %v3091_v63, %v3049_v13  ;;  %v3042_v16 = vrot.slane %v2994_v23, 6  ;;  %v7345_v32 = vld [vmem:[%s10235_s3 + $0x1a0] sm:$0xff]   ;;  %v7343_v10 = vld [vmem:[%s10235_s3 + $0x118] sm:$0xff]   ;;  %v7352_v52 = vld [vmem:[%s10235_s3 + $0x1f0] sm:$0xff]   ;;  %v6332_v56 = vrot.slane %v9120_v22, 7  ;;  %v2950_v31 = vrot.slane %v9105_v19, 7 }
 0x2a0   : > { %3776 = vmatmul.mubr.bf16.vlgmr.msra.gmra.mrb[24].mxu0 %v3106_v27  ;;  %v3097_v58 = vsel %vm1659_vm11, %v3079_v25, %v6336_v17  ;;  %6935 = vmatpush3.bf16.msra.mxu1 %v7328_v36  ;;  %v3076_v4 = vsel %vm10271_vm8, %v2937_v5, %v3033_v6  ;;  %v7350_v27 = vld [vmem:[%s10235_s3 + $0x168] sm:$0xff]   ;;  %v2926_v1 = vrot.slane %v9112_v9, 2  ;;  %v6327_v22 = vcombine.low %v9070_v2, %v3000_v12  ;;  %v7355_v13 = vld [vmem:[%s10235_s3 + $0x130] sm:$0xff]   ;;  %v7358_v9 = vld [vmem:[%s10235_s3 + $0x178] sm:$0xff]  }
 0x2a1   : > { %6957 = vmatpush3.bf16.msra.mxu0 %v7324_v14  ;;  %v9197_v51 = vsel %vm3098_vm13, %v3097_v58, %v9126_v46  ;;  %3816 = vmatprep.mubr.bf16.mxu1 %v3115_v42  ;;  %v7340_v46 = vld [vmem:[%s10235_s3 + $0x1d8] sm:$0xff]   ;;  %v3095_v24 = vsel %vm1659_vm11, %v3076_v4, %v3042_v16  ;;  %v7348_v14 = vld [vmem:[%s10235_s3 + $0x1e8] sm:$0xff]   ;;  %v2978_v39 = vrot.slane %v9140_v50, 7  ;;  %v3006_v45 = vrot.slane %v2988_v54, 7  ;;  %v7363_v30 = vld [vmem:[%s10235_s3 + $0x210] sm:$0xff]  }
 0x2a2   : > { %6958 = vmatprep.subr.bf16.mxu0 %v7330_v15  ;;  %6936 = vmatprep.subr.bf16.mxu1 %v7332_v61  ;;  %v3121_v33 = vsel %vm3098_vm13, %v3095_v24, %v9124_v41  ;;  %v7342_v41 = vld [vmem:[%s10235_s3 + $0x158] sm:$0xff]   ;;  %v7353_v15 = vld [vmem:[%s10235_s3 + $0x1b0] sm:$0xff]   ;;  %v7351_v17 = vld [vmem:[%s10235_s3 + $0x128] sm:$0xff]   ;;  %v3073_v19 = vsel %vm10272_vm2, %v2926_v1, %v6332_v56  ;;  %v2951_v2 = vor.u32 %v2950_v31, %v9099_v21  ;;  %v6339_v50 = vrot.slane %v6327_v22, 5 }
 0x2a3   : > { %3857 = vmatprep.mubr.bf16.mxu0 %v3121_v33  ;;  %v2979_v54 = vor.u32 %v2978_v39, %v9142_v57  ;;  %v2918_v8 = vrot.slane %v2916_v38, 3  ;;  %v2921_v7 = vrot.slane %v2919_v29, 4  ;;  %v3007_v21 = vor.u32 %v3006_v45, %v2991_v55  ;;  %v7359_v0 = vld [vmem:[%s10235_s3 + $0x138] sm:$0xff]   ;;  %v7361_v29 = vld [vmem:[%s10235_s3 + $0x200] sm:$0xff]   ;;  %v7362_v20 = vld [vmem:[%s10235_s3 + $0x208] sm:$0xff]  }
 0x2a4   : > { %6937 = vmatpush3.bf16.msra.mxu1 %v7333_v62  ;;  %v3031_v36 = vrot.slane %v2951_v2, 1  ;;  %v7837_v55 = vmov 0.0   ;;  %v7364_v61 = vld [vmem:[%s10235_s3 + $0x218] sm:$0xff]   ;;  %v7365_v23 = vld [vmem:[%s10235_s3 + $0x220] sm:$0xff]   ;;  %v7367_v58 = vld [vmem:[%s10235_s3 + $0x230] sm:$0xff]  }
 0x2a5   : > { %6959 = vmatpush3.bf16.msra.mxu0 %v7331_v59  ;;  %6938 = vmatprep.subr.bf16.mxu1 %v7338_v18  ;;  %v3093_v59 = vsel %vm1659_vm11, %v3073_v19, %v9130_v44  ;;  %v3039_v44 = vrot.slane %v2979_v54, 6  ;;  %v2922_v6 = vor.u32 %v2921_v7, %v2918_v8  ;;  %v3048_v38 = vrot.slane %v3007_v21, 3  ;;  %v7368_v26 = vld [vmem:[%s10235_s3 + $0x238] sm:$0xff]   ;;  %v7370_v63 = vld [vmem:[%s10239_s7] ss:$8 sps:$4 sm:$0xff]  }
 0x2a6   : > { %6960 = vmatprep.subr.bf16.mxu0 %v7336_v11  ;;  %v3118_v57 = vsel %vm3098_vm13, %v3093_v59, %v6339_v50  ;;  %v7366_v11 = vld [vmem:[%s10235_s3 + $0x228] sm:$0xff]   ;;  %v7376_v62 = vld [vmem:[%s10239_s7 + $0x10] ss:$8 sps:$4 sm:$0xff]   ;;  %v7417_v31 = vld [vmem:[%s10239_s7 + $0x374] ss:$8 sps:$4 sm:$0xff]  }
 0x2a7   : > { %v3067_v60 = vsel %vm10273_vm9, %v2922_v6, %v3031_v36  ;;  %v7372_v5 = vld [vmem:[%s10239_s7 + $0x4] ss:$8 sps:$4 sm:$0xff]   ;;  %v7373_v42 = vld [vmem:[%s10239_s7 + $0x300] ss:$8 sps:$4 sm:$0xff]   ;;  %v7379_v4 = vld [vmem:[%s10239_s7 + $0x310] ss:$8 sps:$4 sm:$0xff]  }
 0x2a8   : > { %6939 = vmatpush3.bf16.msra.mxu1 %v7339_v28  ;;  %v3089_v34 = vsel %vm1659_vm11, %v3067_v60, %v3039_v44  ;;  %v7375_v16 = vld [vmem:[%s10239_s7 + $0x304] ss:$8 sps:$4 sm:$0xff]   ;;  %v7382_v18 = vld [vmem:[%s10239_s7 + $0x20] ss:$8 sps:$4 sm:$0xff]   ;;  %v7393_v28 = vld [vmem:[%s10239_s7 + $0x334] ss:$8 sps:$4 sm:$0xff]  }
 0x2a9   : > { %6961 = vmatpush3.bf16.msra.mxu0 %v7337_v37  ;;  %6940 = vmatprep.subr.bf16.mxu1 %v7342_v41  ;;  %v3112_v25 = vsel %vm3098_vm13, %v3089_v34, %v3048_v38  ;;  %v7381_v37 = vld [vmem:[%s10239_s7 + $0x314] ss:$8 sps:$4 sm:$0xff]   ;;  %v7387_v24 = vld [vmem:[%s10239_s7 + $0x324] ss:$8 sps:$4 sm:$0xff]   ;;  %v7385_v33 = vld [vmem:[%s10239_s7 + $0x320] ss:$8 sps:$4 sm:$0xff]  }
 0x2aa   : > { %6962 = vmatprep.subr.bf16.mxu0 %v7340_v46  ;;  %v7384_v46 = vld [vmem:[%s10239_s7 + $0x24] ss:$8 sps:$4 sm:$0xff]   ;;  %v7391_v41 = vld [vmem:[%s10239_s7 + $0x330] ss:$8 sps:$4 sm:$0xff]   ;;  %v7406_v12 = vld [vmem:[%s10239_s7 + $0x60] ss:$8 sps:$4 sm:$0xff]  }
 0x2ab   : > { %v7409_v56 = vld [vmem:[%s10239_s7 + $0x360] ss:$8 sps:$4 sm:$0xff]   ;;  %v7420_v1 = vld [vmem:[%s10239_s7 + $0x84] ss:$8 sps:$4 sm:$0xff]   ;;  %v7415_v22 = vld [vmem:[%s10239_s7 + $0x370] ss:$8 sps:$4 sm:$0xff]  }
 0x2ac   : > { %6941 = vmatpush3.bf16.msra.mxu1 %v7343_v10  ;;  %v7399_v10 = vld [vmem:[%s10239_s7 + $0x344] ss:$8 sps:$4 sm:$0xff]   ;;  %v7418_v45 = vld [vmem:[%s10239_s7 + $0x80] ss:$8 sps:$4 sm:$0xff]   ;;  %v7424_v2 = vld [vmem:[%s10239_s7 + $0x90] ss:$8 sps:$4 sm:$0xff]  }
 0x2ad   : > { %6963 = vmatpush3.bf16.msra.mxu0 %v7341_v3  ;;  %6942 = vmatprep.subr.bf16.mxu1 %v7346_v49  ;;  %v7390_v3 = vld [vmem:[%s10239_s7 + $0x34] ss:$8 sps:$4 sm:$0xff]   ;;  %v7397_v49 = vld [vmem:[%s10239_s7 + $0x340] ss:$8 sps:$4 sm:$0xff]   ;;  %v7423_v39 = vld [vmem:[%s10239_s7 + $0x384] ss:$8 sps:$4 sm:$0xff]  }
 0x2ae   : > { %6964 = vmatprep.subr.bf16.mxu0 %v7344_v43  ;;  %v7388_v43 = vld [vmem:[%s10239_s7 + $0x30] ss:$8 sps:$4 sm:$0xff]   ;;  %v7421_v19 = vld [vmem:[%s10239_s7 + $0x380] ss:$8 sps:$4 sm:$0xff]   ;;  %v7435_v54 = vld [vmem:[%s10239_s7 + $0x3a4] ss:$8 sps:$4 sm:$0xff]  }
 0x2af   : > { %v7427_v50 = vld [vmem:[%s10239_s7 + $0x390] ss:$8 sps:$4 sm:$0xff]   ;;  %v7430_v59 = vld [vmem:[%s10239_s7 + $0xa0] ss:$8 sps:$4 sm:$0xff]   ;;  %v7438_v8 = vld [vmem:[%s10239_s7 + $0xb4] ss:$8 sps:$4 sm:$0xff]  }
 0x2b0   : > { %6943 = vmatpush3.bf16.msra.mxu1 %v7347_v53  ;;  %v7402_v53 = vld [vmem:[%s10239_s7 + $0x54] ss:$8 sps:$4 sm:$0xff]   ;;  %v7433_v7 = vld [vmem:[%s10239_s7 + $0x3a0] ss:$8 sps:$4 sm:$0xff]   ;;  %v7444_v36 = vld [vmem:[%s10239_s7 + $0xc4] ss:$8 sps:$4 sm:$0xff]  }
 0x2b1   : > { %6965 = vmatpush3.bf16.msra.mxu0 %v7345_v32  ;;  %6944 = vmatprep.subr.bf16.mxu1 %v7350_v27  ;;  %v7396_v32 = vld [vmem:[%s10239_s7 + $0x44] ss:$8 sps:$4 sm:$0xff]   ;;  %v7405_v27 = vld [vmem:[%s10239_s7 + $0x354] ss:$8 sps:$4 sm:$0xff]   ;;  %v7442_v6 = vld [vmem:[%s10239_s7 + $0xc0] ss:$8 sps:$4 sm:$0xff]  }
 0x2b2   : > { %6966 = vmatprep.subr.bf16.mxu0 %v7348_v14  ;;  %v7394_v14 = vld [vmem:[%s10239_s7 + $0x40] ss:$8 sps:$4 sm:$0xff]   ;;  %v7441_v21 = vld [vmem:[%s10239_s7 + $0x3b4] ss:$8 sps:$4 sm:$0xff]   ;;  %v7447_v44 = vld [vmem:[%s10239_s7 + $0x3c4] ss:$8 sps:$4 sm:$0xff]  }
 0x2b3   : > { %v7450_v38 = vld [vmem:[%s10239_s7 + $0xd4] ss:$8 sps:$4 sm:$0xff]   ;;  %v7445_v60 = vld [vmem:[%s10239_s7 + $0x3c0] ss:$8 sps:$4 sm:$0xff]   ;;  %v7451_v34 = vld [vmem:[%s10239_s7 + $0x3d0] ss:$8 sps:$4 sm:$0xff]  }
 0x2b4   : > { %6945 = vmatpush3.bf16.msra.mxu1 %v7351_v17  ;;  %v7411_v17 = vld [vmem:[%s10239_s7 + $0x364] ss:$8 sps:$4 sm:$0xff]  }
 0x2b5   : > { %6967 = vmatpush3.bf16.msra.mxu0 %v7349_v47  ;;  %6946 = vmatprep.subr.bf16.mxu1 %v7354_v35  ;;  %v7400_v47 = vld [vmem:[%s10239_s7 + $0x50] ss:$8 sps:$4 sm:$0xff]  }
 0x2b6   : > { %6968 = vmatprep.subr.bf16.mxu0 %v7352_v52  ;;  %v7403_v52 = vld [vmem:[%s10239_s7 + $0x350] ss:$8 sps:$4 sm:$0xff]  }
 0x2b7   : > { %v7412_v35 = vld [vmem:[%s10239_s7 + $0x70] ss:$8 sps:$4 sm:$0xff]  }
 0x2b8   : > { %6947 = vmatpush3.bf16.msra.mxu1 %v7355_v13  ;;  %v7429_v13 = vld [vmem:[%s10239_s7 + $0x394] ss:$8 sps:$4 sm:$0xff]  }
 0x2b9   : > { %6969 = vmatpush3.bf16.msra.mxu0 %v7353_v15  ;;  %6948 = vmatprep.subr.bf16.mxu1 %v7358_v9  ;;  %v7408_v15 = vld [vmem:[%s10239_s7 + $0x64] ss:$8 sps:$4 sm:$0xff]  }
 0x2ba   : > { %6970 = vmatprep.subr.bf16.mxu0 %v7356_v48  ;;  %v7414_v48 = vld [vmem:[%s10239_s7 + $0x74] ss:$8 sps:$4 sm:$0xff]   ;;  %v7432_v9 = vld [vmem:[%s10239_s7 + $0xa4] ss:$8 sps:$4 sm:$0xff]  }
 0x2bc   : > { %6949 = vmatpush3.bf16.msra.mxu1 %v7359_v0  ;;  %v7436_v0 = vld [vmem:[%s10239_s7 + $0xb0] ss:$8 sps:$4 sm:$0xff]  }
 0x2bd   : > { %6971 = vmatpush3.bf16.msra.mxu0 %v7357_v40  ;;  %7071 = vmatprep.subr.bf16.mxu1 %v7837_v55  ;;  %v7426_v40 = vld [vmem:[%s10239_s7 + $0x94] ss:$8 sps:$4 sm:$0xff]  }
 0x2be   : > { %5619 = vmatprep.subr.bf16.mxu0 %v7375_v16 }
 0x2bf   : > { %3817 = vmatmul.mubr.bf16.vlgmr.msra.gmra.mrb[84].mxu1 %v3112_v25  ;;  %v7453_v25 = vld [vmem:[%s10239_s7 + $0x3d4] ss:$8 sps:$4 sm:$0xff]  }
 0x2c0   : > { %3858 = vmatmul.mubr.bf16.vlgmr.msra.gmra.mrb[28].mxu0 %v3118_v57  ;;  %7072 = vmatpush3.bf16.msra.mxu1 %v7361_v29  ;;  %v7439_v57 = vld [vmem:[%s10239_s7 + $0x3b0] ss:$8 sps:$4 sm:$0xff]  }
 0x2c1   : > { %7087 = vmatprep.mubr.msk.bf16.mxu1 %vm7838_vm10, %v7837_v55  ;;  %7073 = vmatprep.subr.bf16.mxu1 %v7837_v55  ;;  %v7448_v29 = vld [vmem:[%s10239_s7 + $0xd0] ss:$8 sps:$4 sm:$0xff]  }
 0x2c2   : > { %5620 = vmatpush1.bf16.msra.mxu0 %v7373_v42  ;;  %v7471_v42 = vld [vmem:[%s10239_s7 + $0x404] ss:$8 sps:$4 sm:$0xff]  }
 0x2c3   : > { %5621 = vmatprep.subr.bf16.mxu0 %v7381_v37 }
 0x2c4   : > { %7074 = vmatpush3.bf16.msra.mxu1 %v7362_v20  ;;  %v7454_v20 = vld [vmem:[%s10239_s7 + $0xe0] ss:$8 sps:$4 sm:$0xff]  }
 0x2c5   : > { %7075 = vmatprep.subr.bf16.mxu1 %v7837_v55 }
 0x2c6   : > { %5622 = vmatpush1.bf16.msra.mxu0 %v7379_v4 }
 0x2c7   : > { %5623 = vmatprep.subr.bf16.mxu0 %v7387_v24 }
 0x2c8   : > { %7076 = vmatpush3.bf16.msra.mxu1 %v7363_v30  ;;  %v7456_v30 = vld [vmem:[%s10239_s7 + $0xe4] ss:$8 sps:$4 sm:$0xff]  }
 0x2c9   : > { %7077 = vmatprep.subr.bf16.mxu1 %v7837_v55 }
 0x2ca   : > { %5624 = vmatpush1.bf16.msra.mxu0 %v7385_v33 }
 0x2cb   : > { %5625 = vmatprep.subr.bf16.mxu0 %v7393_v28 }
 0x2cc   : > { %7078 = vmatpush3.bf16.msra.mxu1 %v7364_v61  ;;  %v7457_v61 = vld [vmem:[%s10239_s7 + $0x3e0] ss:$8 sps:$4 sm:$0xff]  }
 0x2cd   : > { %7079 = vmatprep.subr.bf16.mxu1 %v7837_v55 }
 0x2ce   : > { %5626 = vmatpush1.bf16.msra.mxu0 %v7391_v41 }
 0x2cf   : > { %5627 = vmatprep.subr.bf16.mxu0 %v7399_v10 }
 0x2d0   : > { %7080 = vmatpush3.bf16.msra.mxu1 %v7365_v23  ;;  %v7459_v23 = vld [vmem:[%s10239_s7 + $0x3e4] ss:$8 sps:$4 sm:$0xff]  }
 0x2d1   : > { %7081 = vmatprep.subr.bf16.mxu1 %v7837_v55 }
 0x2d2   : > { %5628 = vmatpush1.bf16.msra.mxu0 %v7397_v49 }
 0x2d3   : > { %5629 = vmatprep.subr.bf16.mxu0 %v7405_v27 }
 0x2d4   : > { %7082 = vmatpush3.bf16.msra.mxu1 %v7366_v11  ;;  %v7462_v11 = vld [vmem:[%s10239_s7 + $0xf4] ss:$8 sps:$4 sm:$0xff]  }
 0x2d5   : > { %7083 = vmatprep.subr.bf16.mxu1 %v7837_v55 }
 0x2d6   : > { %5630 = vmatpush1.bf16.msra.mxu0 %v7403_v52 }
 0x2d7   : > { %5631 = vmatprep.subr.bf16.mxu0 %v7411_v17 }
 0x2d8   : > { %7084 = vmatpush3.bf16.msra.mxu1 %v7367_v58  ;;  %v7465_v58 = vld [vmem:[%s10239_s7 + $0x3f4] ss:$8 sps:$4 sm:$0xff]  }
 0x2d9   : > { %7085 = vmatprep.subr.bf16.mxu1 %v7837_v55 }
 0x2da   : > { %5632 = vmatpush1.bf16.msra.mxu0 %v7409_v56 }
 0x2db   : > { %5633 = vmatprep.subr.bf16.mxu0 %v7417_v31 }
 0x2dc   : > { %7086 = vmatpush3.bf16.msra.mxu1 %v7368_v26  ;;  %v7460_v26 = vld [vmem:[%s10239_s7 + $0xf0] ss:$8 sps:$4 sm:$0xff]  }
 0x2dd   : > { %5496 = vmatprep.subr.bf16.mxu1 %v7372_v5  ;;  %v7468_v5 = vld [vmem:[%s10239_s7 + $0x104] ss:$8 sps:$4 sm:$0xff]  }
 0x2de   : > { %5634 = vmatpush1.bf16.msra.mxu0 %v7415_v22 }
 0x2df   : > { %7088 = vmatmul.mubr.bf16.vlgmr.msra.gmra.mrb[88].mxu1 %v9197_v51  ;;  %v7378_v51 = vld [vmem:[%s10239_s7 + $0x14] ss:$8 sps:$4 sm:$0xff]   ;;  %5635 = vmatprep.subr.bf16.mxu0 %v7423_v39 }
 0x2e0   : > { %5497 = vmatpush1.bf16.msra.mxu1 %v7370_v63  ;;  %v7463_v63 = vld [vmem:[%s10239_s7 + $0x3f0] ss:$8 sps:$4 sm:$0xff]  }
 0x2e1   : > { %5498 = vmatprep.subr.bf16.mxu1 %v7378_v51 }
 0x2e2   : > { %5636 = vmatpush1.bf16.msra.mxu0 %v7421_v19 }
 0x2e3   : > { %5637 = vmatprep.subr.bf16.mxu0 %v7429_v13 }
 0x2e4   : > { %5499 = vmatpush1.bf16.msra.mxu1 %v7376_v62 }
 0x2e5   : > { %5500 = vmatprep.subr.bf16.mxu1 %v7384_v46 }
 0x2e6   : > { %5638 = vmatpush1.bf16.msra.mxu0 %v7427_v50 }
 0x2e7   : > { %5639 = vmatprep.subr.bf16.mxu0 %v7435_v54 }
 0x2e8   : > { %5501 = vmatpush1.bf16.msra.mxu1 %v7382_v18 }
 0x2e9   : > { %5502 = vmatprep.subr.bf16.mxu1 %v7390_v3 }
 0x2ea   : > { %5640 = vmatpush1.bf16.msra.mxu0 %v7433_v7 }
 0x2eb   : > { %5641 = vmatprep.subr.bf16.mxu0 %v7441_v21 }
 0x2ec   : > { %5503 = vmatpush1.bf16.msra.mxu1 %v7388_v43 }
 0x2ed   : > { %5504 = vmatprep.subr.bf16.mxu1 %v7396_v32 }
 0x2ee   : > { %5642 = vmatpush1.bf16.msra.mxu0 %v7439_v57 }
 0x2ef   : > { %5643 = vmatprep.subr.bf16.mxu0 %v7447_v44 }
 0x2f0   : > { %5505 = vmatpush1.bf16.msra.mxu1 %v7394_v14 }
 0x2f1   : > { %5506 = vmatprep.subr.bf16.mxu1 %v7402_v53 }
 0x2f2   : > { %5644 = vmatpush1.bf16.msra.mxu0 %v7445_v60  ;;  %v7472_v60 = vld [vmem:[%s10239_s7 + $0x110] ss:$8 sps:$4 sm:$0xff]  }
 0x2f3   : > { %5645 = vmatprep.subr.bf16.mxu0 %v7453_v25  ;;  %v7480_v25 = vld [vmem:[%s10239_s7 + $0x124] ss:$8 sps:$4 sm:$0xff]  }
 0x2f4   : > { %5507 = vmatpush1.bf16.msra.mxu1 %v7400_v47 }
 0x2f5   : > { %5508 = vmatprep.subr.bf16.mxu1 %v7408_v15 }
 0x2f6   : > { %5646 = vmatpush1.bf16.msra.mxu0 %v7451_v34 }
 0x2f7   : > { %5647 = vmatprep.subr.bf16.mxu0 %v7459_v23  ;;  %v7486_v23 = vld [vmem:[%s10239_s7 + $0x134] ss:$8 sps:$4 sm:$0xff]  }
 0x2f8   : > { %5509 = vmatpush1.bf16.msra.mxu1 %v7406_v12 }
 0x2f9   : > { %5510 = vmatprep.subr.bf16.mxu1 %v7414_v48 }
 0x2fa   : > { %5648 = vmatpush1.bf16.msra.mxu0 %v7457_v61  ;;  %v7483_v61 = vld [vmem:[%s10239_s7 + $0x424] ss:$8 sps:$4 sm:$0xff]  }
 0x2fb   : > { %5649 = vmatprep.subr.bf16.mxu0 %v7465_v58  ;;  %v7484_v58 = vld [vmem:[%s10239_s7 + $0x130] ss:$8 sps:$4 sm:$0xff]  }
 0x2fc   : > { %5511 = vmatpush1.bf16.msra.mxu1 %v7412_v35 }
 0x2fd   : > { %5512 = vmatprep.subr.bf16.mxu1 %v7420_v1 }
 0x2fe   : > { %5650 = vmatpush1.bf16.msra.mxu0 %v7463_v63  ;;  %v7492_v63 = vld [vmem:[%s10239_s7 + $0x144] ss:$8 sps:$4 sm:$0xff]  }
 0x2ff   : > { %5660 = vmatprep.subr.bf16.mxu0 %v7471_v42  ;;  %v7490_v42 = vld [vmem:[%s10239_s7 + $0x140] ss:$8 sps:$4 sm:$0xff]  }
 0x300   : > { %5513 = vmatpush1.bf16.msra.mxu1 %v7418_v45  ;;  %v6413_v45 = vld [vmem:[%s10236_s4 + $0x2] ss:$0 sm:$0xff] }
 0x301   : > { %5514 = vmatprep.subr.bf16.mxu1 %v7426_v40 }
 0x304   : > { %5515 = vmatpush1.bf16.msra.mxu1 %v7424_v2  ;;  %v6414_v2 = vld [vmem:[%s10237_s5 + $0x2] ss:$0 sm:$0xff] }
 0x305   : > { %5516 = vmatprep.subr.bf16.mxu1 %v7432_v9  ;;  %v6415_v9 = vld [vmem:[%s10238_s6 + $0x2] ss:$0 sm:$0xff] }
 0x308   : > { %5517 = vmatpush1.bf16.msra.mxu1 %v7430_v59 }
 0x309   : > { %5518 = vmatprep.subr.bf16.mxu1 %v7438_v8 }
 0x30c   : > { %5519 = vmatpush1.bf16.msra.mxu1 %v7436_v0  ;;  %v7466_v0 = vld [vmem:[%s10239_s7 + $0x100] ss:$8 sps:$4 sm:$0xff]  }
 0x30d   : > { %5520 = vmatprep.subr.bf16.mxu1 %v7444_v36  ;;  %v7474_v36 = vld [vmem:[%s10239_s7 + $0x114] ss:$8 sps:$4 sm:$0xff]  }
 0x310   : > { %5521 = vmatpush1.bf16.msra.mxu1 %v7442_v6  ;;  %v7469_v6 = vld [vmem:[%s10239_s7 + $0x400] ss:$8 sps:$4 sm:$0xff]  }
 0x311   : > { %5522 = vmatprep.subr.bf16.mxu1 %v7450_v38 }
 0x314   : > { %5523 = vmatpush1.bf16.msra.mxu1 %v7448_v29  ;;  %v7477_v29 = vld [vmem:[%s10239_s7 + $0x414] ss:$8 sps:$4 sm:$0xff]  }
 0x315   : > { %5524 = vmatprep.subr.bf16.mxu1 %v7456_v30  ;;  %v7478_v30 = vld [vmem:[%s10239_s7 + $0x120] ss:$8 sps:$4 sm:$0xff]  }
 0x318   : > { %5525 = vmatpush1.bf16.msra.mxu1 %v7454_v20  ;;  %v7475_v20 = vld [vmem:[%s10239_s7 + $0x410] ss:$8 sps:$4 sm:$0xff]  }
 0x319   : > { %5526 = vmatprep.subr.bf16.mxu1 %v7462_v11  ;;  %v7481_v11 = vld [vmem:[%s10239_s7 + $0x420] ss:$8 sps:$4 sm:$0xff]  }
 0x31c   : > { %5527 = vmatpush1.bf16.msra.mxu1 %v7460_v26  ;;  %v7489_v26 = vld [vmem:[%s10239_s7 + $0x434] ss:$8 sps:$4 sm:$0xff]  }
 0x31d   : > { %5537 = vmatprep.subr.bf16.mxu1 %v7468_v5  ;;  %v7487_v5 = vld [vmem:[%s10239_s7 + $0x430] ss:$8 sps:$4 sm:$0xff]  }
 0x372   : > { %v6906_v24 = vpop.f32.mrb[80].mxu1 }
 0x373   : > { %v6928_v16 = vpop.f32.mrb[24].mxu0  ;;  %v6907_v18 = vpop.f32.mrb[81].mxu1 }
 0x374   : > { %v6929_v51 = vpop.f32.mrb[25].mxu0  ;;  %v6908_v33 = vadd.f32 %v6907_v18, %v6906_v24  ;;  %v6909_v3 = vpop.f32.mrb[82].mxu1  ;;  %v7499_v24 = vld [vmem:[%s10239_s7 + $0x450] ss:$8 sps:$4 sm:$0xff]   ;;  %v7502_v18 = vld [vmem:[%s10239_s7 + $0x160] ss:$8 sps:$4 sm:$0xff]  }
 0x375   : > { %v6930_v37 = vadd.f32 %v6929_v51, %v6928_v16  ;;  %v6931_v62 = vpop.f32.mrb[26].mxu0  ;;  %v6910_v28 = vpop.f32.mrb[83].mxu1  ;;  %v7495_v16 = vld [vmem:[%s10239_s7 + $0x444] ss:$8 sps:$4 sm:$0xff]   ;;  %v7498_v51 = vld [vmem:[%s10239_s7 + $0x154] ss:$8 sps:$4 sm:$0xff]  }
 0x376   : > { %v6932_v4 = vpop.f32.mrb[27].mxu0  ;;  %v6911_v41 = vadd.f32 %v6910_v28, %v6909_v3  ;;  %v7510_v3 = vld [vmem:[%s10239_s7 + $0x174] ss:$8 sps:$4 sm:$0xff]   ;;  %v7505_v28 = vld [vmem:[%s10239_s7 + $0x460] ss:$8 sps:$4 sm:$0xff]  }
 0x377   : > { %v6933_v46 = vadd.f32 %v6932_v4, %v6931_v62  ;;  %v3778_v43 = vadd.f32 %v6930_v37, %v6908_v33  ;;  %v7493_v37 = vld [vmem:[%s10239_s7 + $0x440] ss:$8 sps:$4 sm:$0xff]   ;;  %v7496_v62 = vld [vmem:[%s10239_s7 + $0x150] ss:$8 sps:$4 sm:$0xff]   ;;  %v7501_v4 = vld [vmem:[%s10239_s7 + $0x454] ss:$8 sps:$4 sm:$0xff]  }
 0x378   : > { %v7507_v33 = vld [vmem:[%s10239_s7 + $0x464] ss:$8 sps:$4 sm:$0xff]  }
 0x379   : > { %v3781_v32 = vadd.f32 %v6933_v46, %v6911_v41  ;;  %v7504_v46 = vld [vmem:[%s10239_s7 + $0x164] ss:$8 sps:$4 sm:$0xff]   ;;  %v7513_v41 = vld [vmem:[%s10239_s7 + $0x474] ss:$8 sps:$4 sm:$0xff]  }
 0x392   : > { %v6950_v27 = vpop.f32.mrb[84].mxu1 }
 0x393   : > { %v6972_v10 = vpop.f32.mrb[28].mxu0  ;;  %v6951_v12 = vpop.f32.mrb[85].mxu1 }
 0x394   : > { %v6973_v14 = vpop.f32.mrb[29].mxu0  ;;  %v6952_v15 = vadd.f32 %v6951_v12, %v6950_v27  ;;  %v6953_v56 = vpop.f32.mrb[86].mxu1  ;;  %v7525_v27 = vld [vmem:[%s10239_s7 + $0x494] ss:$8 sps:$4 sm:$0xff]   ;;  %v7528_v12 = vld [vmem:[%s10239_s7 + $0x1a4] ss:$8 sps:$4 sm:$0xff]  }
 0x395   : > { %v6974_v49 = vadd.f32 %v6973_v14, %v6972_v10  ;;  %v6975_v47 = vpop.f32.mrb[30].mxu0  ;;  %v6954_v17 = vpop.f32.mrb[87].mxu1  ;;  %v7511_v10 = vld [vmem:[%s10239_s7 + $0x470] ss:$8 sps:$4 sm:$0xff]   ;;  %v7514_v14 = vld [vmem:[%s10239_s7 + $0x180] ss:$8 sps:$4 sm:$0xff]  }
 0x396   : > { %v6976_v53 = vpop.f32.mrb[31].mxu0  ;;  %v3819_v48 = vadd.f32 %v6952_v15, %v3778_v43  ;;  %v6955_v31 = vadd.f32 %v6954_v17, %v6953_v56  ;;  %v7508_v43 = vld [vmem:[%s10239_s7 + $0x170] ss:$8 sps:$4 sm:$0xff]   ;;  %v7526_v56 = vld [vmem:[%s10239_s7 + $0x1a0] ss:$8 sps:$4 sm:$0xff]  }
 0x397   : > { %v6977_v52 = vadd.f32 %v6976_v53, %v6975_v47  ;;  %v7522_v47 = vld [vmem:[%s10239_s7 + $0x194] ss:$8 sps:$4 sm:$0xff]   ;;  %v7517_v53 = vld [vmem:[%s10239_s7 + $0x480] ss:$8 sps:$4 sm:$0xff]   ;;  %v7523_v15 = vld [vmem:[%s10239_s7 + $0x490] ss:$8 sps:$4 sm:$0xff]  }
 0x398   : > { %v3822_v35 = vadd.f32 %v6955_v31, %v3781_v32  ;;  %v3860_v1 = vadd.f32 %v6974_v49, %v3819_v48  ;;  %v7516_v32 = vld [vmem:[%s10239_s7 + $0x184] ss:$8 sps:$4 sm:$0xff]   ;;  %v7534_v48 = vld [vmem:[%s10239_s7 + $0x1b4] ss:$8 sps:$4 sm:$0xff]   ;;  %v7529_v31 = vld [vmem:[%s10239_s7 + $0x4a0] ss:$8 sps:$4 sm:$0xff]  }
 0x399   : > { %v7519_v49 = vld [vmem:[%s10239_s7 + $0x484] ss:$8 sps:$4 sm:$0xff]  }
 0x39a   : > { %v3863_v22 = vadd.f32 %v6977_v52, %v3822_v35  ;;  %v7520_v52 = vld [vmem:[%s10239_s7 + $0x190] ss:$8 sps:$4 sm:$0xff]   ;;  %v7531_v17 = vld [vmem:[%s10239_s7 + $0x4a4] ss:$8 sps:$4 sm:$0xff]  }
 0x39b   : > { %v7532_v35 = vld [vmem:[%s10239_s7 + $0x1b0] ss:$8 sps:$4 sm:$0xff]  }
 0x3b2   : > { %v3900_v39 = vpop.f32.mrb[88].mxu1 }
 0x3b3   : > { %v3901_v40 = vadd.f32 %v3900_v39, %v3860_v1  ;;  %v7089_v19 = vpop.f32.mrb[89].mxu1  ;;  %v7537_v1 = vld [vmem:[%s10239_s7 + $0x4b4] ss:$8 sps:$4 sm:$0xff]   ;;  %v7535_v39 = vld [vmem:[%s10239_s7 + $0x4b0] ss:$8 sps:$4 sm:$0xff]  }
 0x3b4   : > { %v3903_v13 = vpop.f32.mrb[90].mxu1  ;;  %v7546_v19 = vld [vmem:[%s10239_s7 + $0x1d4] ss:$8 sps:$4 sm:$0xff]  }
 0x3b5   : > { %vm3912_vm11 = vcmp.ge.f32.partialorder %v3901_v40, %v6413_v45  ;;  %v3904_v50 = vadd.f32 %v3903_v13, %v3863_v22  ;;  %v7090_v54 = vpop.f32.mrb[91].mxu1  ;;  %v7540_v22 = vld [vmem:[%s10239_s7 + $0x1c4] ss:$8 sps:$4 sm:$0xff]   ;;  %v7541_v13 = vld [vmem:[%s10239_s7 + $0x4c0] ss:$8 sps:$4 sm:$0xff]  }
 0x3b6   : > { %v3924_v59 = vsel %vm3912_vm11, %v6414_v2, %v6415_v9  ;;  %v7543_v40 = vld [vmem:[%s10239_s7 + $0x4c4] ss:$8 sps:$4 sm:$0xff]   ;;  %v7547_v54 = vld [vmem:[%s10239_s7 + $0x4d0] ss:$8 sps:$4 sm:$0xff]  }
 0x3b7   : > { %vm3913_vm3 = vcmp.ge.f32.partialorder %v3904_v50, %v6413_v45  ;;  %v7538_v45 = vld [vmem:[%s10239_s7 + $0x1c0] ss:$8 sps:$4 sm:$0xff]   ;;  %v7552_v50 = vld [vmem:[%s10239_s7 + $0x1e4] ss:$8 sps:$4 sm:$0xff]  }
 0x3b8   : > { %v3925_v8 = vsel %vm3913_vm3, %v6414_v2, %v6415_v9  ;;  %v7544_v2 = vld [vmem:[%s10239_s7 + $0x1d0] ss:$8 sps:$4 sm:$0xff]   ;;  %v7549_v9 = vld [vmem:[%s10239_s7 + $0x4d4] ss:$8 sps:$4 sm:$0xff]  }
 0x3b9   : > { %v9539_v7 = vpack.c.bf16 %v3925_v8, %v3924_v59  ;;  %v7550_v59 = vld [vmem:[%s10239_s7 + $0x1e0] ss:$8 sps:$4 sm:$0xff]   ;;  %v7555_v8 = vld [vmem:[%s10239_s7 + $0x4e4] ss:$8 sps:$4 sm:$0xff]  }
 0x3bb   : > { %v9542_v21 = vshrl.u32 %v9539_v7, 16  ;;  %v3940_v38 = vrot.slane %v9539_v7, 3 }
 0x3bd   : > { %5528 = vmatprep.mubr.bf16.mxu1 %v9542_v21  ;;  %v3934_v57 = vrot.slane %v9542_v21, 1  ;;  %v3942_v44 = vrot.slane %v9542_v21, 3  ;;  %v3946_v34 = vrot.slane %v9542_v21, 4 }
 0x3be   : > { %5529 = vmatmul.mubr.bf16.vlgmr.msra.gmra.mrb[92].mxu1 %v9539_v7 }
 0x3bf   : > { %5538 = vmatpush1.bf16.msra.mxu1 %v7466_v0  ;;  %5569 = vmatprep.mubr.bf16.mxu1 %v3934_v57  ;;  %v7558_v0 = vld [vmem:[%s10239_s7 + $0x1f4] ss:$8 sps:$4 sm:$0xff]   ;;  %v7556_v57 = vld [vmem:[%s10239_s7 + $0x1f0] ss:$8 sps:$4 sm:$0xff]  }
 0x3c0   : > { %5651 = vmatprep.mubr.bf16.mxu0 %v3942_v44  ;;  %5539 = vmatprep.subr.bf16.mxu1 %v7474_v36  ;;  %v7553_v36 = vld [vmem:[%s10239_s7 + $0x4e0] ss:$8 sps:$4 sm:$0xff]   ;;  %v7561_v44 = vld [vmem:[%s10239_s7 + $0x4f4] ss:$8 sps:$4 sm:$0xff]  }
 0x3c1   : > { %5652 = vmatmul.mubr.bf16.vlgmr.msra.gmra.mrb[32].mxu0 %v3940_v38  ;;  %v7559_v38 = vld [vmem:[%s10239_s7 + $0x4f0] ss:$8 sps:$4 sm:$0xff]  }
 0x3c2   : > { %5661 = vmatpush1.bf16.msra.mxu0 %v7469_v6  ;;  %5692 = vmatprep.mubr.bf16.mxu0 %v3946_v34  ;;  %v7564_v6 = vld [vmem:[%s10239_s7 + $0x204] ss:$8 sps:$4 sm:$0xff]  }
 0x3c3   : > { %5540 = vmatpush1.bf16.msra.mxu1 %v7472_v60  ;;  %5662 = vmatprep.subr.bf16.mxu0 %v7477_v29  ;;  %v7562_v60 = vld [vmem:[%s10239_s7 + $0x200] ss:$8 sps:$4 sm:$0xff]   ;;  %v3932_v29 = vrot.slane %v9539_v7, 1  ;;  %v7567_v34 = vld [vmem:[%s10239_s7 + $0x504] ss:$8 sps:$4 sm:$0xff]  }
 0x3c4   : > { %5541 = vmatprep.subr.bf16.mxu1 %v7480_v25  ;;  %v7570_v25 = vld [vmem:[%s10239_s7 + $0x214] ss:$8 sps:$4 sm:$0xff]  }
 0x3c6   : > { %5663 = vmatpush1.bf16.msra.mxu0 %v7475_v20  ;;  %v3938_v20 = vrot.slane %v9542_v21, 2 }
 0x3c7   : > { %5542 = vmatpush1.bf16.msra.mxu1 %v7478_v30  ;;  %5664 = vmatprep.subr.bf16.mxu0 %v7483_v61  ;;  %v7565_v30 = vld [vmem:[%s10239_s7 + $0x500] ss:$8 sps:$4 sm:$0xff]   ;;  %v3944_v61 = vrot.slane %v9539_v7, 4 }
 0x3c8   : > { %5543 = vmatprep.subr.bf16.mxu1 %v7486_v23  ;;  %v7568_v23 = vld [vmem:[%s10239_s7 + $0x210] ss:$8 sps:$4 sm:$0xff]  }
 0x3ca   : > { %5665 = vmatpush1.bf16.msra.mxu0 %v7481_v11  ;;  %v7573_v11 = vld [vmem:[%s10239_s7 + $0x514] ss:$8 sps:$4 sm:$0xff]  }
 0x3cb   : > { %5544 = vmatpush1.bf16.msra.mxu1 %v7484_v58  ;;  %5666 = vmatprep.subr.bf16.mxu0 %v7489_v26  ;;  %v3950_v58 = vrot.slane %v9542_v21, 5  ;;  %v7576_v26 = vld [vmem:[%s10239_s7 + $0x224] ss:$8 sps:$4 sm:$0xff]  }
 0x3cc   : > { %5545 = vmatprep.subr.bf16.mxu1 %v7492_v63  ;;  %v7571_v63 = vld [vmem:[%s10239_s7 + $0x510] ss:$8 sps:$4 sm:$0xff]  }
 0x3ce   : > { %5667 = vmatpush1.bf16.msra.mxu0 %v7487_v5  ;;  %v7574_v5 = vld [vmem:[%s10239_s7 + $0x220] ss:$8 sps:$4 sm:$0xff]  }
 0x3cf   : > { %5546 = vmatpush1.bf16.msra.mxu1 %v7490_v42  ;;  %5668 = vmatprep.subr.bf16.mxu0 %v7495_v16  ;;  %v7579_v42 = vld [vmem:[%s10239_s7 + $0x524] ss:$8 sps:$4 sm:$0xff]   ;;  %v7582_v16 = vld [vmem:[%s10239_s7 + $0x234] ss:$8 sps:$4 sm:$0xff]  }
 0x3d0   : > { %5547 = vmatprep.subr.bf16.mxu1 %v7498_v51  ;;  %v7577_v51 = vld [vmem:[%s10239_s7 + $0x520] ss:$8 sps:$4 sm:$0xff]  }
 0x3d2   : > { %5669 = vmatpush1.bf16.msra.mxu0 %v7493_v37  ;;  %v7580_v37 = vld [vmem:[%s10239_s7 + $0x230] ss:$8 sps:$4 sm:$0xff]  }
 0x3d3   : > { %5548 = vmatpush1.bf16.msra.mxu1 %v7496_v62  ;;  %5670 = vmatprep.subr.bf16.mxu0 %v7501_v4  ;;  %v7585_v62 = vld [vmem:[%s10239_s7 + $0x534] ss:$8 sps:$4 sm:$0xff]   ;;  %v7588_v4 = vld [vmem:[%s10239_s7 + $0x244] ss:$8 sps:$4 sm:$0xff]  }
 0x3d4   : > { %5549 = vmatprep.subr.bf16.mxu1 %v7504_v46  ;;  %v7583_v46 = vld [vmem:[%s10239_s7 + $0x530] ss:$8 sps:$4 sm:$0xff]  }
 0x3d6   : > { %5671 = vmatpush1.bf16.msra.mxu0 %v7499_v24  ;;  %v7586_v24 = vld [vmem:[%s10239_s7 + $0x240] ss:$8 sps:$4 sm:$0xff]  }
 0x3d7   : > { %5550 = vmatpush1.bf16.msra.mxu1 %v7502_v18  ;;  %5672 = vmatprep.subr.bf16.mxu0 %v7507_v33  ;;  %v7591_v18 = vld [vmem:[%s10239_s7 + $0x544] ss:$8 sps:$4 sm:$0xff]   ;;  %v7594_v33 = vld [vmem:[%s10239_s7 + $0x254] ss:$8 sps:$4 sm:$0xff]  }
 0x3d8   : > { %5551 = vmatprep.subr.bf16.mxu1 %v7510_v3  ;;  %v7589_v3 = vld [vmem:[%s10239_s7 + $0x540] ss:$8 sps:$4 sm:$0xff]  }
 0x3da   : > { %5673 = vmatpush1.bf16.msra.mxu0 %v7505_v28  ;;  %v7592_v28 = vld [vmem:[%s10239_s7 + $0x250] ss:$8 sps:$4 sm:$0xff]  }
 0x3db   : > { %5552 = vmatpush1.bf16.msra.mxu1 %v7508_v43  ;;  %5674 = vmatprep.subr.bf16.mxu0 %v7513_v41  ;;  %v7597_v43 = vld [vmem:[%s10239_s7 + $0x554] ss:$8 sps:$4 sm:$0xff]   ;;  %v7600_v41 = vld [vmem:[%s10239_s7 + $0x264] ss:$8 sps:$4 sm:$0xff]  }
 0x3dc   : > { %5553 = vmatprep.subr.bf16.mxu1 %v7516_v32  ;;  %v7595_v32 = vld [vmem:[%s10239_s7 + $0x550] ss:$8 sps:$4 sm:$0xff]  }
 0x3de   : > { %5675 = vmatpush1.bf16.msra.mxu0 %v7511_v10  ;;  %v7598_v10 = vld [vmem:[%s10239_s7 + $0x260] ss:$8 sps:$4 sm:$0xff]  }
 0x3df   : > { %5554 = vmatpush1.bf16.msra.mxu1 %v7514_v14  ;;  %5676 = vmatprep.subr.bf16.mxu0 %v7519_v49  ;;  %v7603_v14 = vld [vmem:[%s10239_s7 + $0x564] ss:$8 sps:$4 sm:$0xff]   ;;  %v7606_v49 = vld [vmem:[%s10239_s7 + $0x274] ss:$8 sps:$4 sm:$0xff]  }
 0x3e0   : > { %5555 = vmatprep.subr.bf16.mxu1 %v7522_v47  ;;  %v7601_v47 = vld [vmem:[%s10239_s7 + $0x560] ss:$8 sps:$4 sm:$0xff]  }
 0x3e2   : > { %5677 = vmatpush1.bf16.msra.mxu0 %v7517_v53  ;;  %v7604_v53 = vld [vmem:[%s10239_s7 + $0x270] ss:$8 sps:$4 sm:$0xff]  }
 0x3e3   : > { %5556 = vmatpush1.bf16.msra.mxu1 %v7520_v52  ;;  %5678 = vmatprep.subr.bf16.mxu0 %v7525_v27  ;;  %v7609_v52 = vld [vmem:[%s10239_s7 + $0x574] ss:$8 sps:$4 sm:$0xff]   ;;  %v7612_v27 = vld [vmem:[%s10239_s7 + $0x284] ss:$8 sps:$4 sm:$0xff]  }
 0x3e4   : > { %5557 = vmatprep.subr.bf16.mxu1 %v7528_v12  ;;  %v7607_v12 = vld [vmem:[%s10239_s7 + $0x570] ss:$8 sps:$4 sm:$0xff]  }
 0x3e6   : > { %5679 = vmatpush1.bf16.msra.mxu0 %v7523_v15  ;;  %v7610_v15 = vld [vmem:[%s10239_s7 + $0x280] ss:$8 sps:$4 sm:$0xff]  }
 0x3e7   : > { %5558 = vmatpush1.bf16.msra.mxu1 %v7526_v56  ;;  %5680 = vmatprep.subr.bf16.mxu0 %v7531_v17  ;;  %v7615_v56 = vld [vmem:[%s10239_s7 + $0x584] ss:$8 sps:$4 sm:$0xff]   ;;  %v7618_v17 = vld [vmem:[%s10239_s7 + $0x294] ss:$8 sps:$4 sm:$0xff]  }
 0x3e8   : > { %5559 = vmatprep.subr.bf16.mxu1 %v7534_v48  ;;  %v7613_v48 = vld [vmem:[%s10239_s7 + $0x580] ss:$8 sps:$4 sm:$0xff]  }
 0x3ea   : > { %5681 = vmatpush1.bf16.msra.mxu0 %v7529_v31  ;;  %v7616_v31 = vld [vmem:[%s10239_s7 + $0x290] ss:$8 sps:$4 sm:$0xff]  }
 0x3eb   : > { %5560 = vmatpush1.bf16.msra.mxu1 %v7532_v35  ;;  %5682 = vmatprep.subr.bf16.mxu0 %v7537_v1  ;;  %v7621_v35 = vld [vmem:[%s10239_s7 + $0x594] ss:$8 sps:$4 sm:$0xff]   ;;  %v7624_v1 = vld [vmem:[%s10239_s7 + $0x2a4] ss:$8 sps:$4 sm:$0xff]  }
 0x3ec   : > { %5561 = vmatprep.subr.bf16.mxu1 %v7540_v22  ;;  %v7619_v22 = vld [vmem:[%s10239_s7 + $0x590] ss:$8 sps:$4 sm:$0xff]  }
 0x3ee   : > { %5683 = vmatpush1.bf16.msra.mxu0 %v7535_v39  ;;  %v7622_v39 = vld [vmem:[%s10239_s7 + $0x2a0] ss:$8 sps:$4 sm:$0xff]  }
 0x3ef   : > { %5562 = vmatpush1.bf16.msra.mxu1 %v7538_v45  ;;  %5684 = vmatprep.subr.bf16.mxu0 %v7543_v40  ;;  %v7627_v45 = vld [vmem:[%s10239_s7 + $0x5a4] ss:$8 sps:$4 sm:$0xff]   ;;  %v7630_v40 = vld [vmem:[%s10239_s7 + $0x2b4] ss:$8 sps:$4 sm:$0xff]  }
 0x3f0   : > { %5563 = vmatprep.subr.bf16.mxu1 %v7546_v19  ;;  %v7625_v19 = vld [vmem:[%s10239_s7 + $0x5a0] ss:$8 sps:$4 sm:$0xff]  }
 0x3f2   : > { %5685 = vmatpush1.bf16.msra.mxu0 %v7541_v13  ;;  %v7628_v13 = vld [vmem:[%s10239_s7 + $0x2b0] ss:$8 sps:$4 sm:$0xff]  }
 0x3f3   : > { %5564 = vmatpush1.bf16.msra.mxu1 %v7544_v2  ;;  %5686 = vmatprep.subr.bf16.mxu0 %v7549_v9  ;;  %v7633_v2 = vld [vmem:[%s10239_s7 + $0x5b4] ss:$8 sps:$4 sm:$0xff]   ;;  %v7636_v9 = vld [vmem:[%s10239_s7 + $0x2c4] ss:$8 sps:$4 sm:$0xff]  }
 0x3f4   : > { %5565 = vmatprep.subr.bf16.mxu1 %v7552_v50  ;;  %v7631_v50 = vld [vmem:[%s10239_s7 + $0x5b0] ss:$8 sps:$4 sm:$0xff]  }
 0x3f6   : > { %5687 = vmatpush1.bf16.msra.mxu0 %v7547_v54  ;;  %v7634_v54 = vld [vmem:[%s10239_s7 + $0x2c0] ss:$8 sps:$4 sm:$0xff]  }
 0x3f7   : > { %5566 = vmatpush1.bf16.msra.mxu1 %v7550_v59  ;;  %5688 = vmatprep.subr.bf16.mxu0 %v7555_v8  ;;  %v7639_v59 = vld [vmem:[%s10239_s7 + $0x5c4] ss:$8 sps:$4 sm:$0xff]   ;;  %v7642_v8 = vld [vmem:[%s10239_s7 + $0x2d4] ss:$8 sps:$4 sm:$0xff]  }
 0x3f8   : > { %5567 = vmatprep.subr.bf16.mxu1 %v7558_v0  ;;  %v7637_v0 = vld [vmem:[%s10239_s7 + $0x5c0] ss:$8 sps:$4 sm:$0xff]  }
 0x3fa   : > { %5689 = vmatpush1.bf16.msra.mxu0 %v7553_v36  ;;  %v7640_v36 = vld [vmem:[%s10239_s7 + $0x2d0] ss:$8 sps:$4 sm:$0xff]  }
 0x3fb   : > { %5568 = vmatpush1.bf16.msra.mxu1 %v7556_v57  ;;  %5690 = vmatprep.subr.bf16.mxu0 %v7561_v44  ;;  %v7645_v57 = vld [vmem:[%s10239_s7 + $0x5d4] ss:$8 sps:$4 sm:$0xff]   ;;  %v7648_v44 = vld [vmem:[%s10239_s7 + $0x2e4] ss:$8 sps:$4 sm:$0xff]  }
 0x3fc   : > { %5578 = vmatprep.subr.bf16.mxu1 %v7564_v6  ;;  %v7643_v6 = vld [vmem:[%s10239_s7 + $0x5d0] ss:$8 sps:$4 sm:$0xff]  }
 0x3fe   : > { %5691 = vmatpush1.bf16.msra.mxu0 %v7559_v38  ;;  %5570 = vmatmul.mubr.bf16.vlgmr.msra.gmra.mrb[92].mxu1 %v3932_v29  ;;  %v7646_v38 = vld [vmem:[%s10239_s7 + $0x2e0] ss:$8 sps:$4 sm:$0xff]   ;;  %v7654_v29 = vld [vmem:[%s10239_s7 + $0x2f4] ss:$8 sps:$4 sm:$0xff]  }
 0x3ff   : > { %5579 = vmatpush1.bf16.msra.mxu1 %v7562_v60  ;;  %5610 = vmatprep.mubr.bf16.mxu1 %v3938_v20  ;;  %v7651_v60 = vld [vmem:[%s10239_s7 + $0x5e4] ss:$8 sps:$4 sm:$0xff]   ;;  %v7657_v20 = vld [vmem:[%s10239_s7 + $0x5f4] ss:$8 sps:$4 sm:$0xff]  }
 0x400   : > { %5701 = vmatprep.subr.bf16.mxu0 %v7567_v34  ;;  %5580 = vmatprep.subr.bf16.mxu1 %v7570_v25  ;;  %v7649_v34 = vld [vmem:[%s10239_s7 + $0x5e0] ss:$8 sps:$4 sm:$0xff]   ;;  %v7652_v25 = vld [vmem:[%s10239_s7 + $0x2f0] ss:$8 sps:$4 sm:$0xff]  }
 0x401   : > { %5693 = vmatmul.mubr.bf16.vlgmr.msra.gmra.mrb[32].mxu0 %v3944_v61  ;;  %v7660_v61 = vld [vmem:[%s10239_s7 + $0x604] ss:$8 sps:$4 sm:$0xff]  }
 0x402   : > { %5702 = vmatpush1.bf16.msra.mxu0 %v7565_v30  ;;  %5733 = vmatprep.mubr.bf16.mxu0 %v3950_v58  ;;  %v7655_v30 = vld [vmem:[%s10239_s7 + $0x5f0] ss:$8 sps:$4 sm:$0xff]   ;;  %v3948_v58 = vrot.slane %v9539_v7, 5 }
 0x403   : > { %5581 = vmatpush1.bf16.msra.mxu1 %v7568_v23  ;;  %5703 = vmatprep.subr.bf16.mxu0 %v7573_v11  ;;  %v3936_v23 = vrot.slane %v9539_v7, 2  ;;  %v7658_v11 = vld [vmem:[%s10239_s7 + $0x600] ss:$8 sps:$4 sm:$0xff]  }
 0x404   : > { %5582 = vmatprep.subr.bf16.mxu1 %v7576_v26  ;;  %v7663_v26 = vld [vmem:[%s10239_s7 + $0x614] ss:$8 sps:$4 sm:$0xff]  }
 0x406   : > { %5704 = vmatpush1.bf16.msra.mxu0 %v7571_v63  ;;  %v3954_v63 = vrot.slane %v9542_v21, 6 }
 0x407   : > { %5583 = vmatpush1.bf16.msra.mxu1 %v7574_v5  ;;  %5705 = vmatprep.subr.bf16.mxu0 %v7579_v42  ;;  %v7661_v5 = vld [vmem:[%s10239_s7 + $0x610] ss:$8 sps:$4 sm:$0xff]   ;;  %v7666_v42 = vld [vmem:[%s10239_s7 + $0x624] ss:$8 sps:$4 sm:$0xff]  }
 0x408   : > { %5584 = vmatprep.subr.bf16.mxu1 %v7582_v16  ;;  %v7664_v16 = vld [vmem:[%s10239_s7 + $0x620] ss:$8 sps:$4 sm:$0xff]  }
 0x40a   : > { %5706 = vmatpush1.bf16.msra.mxu0 %v7577_v51  ;;  %v7669_v51 = vld [vmem:[%s10239_s7 + $0x634] ss:$8 sps:$4 sm:$0xff]  }
 0x40b   : > { %5585 = vmatpush1.bf16.msra.mxu1 %v7580_v37  ;;  %5707 = vmatprep.subr.bf16.mxu0 %v7585_v62  ;;  %v7667_v37 = vld [vmem:[%s10239_s7 + $0x630] ss:$8 sps:$4 sm:$0xff]   ;;  %v7672_v62 = vld [vmem:[%s10239_s7 + $0x644] ss:$8 sps:$4 sm:$0xff]  }
 0x40c   : > { %5586 = vmatprep.subr.bf16.mxu1 %v7588_v4  ;;  %v7670_v4 = vld [vmem:[%s10239_s7 + $0x640] ss:$8 sps:$4 sm:$0xff]  }
 0x40e   : > { %5708 = vmatpush1.bf16.msra.mxu0 %v7583_v46  ;;  %v7675_v46 = vld [vmem:[%s10239_s7 + $0x654] ss:$8 sps:$4 sm:$0xff]  }
 0x40f   : > { %5587 = vmatpush1.bf16.msra.mxu1 %v7586_v24  ;;  %5709 = vmatprep.subr.bf16.mxu0 %v7591_v18  ;;  %v7673_v24 = vld [vmem:[%s10239_s7 + $0x650] ss:$8 sps:$4 sm:$0xff]   ;;  %v7678_v18 = vld [vmem:[%s10239_s7 + $0x664] ss:$8 sps:$4 sm:$0xff]  }
 0x410   : > { %5588 = vmatprep.subr.bf16.mxu1 %v7594_v33  ;;  %v7676_v33 = vld [vmem:[%s10239_s7 + $0x660] ss:$8 sps:$4 sm:$0xff]  }
 0x412   : > { %5710 = vmatpush1.bf16.msra.mxu0 %v7589_v3  ;;  %v7681_v3 = vld [vmem:[%s10239_s7 + $0x674] ss:$8 sps:$4 sm:$0xff]  }
 0x413   : > { %5589 = vmatpush1.bf16.msra.mxu1 %v7592_v28  ;;  %5711 = vmatprep.subr.bf16.mxu0 %v7597_v43  ;;  %v7679_v28 = vld [vmem:[%s10239_s7 + $0x670] ss:$8 sps:$4 sm:$0xff]   ;;  %v7684_v43 = vld [vmem:[%s10239_s7 + $0x684] ss:$8 sps:$4 sm:$0xff]  }
 0x414   : > { %5590 = vmatprep.subr.bf16.mxu1 %v7600_v41  ;;  %v7682_v41 = vld [vmem:[%s10239_s7 + $0x680] ss:$8 sps:$4 sm:$0xff]  }
 0x416   : > { %5712 = vmatpush1.bf16.msra.mxu0 %v7595_v32  ;;  %v7687_v32 = vld [vmem:[%s10239_s7 + $0x694] ss:$8 sps:$4 sm:$0xff]  }
 0x417   : > { %5591 = vmatpush1.bf16.msra.mxu1 %v7598_v10  ;;  %5713 = vmatprep.subr.bf16.mxu0 %v7603_v14  ;;  %v7685_v10 = vld [vmem:[%s10239_s7 + $0x690] ss:$8 sps:$4 sm:$0xff]   ;;  %v7690_v14 = vld [vmem:[%s10239_s7 + $0x6a4] ss:$8 sps:$4 sm:$0xff]  }
 0x418   : > { %5592 = vmatprep.subr.bf16.mxu1 %v7606_v49  ;;  %v7688_v49 = vld [vmem:[%s10239_s7 + $0x6a0] ss:$8 sps:$4 sm:$0xff]  }
 0x41a   : > { %5714 = vmatpush1.bf16.msra.mxu0 %v7601_v47  ;;  %v7693_v47 = vld [vmem:[%s10239_s7 + $0x6b4] ss:$8 sps:$4 sm:$0xff]  }
 0x41b   : > { %5593 = vmatpush1.bf16.msra.mxu1 %v7604_v53  ;;  %5715 = vmatprep.subr.bf16.mxu0 %v7609_v52  ;;  %v7691_v53 = vld [vmem:[%s10239_s7 + $0x6b0] ss:$8 sps:$4 sm:$0xff]   ;;  %v7696_v52 = vld [vmem:[%s10239_s7 + $0x6c4] ss:$8 sps:$4 sm:$0xff]  }
 0x41c   : > { %5594 = vmatprep.subr.bf16.mxu1 %v7612_v27  ;;  %v7694_v27 = vld [vmem:[%s10239_s7 + $0x6c0] ss:$8 sps:$4 sm:$0xff]  }
 0x41e   : > { %5716 = vmatpush1.bf16.msra.mxu0 %v7607_v12  ;;  %v7699_v12 = vld [vmem:[%s10239_s7 + $0x6d4] ss:$8 sps:$4 sm:$0xff]  }
 0x41f   : > { %5595 = vmatpush1.bf16.msra.mxu1 %v7610_v15  ;;  %5717 = vmatprep.subr.bf16.mxu0 %v7615_v56  ;;  %v7697_v15 = vld [vmem:[%s10239_s7 + $0x6d0] ss:$8 sps:$4 sm:$0xff]   ;;  %v7702_v56 = vld [vmem:[%s10239_s7 + $0x6e4] ss:$8 sps:$4 sm:$0xff]  }
 0x420   : > { %5596 = vmatprep.subr.bf16.mxu1 %v7618_v17  ;;  %v7700_v17 = vld [vmem:[%s10239_s7 + $0x6e0] ss:$8 sps:$4 sm:$0xff]  }
 0x422   : > { %5718 = vmatpush1.bf16.msra.mxu0 %v7613_v48  ;;  %v7705_v48 = vld [vmem:[%s10239_s7 + $0x6f4] ss:$8 sps:$4 sm:$0xff]  }
 0x423   : > { %5597 = vmatpush1.bf16.msra.mxu1 %v7616_v31  ;;  %5719 = vmatprep.subr.bf16.mxu0 %v7621_v35  ;;  %v7703_v31 = vld [vmem:[%s10239_s7 + $0x6f0] ss:$8 sps:$4 sm:$0xff]   ;;  %v7708_v35 = vld [vmem:[%s10239_s7 + $0x704] ss:$8 sps:$4 sm:$0xff]  }
 0x424   : > { %5598 = vmatprep.subr.bf16.mxu1 %v7624_v1  ;;  %v7706_v1 = vld [vmem:[%s10239_s7 + $0x700] ss:$8 sps:$4 sm:$0xff]  }
 0x426   : > { %5720 = vmatpush1.bf16.msra.mxu0 %v7619_v22  ;;  %v3952_v22 = vrot.slane %v9539_v7, 6 }
 0x427   : > { %5599 = vmatpush1.bf16.msra.mxu1 %v7622_v39  ;;  %5721 = vmatprep.subr.bf16.mxu0 %v7627_v45  ;;  %v7711_v39 = vld [vmem:[%s10239_s7 + $0x714] ss:$8 sps:$4 sm:$0xff]   ;;  %v3958_v45 = vrot.slane %v9542_v21, 7 }
 0x428   : > { %5600 = vmatprep.subr.bf16.mxu1 %v7630_v40  ;;  %v7709_v40 = vld [vmem:[%s10239_s7 + $0x710] ss:$8 sps:$4 sm:$0xff]   ;;  %v7717_v21 = vld [vmem:[%s10239_s7 + $0x734] ss:$8 sps:$4 sm:$0xff]  }
 0x42a   : > { %5722 = vmatpush1.bf16.msra.mxu0 %v7625_v19  ;;  %v7714_v19 = vld [vmem:[%s10239_s7 + $0x724] ss:$8 sps:$4 sm:$0xff]  }
 0x42b   : > { %5601 = vmatpush1.bf16.msra.mxu1 %v7628_v13  ;;  %5723 = vmatprep.subr.bf16.mxu0 %v7633_v2  ;;  %v7712_v13 = vld [vmem:[%s10239_s7 + $0x720] ss:$8 sps:$4 sm:$0xff]   ;;  %v7715_v2 = vld [vmem:[%s10239_s7 + $0x730] ss:$8 sps:$4 sm:$0xff]  }
 0x42c   : > { %5602 = vmatprep.subr.bf16.mxu1 %v7636_v9  ;;  %v7720_v9 = vld [vmem:[%s10239_s7 + $0x744] ss:$8 sps:$4 sm:$0xff]  }
 0x42e   : > { %5724 = vmatpush1.bf16.msra.mxu0 %v7631_v50  ;;  %v7718_v50 = vld [vmem:[%s10239_s7 + $0x740] ss:$8 sps:$4 sm:$0xff]  }
 0x42f   : > { %5603 = vmatpush1.bf16.msra.mxu1 %v7634_v54  ;;  %5725 = vmatprep.subr.bf16.mxu0 %v7639_v59  ;;  %v7723_v54 = vld [vmem:[%s10239_s7 + $0x754] ss:$8 sps:$4 sm:$0xff]   ;;  %v7721_v59 = vld [vmem:[%s10239_s7 + $0x750] ss:$8 sps:$4 sm:$0xff]  }
 0x430   : > { %5604 = vmatprep.subr.bf16.mxu1 %v7642_v8  ;;  %v7726_v8 = vld [vmem:[%s10239_s7 + $0x764] ss:$8 sps:$4 sm:$0xff]  }
 0x432   : > { %5726 = vmatpush1.bf16.msra.mxu0 %v7637_v0  ;;  %v7754_v0 = vld [vmem:[%s10241_s9 + $0x40] sm:$0xff]  }
 0x433   : > { %5605 = vmatpush1.bf16.msra.mxu1 %v7640_v36  ;;  %5727 = vmatprep.subr.bf16.mxu0 %v7645_v57  ;;  %v7755_v36 = vld [vmem:[%s10241_s9] sm:$0xff]   ;;  %v7756_v57 = vld [vmem:[%s10241_s9 + $0x48] sm:$0xff]  }
 0x434   : > { %5606 = vmatprep.subr.bf16.mxu1 %v7648_v44  ;;  %v7724_v44 = vld [vmem:[%s10239_s7 + $0x760] ss:$8 sps:$4 sm:$0xff]  }
 0x436   : > { %5728 = vmatpush1.bf16.msra.mxu0 %v7643_v6  ;;  %v7729_v6 = vld [vmem:[%s10239_s7 + $0x774] ss:$8 sps:$4 sm:$0xff]  }
 0x437   : > { %5607 = vmatpush1.bf16.msra.mxu1 %v7646_v38  ;;  %5729 = vmatprep.subr.bf16.mxu0 %v7651_v60  ;;  %v7757_v38 = vld [vmem:[%s10241_s9 + $0x8] sm:$0xff]   ;;  %v7758_v60 = vld [vmem:[%s10241_s9 + $0x50] sm:$0xff]  }
 0x438   : > { %5608 = vmatprep.subr.bf16.mxu1 %v7654_v29  ;;  %v7727_v29 = vld [vmem:[%s10239_s7 + $0x770] ss:$8 sps:$4 sm:$0xff]  }
 0x43a   : > { %5730 = vmatpush1.bf16.msra.mxu0 %v7649_v34  ;;  %v7732_v34 = vld [vmem:[%s10239_s7 + $0x784] ss:$8 sps:$4 sm:$0xff]  }
 0x43b   : > { %5609 = vmatpush1.bf16.msra.mxu1 %v7652_v25  ;;  %5731 = vmatprep.subr.bf16.mxu0 %v7657_v20  ;;  %v7759_v25 = vld [vmem:[%s10241_s9 + $0x10] sm:$0xff]   ;;  %v7760_v20 = vld [vmem:[%s10241_s9 + $0x58] sm:$0xff]  }
 0x43c   : > { %6987 = vmatprep.subr.bf16.mxu1 %v7754_v0 }
 0x43e   : > { %5732 = vmatpush1.bf16.msra.mxu0 %v7655_v30  ;;  %5611 = vmatmul.mubr.bf16.vlgmr.msra.gmra.mrb[92].mxu1 %v3936_v23  ;;  %v7730_v30 = vld [vmem:[%s10239_s7 + $0x780] ss:$8 sps:$4 sm:$0xff]   ;;  %v7761_v23 = vld [vmem:[%s10241_s9 + $0x18] sm:$0xff]  }
 0x43f   : > { %5742 = vmatprep.subr.bf16.mxu0 %v7660_v61  ;;  %6988 = vmatpush3.bf16.msra.mxu1 %v7755_v36  ;;  %v7735_v61 = vld [vmem:[%s10239_s7 + $0x794] ss:$8 sps:$4 sm:$0xff]  }
 0x440   : > { %6989 = vmatprep.subr.bf16.mxu1 %v7756_v57 }
 0x441   : > { %5734 = vmatmul.mubr.bf16.vlgmr.msra.gmra.mrb[32].mxu0 %v3948_v58  ;;  %v7733_v58 = vld [vmem:[%s10239_s7 + $0x790] ss:$8 sps:$4 sm:$0xff]  }
 0x442   : > { %5743 = vmatpush1.bf16.msra.mxu0 %v7658_v11  ;;  %5774 = vmatprep.mubr.bf16.mxu0 %v3954_v63  ;;  %v7762_v11 = vld [vmem:[%s10241_s9 + $0x60] sm:$0xff]  }
 0x443   : > { %5744 = vmatprep.subr.bf16.mxu0 %v7663_v26  ;;  %6990 = vmatpush3.bf16.msra.mxu1 %v7757_v38  ;;  %v7738_v26 = vld [vmem:[%s10239_s7 + $0x7a4] ss:$8 sps:$4 sm:$0xff]  }
 0x444   : > { %6991 = vmatprep.subr.bf16.mxu1 %v7758_v60  ;;  %v7763_v63 = vld [vmem:[%s10241_s9 + $0x20] sm:$0xff]  }
 0x446   : > { %5745 = vmatpush1.bf16.msra.mxu0 %v7661_v5  ;;  %v7764_v5 = vld [vmem:[%s10241_s9 + $0x68] sm:$0xff]  }
 0x447   : > { %5746 = vmatprep.subr.bf16.mxu0 %v7666_v42  ;;  %6992 = vmatpush3.bf16.msra.mxu1 %v7759_v25  ;;  %v7736_v42 = vld [vmem:[%s10239_s7 + $0x7a0] ss:$8 sps:$4 sm:$0xff]  }
 0x448   : > { %6993 = vmatprep.subr.bf16.mxu1 %v7760_v20 }
 0x44a   : > { %5747 = vmatpush1.bf16.msra.mxu0 %v7664_v16  ;;  %v7741_v16 = vld [vmem:[%s10239_s7 + $0x7b4] ss:$8 sps:$4 sm:$0xff]  }
 0x44b   : > { %5748 = vmatprep.subr.bf16.mxu0 %v7669_v51  ;;  %6994 = vmatpush3.bf16.msra.mxu1 %v7761_v23  ;;  %v7765_v51 = vld [vmem:[%s10241_s9 + $0x28] sm:$0xff]  }
 0x44c   : > { %6995 = vmatprep.subr.bf16.mxu1 %v7762_v11 }
 0x44e   : > { %5749 = vmatpush1.bf16.msra.mxu0 %v7667_v37  ;;  %v7766_v37 = vld [vmem:[%s10241_s9 + $0x70] sm:$0xff]  }
 0x44f   : > { %5750 = vmatprep.subr.bf16.mxu0 %v7672_v62  ;;  %6996 = vmatpush3.bf16.msra.mxu1 %v7763_v63  ;;  %v7739_v62 = vld [vmem:[%s10239_s7 + $0x7b0] ss:$8 sps:$4 sm:$0xff]  }
 0x450   : > { %6997 = vmatprep.subr.bf16.mxu1 %v7764_v5 }
 0x452   : > { %5751 = vmatpush1.bf16.msra.mxu0 %v7670_v4  ;;  %v7744_v4 = vld [vmem:[%s10239_s7 + $0x7c4] ss:$8 sps:$4 sm:$0xff]  }
 0x453   : > { %5752 = vmatprep.subr.bf16.mxu0 %v7675_v46  ;;  %6998 = vmatpush3.bf16.msra.mxu1 %v7765_v51  ;;  %v7742_v46 = vld [vmem:[%s10239_s7 + $0x7c0] ss:$8 sps:$4 sm:$0xff]  }
 0x454   : > { %6999 = vmatprep.subr.bf16.mxu1 %v7766_v37 }
 0x456   : > { %5753 = vmatpush1.bf16.msra.mxu0 %v7673_v24  ;;  %v7747_v24 = vld [vmem:[%s10239_s7 + $0x7d4] ss:$8 sps:$4 sm:$0xff]  }
 0x457   : > { %5754 = vmatprep.subr.bf16.mxu0 %v7678_v18  ;;  %v7745_v18 = vld [vmem:[%s10239_s7 + $0x7d0] ss:$8 sps:$4 sm:$0xff]  }
 0x45a   : > { %5755 = vmatpush1.bf16.msra.mxu0 %v7676_v33  ;;  %v7750_v33 = vld [vmem:[%s10239_s7 + $0x7e4] ss:$8 sps:$4 sm:$0xff]  }
 0x45b   : > { %5756 = vmatprep.subr.bf16.mxu0 %v7681_v3  ;;  %v7748_v3 = vld [vmem:[%s10239_s7 + $0x7e0] ss:$8 sps:$4 sm:$0xff]  }
 0x45e   : > { %5757 = vmatpush1.bf16.msra.mxu0 %v7679_v28  ;;  %v7753_v28 = vld [vmem:[%s10239_s7 + $0x7f4] ss:$8 sps:$4 sm:$0xff]  }
 0x45f   : > { %5758 = vmatprep.subr.bf16.mxu0 %v7684_v43  ;;  %v7751_v43 = vld [vmem:[%s10239_s7 + $0x7f0] ss:$8 sps:$4 sm:$0xff]  }
 0x462   : > { %5759 = vmatpush1.bf16.msra.mxu0 %v7682_v41  ;;  %v3956_v41 = vrot.slane %v9539_v7, 7  ;;  %v5826_v7 = vlaneseq }
 0x463   : > { %5760 = vmatprep.subr.bf16.mxu0 %v7687_v32 }
 0x466   : > { %5761 = vmatpush1.bf16.msra.mxu0 %v7685_v10 }
 0x467   : > { %5762 = vmatprep.subr.bf16.mxu0 %v7690_v14 }
 0x46a   : > { %5763 = vmatpush1.bf16.msra.mxu0 %v7688_v49 }
 0x46b   : > { %5764 = vmatprep.subr.bf16.mxu0 %v7693_v47  ;;  %v7767_v47 = vld [vmem:[%s10241_s9 + $0x30] sm:$0xff]  }
 0x46c   : > { %7000 = vmatpush3.bf16.msra.mxu1 %v7767_v47 }
 0x46e   : > { %5765 = vmatpush1.bf16.msra.mxu0 %v7691_v53  ;;  %v7768_v53 = vld [vmem:[%s10241_s9 + $0x78] sm:$0xff]  }
 0x46f   : > { %5766 = vmatprep.subr.bf16.mxu0 %v7696_v52  ;;  %v7769_v52 = vld [vmem:[%s10241_s9 + $0x38] sm:$0xff]   ;;  %7001 = vmatprep.subr.bf16.mxu1 %v7768_v53 }
 0x470   : > { %7002 = vmatpush3.bf16.msra.mxu1 %v7769_v52 }
 0x472   : > { %5767 = vmatpush1.bf16.msra.mxu0 %v7694_v27  ;;  %v5827_v27 = vshrl.u32 %v5826_v7, 7 }
 0x473   : > { %5768 = vmatprep.subr.bf16.mxu0 %v7699_v12 }
 0x474   : > { %v5828_v12 = vsub.s32 0, %v5827_v27 }
 0x476   : > { %5769 = vmatpush1.bf16.msra.mxu0 %v7697_v15  ;;  %v5824_v15 = vld [vmem:[%s10240_s8] sm:$0x3] }
 0x477   : > { %5770 = vmatprep.subr.bf16.mxu0 %v7702_v56  ;;  %v5832_v56 = vsub.s32 1, %v5827_v27 }
 0x47a   : > { %5771 = vmatpush1.bf16.msra.mxu0 %v7700_v17  ;;  %v5829_v17 = vrot.slane %v5824_v15, %v5828_v12 }
 0x47b   : > { %5772 = vmatprep.subr.bf16.mxu0 %v7705_v48 }
 0x47e   : > { %5773 = vmatpush1.bf16.msra.mxu0 %v7703_v31  ;;  %v5833_v31 = vrot.slane %v5824_v15, %v5832_v56 }
 0x47f   : > { %5783 = vmatprep.subr.bf16.mxu0 %v7708_v35 }
 0x481   : > { %5775 = vmatmul.mubr.bf16.vlgmr.msra.gmra.mrb[32].mxu0 %v3952_v22 }
 0x482   : > { %5784 = vmatpush1.bf16.msra.mxu0 %v7706_v1  ;;  %5815 = vmatprep.mubr.bf16.mxu0 %v3958_v45 }
 0x483   : > { %5785 = vmatprep.subr.bf16.mxu0 %v7711_v39 }
 0x486   : > { %5786 = vmatpush1.bf16.msra.mxu0 %v7709_v40  ;;  %v7839_v40 = vmov 1.0|1.0  }
 0x487   : > { %5787 = vmatprep.subr.bf16.mxu0 %v7714_v19 }
 0x48a   : > { %5788 = vmatpush1.bf16.msra.mxu0 %v7712_v13 }
 0x48b   : > { %5789 = vmatprep.subr.bf16.mxu0 %v7717_v21  ;;  %v6012_v21 = vld [vmem:[%s10242_s10] sm:$0x1] }
 0x48e   : > { %5790 = vmatpush1.bf16.msra.mxu0 %v7715_v2 }
 0x48f   : > { %5791 = vmatprep.subr.bf16.mxu0 %v7720_v9 }
 0x492   : > { %5792 = vmatpush1.bf16.msra.mxu0 %v7718_v50 }
 0x493   : > { %5793 = vmatprep.subr.bf16.mxu0 %v7723_v54 }
 0x496   : > { %5794 = vmatpush1.bf16.msra.mxu0 %v7721_v59 }
 0x497   : > { %5795 = vmatprep.subr.bf16.mxu0 %v7726_v8 }
 0x49a   : > { %5796 = vmatpush1.bf16.msra.mxu0 %v7724_v44 }
 0x49b   : > { %5797 = vmatprep.subr.bf16.mxu0 %v7729_v6 }
 0x49e   : > { %5798 = vmatpush1.bf16.msra.mxu0 %v7727_v29 }
 0x49f   : > { %5799 = vmatprep.subr.bf16.mxu0 %v7732_v34 }
 0x4a2   : > { %5800 = vmatpush1.bf16.msra.mxu0 %v7730_v30 }
 0x4a3   : > { %5801 = vmatprep.subr.bf16.mxu0 %v7735_v61 }
 0x4a6   : > { %5802 = vmatpush1.bf16.msra.mxu0 %v7733_v58 }
 0x4a7   : > { %5803 = vmatprep.subr.bf16.mxu0 %v7738_v26 }
 0x4aa   : > { %5804 = vmatpush1.bf16.msra.mxu0 %v7736_v42 }
 0x4ab   : > { %5805 = vmatprep.subr.bf16.mxu0 %v7741_v16 }
 0x4ae   : > { %5806 = vmatpush1.bf16.msra.mxu0 %v7739_v62 }
 0x4af   : > { %5807 = vmatprep.subr.bf16.mxu0 %v7744_v4 }
 0x4b2   : > { %5808 = vmatpush1.bf16.msra.mxu0 %v7742_v46 }
 0x4b3   : > { %5809 = vmatprep.subr.bf16.mxu0 %v7747_v24 }
 0x4b6   : > { %5810 = vmatpush1.bf16.msra.mxu0 %v7745_v18 }
 0x4b7   : > { %5811 = vmatprep.subr.bf16.mxu0 %v7750_v33 }
 0x4ba   : > { %5812 = vmatpush1.bf16.msra.mxu0 %v7748_v3 }
 0x4bb   : > { %5813 = vmatprep.subr.bf16.mxu0 %v7753_v28 }
 0x4be   : > { %5814 = vmatpush1.bf16.msra.mxu0 %v7751_v43 }
 0x4c1   : > { %5816 = vmatmul.mubr.bf16.vlgmr.msra.gmra.mrb[32].mxu0 %v3956_v41 }
 0x511   : > { %v5612_v32 = vpop.f32.mrb[92].mxu1 }
 0x512   : > { %v5614_v10 = vpop.f32.mrb[93].mxu1 }
 0x513   : > { %v5616_v14 = vpop.f32.mrb[94].mxu1 }
 0x514   : > { %v5617_v49 = vpop.f32.mrb[95].mxu1 }
 0x594   : > { %v5817_v48 = vpop.f32.mrb[32].mxu0 }
 0x595   : > { %v7091_v35 = vadd.f32 %v5817_v48, %v5612_v32  ;;  %v5819_v1 = vpop.f32.mrb[33].mxu0 }
 0x596   : > { %v7092_v22 = vadd.f32 %v5819_v1, %v5614_v10  ;;  %v5821_v39 = vpop.f32.mrb[34].mxu0 }
 0x597   : > { %vm5836_vm6 = vcmp.ge.f32.partialorder %v7091_v35, %v5829_v17  ;;  %v5822_v45 = vpop.f32.mrb[35].mxu0 }
 0x598   : > { %vm5837_vm4 = vcmp.ge.f32.partialorder %v7092_v22, %v5833_v31  ;;  %vm6692_vm13 = vmpackc.low %vm5836_vm6, %vm5836_vm6 }
 0x599   : > { %vm6690_vm5 = vmpackc.low %vm5837_vm4, %vm5837_vm4 }
 0x59a   : > { %6691 = vmatprep.mubr.msk.bf16.mxu1 %vm6690_vm5, %v7839_v40 }
 0x59b   : > { %6693 = vmatmul.mubr.msk.bf16.vlgmr.msra.gmra.mrb[96].mxu1 %vm6692_vm13, %v7839_v40 }
 0x66e   : > { %v7003_v19 = vpop.f32.mrb[96].mxu1 }
 0x66f   : > { %v7004_v13 = vpop.f32.mrb[97].mxu1 }
 0x670   : > { %v7005_v2 = vadd.f32 %v7004_v13, %v7003_v19  ;;  %v7006_v9 = vpop.f32.mrb[98].mxu1 }
 0x671   : > { %v7007_v50 = vpop.f32.mrb[99].mxu1 }
 0x672   : > { %vm6013_vm0 = vcmp.ge.f32.partialorder %v7005_v2, %v6012_v21 }
 0x673   : > { %v6694_v54 = vsel %vm6013_vm0, 1.0, %v7837_v55 }
 0x674   : > { %6016 = vst [vmem:[%s378_s15] sm:$0x1] %v6694_v54 }
 0x675   : > { %7785 = shalt.err (!%p7782_p3)
}
 0x676   : > { %s7786_s30 = scalar_lea.hbm %s10189_s25, 16  ;;  %s7790_s22 = scalar_lea.hbm %s10243_s11, 32 }
 0x677   : > { %p7787_p4 = scmp.ne.s32.totalorder %s10189_s25, %s7786_s30  ;;  %p7791_p9 = scmp.lt.u32.totalorder %s10189_s25, %s10243_s11 }
 0x678   : > { %p7792_p10 = scmp.lt.u32.totalorder %s7790_s22, %s7786_s30  ;;  %p7794_p12 = scmp.lt.u32.totalorder %s7786_s30, %s10189_s25 }
 0x679   : > { %p7788_p7 = pnand %p7787_p4, %p7939_p5 }
 0x67a   : > { %p7793_p11 = por %p7792_p10, %p7791_p9 }
 0x67b   : > { %p7789_p8 = pneg %p7788_p7 }
 0x67c   : > { %p7795_p13 = por %p7794_p12, %p7793_p11 }
 0x67e   : > { %p7796_p0 = pnand %p7795_p13, %p7789_p8 }
 0x680   : > { %7799 = shalt.err (!%p7796_p0)
}
 0x681   : > { %7118 = dma.vmem_to_hbm [thread:$0]  (%p7939_p5), %s10191_s16, 16, %s10189_s25, %s6018_s21  }
 0x682 PF: > { %p7124_p1 = scmp.ge.s32.totalorder %s7834_s20, 2  ;;  %s6042_s0 = sand.u32 1, %s7822_s17  }
 0x683   : > { %s6043_s12 = scalar_lea.sflag [#allocation5], %s6042_s0 }
 0x684   : > { %p7121_p2 = pnand %p7124_p1, %p7943_p6 }
 0x686   : > { %7817 = dma.done.wait (!%p7121_p2), %s6043_s12, 16  }
 0x687   : > { %7819 = vsyncadd (!%p7121_p2), %s6043_s12, 4294967280  ;;  %p21_p3 = scmp.ge.s32.totalorder %s7926_s23, 4   ;;  %s10274_s17 = smov %s7826_s18 }
 0x688   : > { %s10275_s18 = smov %s7830_s19  ;;  %s10276_s19 = smov %s7937_s26 }
 0x689   : > { %s10277_s20 = smov %s7926_s23  ;;  %23 = sbr.rel (!%p21_p3) target bundleno = 5 (0x5), region = 99 }
 0x690   :  { %6047 = vsyncpa [#allocation5], 1 }
 0x691   :  { %6049 = vsyncpa [#allocation5 + $0x1], 1 }

</bundles_post_ra>
